<compile_context>
chip_gen: v5e
topology: v5e:2x2
jax: 0.10.0
libtpu: 0.0.40
codegen_flags: <defaults>
</compile_context>

<pallas_src>
import jax
import jax.numpy as jnp
from jax import lax
from jax.experimental import pallas as pl
from jax.experimental.pallas import tpu as pltpu


def _round_up(x, m):
    return (x + m - 1) // m * m


def _bigru_kernel(x_ref,          # (T, BB, D)   time-major input block
                  wih_ref,        # (D, 6*Hp)    [fwd r|z|n , bwd r|z|n] input weights
                  bgi_ref,        # (1, 6*Hp)    b_ih (+ b_hh for r,z) folded biases
                  whh_f_ref,      # (Hp, 3*Hp)   forward hidden weights
                  whh_b_ref,      # (Hp, 3*Hp)   backward hidden weights
                  bhn_f_ref,      # (1, Hp)      forward b_hh of the n gate
                  bhn_b_ref,      # (1, Hp)      backward b_hh of the n gate
                  wfc_f_ref,      # (Hp, Op)     head weights for fwd features
                  wfc_b_ref,      # (Hp, Op)     head weights for bwd features
                  bfc_ref,        # (1, Op)
                  out_ref,        # (T, BB, Op)
                  gix_ref,        # scratch (T, BB, 6*Hp) f32: precomputed gi
                  hsf_ref,        # scratch (T, BB, Hp)   f32: fwd hidden states
                  hsb_ref):       # scratch (T, BB, Hp)   f32: bwd hidden states
    T, BB, D = x_ref.shape
    Hp = whh_f_ref.shape[0]

    # ---- 1. Hoisted input projection: one big MXU matmul for all timesteps
    #         and both directions, with input (+ r/z hidden) biases folded in.
    x2d = x_ref[...].reshape(T * BB, D)
    g = jnp.dot(x2d, wih_ref[...], preferred_element_type=jnp.float32) + bgi_ref[...]
    gix_ref[...] = g.reshape(T, BB, 6 * Hp)

    whh_f = whh_f_ref[...]
    whh_b = whh_b_ref[...]
    bhn_f = bhn_f_ref[...]
    bhn_b = bhn_b_ref[...]

    def cell(gi, h_prev, whh, bhn):
        # PyTorch GRU, gate order [r, z, n]; gi already contains b_ih and, for
        # the r/z gates, b_hh.  Only the truly sequential h @ W_hh runs here.
        gh = jnp.dot(h_prev, whh, preferred_element_type=jnp.float32)
        r = jax.nn.sigmoid(gi[:, 0:Hp] + gh[:, 0:Hp])
        z = jax.nn.sigmoid(gi[:, Hp:2 * Hp] + gh[:, Hp:2 * Hp])
        n = jnp.tanh(gi[:, 2 * Hp:3 * Hp] + r * (gh[:, 2 * Hp:3 * Hp] + bhn))
        return (1.0 - z) * n + z * h_prev

    h0 = jnp.zeros((BB, Hp), jnp.float32)

    # ---- 2. Fused forward/backward recurrence (one unrolled loop). ----
    def body(i, carry):
        h_f, h_b = carry
        tb = T - 1 - i
        gi_f = gix_ref[i]                       # (BB, 6*Hp)
        gi_b = gix_ref[tb]
        h_f = cell(gi_f[:, 0:3 * Hp], h_f, whh_f, bhn_f)
        h_b = cell(gi_b[:, 3 * Hp:6 * Hp], h_b, whh_b, bhn_b)
        hsf_ref[i] = h_f
        hsb_ref[tb] = h_b
        return (h_f, h_b)

    unroll = True if T <= 16 else 8
    lax.fori_loop(0, T, body, (h0, h0), unroll=unroll)

    # ---- 3. Lane-dense linear head: 2-D MXU matmuls over all (t, b) rows. ----
    hf2 = hsf_ref[...].reshape(T * BB, Hp)
    hb2 = hsb_ref[...].reshape(T * BB, Hp)
    out = (jnp.dot(hf2, wfc_f_ref[...], preferred_element_type=jnp.float32)
           + jnp.dot(hb2, wfc_b_ref[...], preferred_element_type=jnp.float32)
           + bfc_ref[...])
    out_ref[...] = out.reshape(T, BB, out_ref.shape[-1]).astype(out_ref.dtype)


def _pad_gates(w, H, Hp):
    """(..., 3H) -> (..., 3Hp): pad each of the r/z/n gate blocks to Hp lanes."""
    r, z, n = w[..., 0:H], w[..., H:2 * H], w[..., 2 * H:3 * H]
    pad = [(0, 0)] * (w.ndim - 1) + [(0, Hp - H)]
    return jnp.concatenate(
        [jnp.pad(r, pad), jnp.pad(z, pad), jnp.pad(n, pad)], axis=-1)


def bigru_forward(x, params):
    """x: (B, T, input_dim) f32 -> (B, T, out_dim) f32 (PyTorch BiGRU.forward)."""
    B, T, D = x.shape
    H = params['whh_f'].shape[0]
    O = params['wfc'].shape[1]

    Hp = _round_up(H, 128)    # lane-aligned gate blocks
    Op = _round_up(O, 128)    # lane-dense output stores
    Bp = _round_up(B, 8)      # sublane-aligned batch

    # Batch block for the grid (keeps per-invocation VMEM bounded; "parallel").
    BB = Bp
    for cand in (256, 128, 64, 32, 16, 8):
        if Bp > cand and Bp % cand == 0:
            BB = cand
            break
    n_b = Bp // BB

    # ---- pack / pad parameters (tiny one-time XLA ops under jit) ----
    def pack_dir(wih, whh, bih, bhh):
        wih_p = _pad_ates = _pad_gates(wih, H, Hp)               # (D, 3Hp)
        whh_p = _pad_gates(whh, H, Hp)                           # (H, 3Hp)
        whh_p = jnp.pad(whh_p, ((0, Hp - H), (0, 0)))            # (Hp, 3Hp)
        # Fold b_ih into the precomputed input projection; also fold b_hh for
        # the r and z gates (the n gate's b_hh must stay inside r*(...)).
        b_hh_rz = jnp.concatenate(
            [bhh[:, 0:2 * H], jnp.zeros_like(bhh[:, 2 * H:3 * H])], axis=-1)
        bgi = _pad_gates(bih + b_hh_rz, H, Hp)                   # (1, 3Hp)
        bhn = jnp.pad(bhh[:, 2 * H:3 * H], ((0, 0), (0, Hp - H)))  # (1, Hp)
        return wih_p, whh_p, bgi, bhn

    wih_f, whh_f, bgi_f, bhn_f = pack_dir(params['wih_f'], params['whh_f'],
                                          params['bih_f'], params['bhh_f'])
    wih_b, whh_b, bgi_b, bhn_b = pack_dir(params['wih_b'], params['whh_b'],
                                          params['bih_b'], params['bhh_b'])
    wih_cat = jnp.concatenate([wih_f, wih_b], axis=1)            # (D, 6Hp)
    bgi_cat = jnp.concatenate([bgi_f, bgi_b], axis=1)            # (1, 6Hp)

    wfc = params['wfc']
    wfc_f = jnp.pad(wfc[0:H], ((0, Hp - H), (0, Op - O)))        # (Hp, Op)
    wfc_b = jnp.pad(wfc[H:2 * H], ((0, Hp - H), (0, Op - O)))    # (Hp, Op)
    bfc = jnp.pad(params['bfc'], ((0, 0), (0, Op - O)))          # (1, Op)

    # ---- time-major, batch-padded input ----
    xp = jnp.pad(x, ((0, Bp - B), (0, 0), (0, 0)))               # (Bp, T, D)
    x_tm = jnp.transpose(xp, (1, 0, 2))                          # (T, Bp, D)

    def full2d(shape):
        return pl.BlockSpec(shape, lambda b: (0, 0))

    out_tm = pl.pallas_call(
        _bigru_kernel,
        out_shape=jax.ShapeDtypeStruct((T, Bp, Op), jnp.float32),
        grid=(n_b,),
        in_specs=[
            pl.BlockSpec((T, BB, D), lambda b: (0, b, 0)),       # x (time-major)
            full2d((D, 6 * Hp)),                                 # wih_cat
            full2d((1, 6 * Hp)),                                 # bgi_cat
            full2d((Hp, 3 * Hp)),                                # whh_f
            full2d((Hp, 3 * Hp)),                                # whh_b
            full2d((1, Hp)),                                     # bhn_f
            full2d((1, Hp)),                                     # bhn_b
            full2d((Hp, Op)),                                    # wfc_f
            full2d((Hp, Op)),                                    # wfc_b
            full2d((1, Op)),                                     # bfc
        ],
        out_specs=pl.BlockSpec((T, BB, Op), lambda b: (0, b, 0)),
        scratch_shapes=[
            pltpu.VMEM((T, BB, 6 * Hp), jnp.float32),            # precomputed gi
            pltpu.VMEM((T, BB, Hp), jnp.float32),                # fwd hidden states
            pltpu.VMEM((T, BB, Hp), jnp.float32),                # bwd hidden states
        ],
        compiler_params=pltpu.CompilerParams(
            dimension_semantics=("parallel",)),
    )(x_tm, wih_cat, bgi_cat, whh_f, whh_b, bhn_f, bhn_b, wfc_f, wfc_b, bfc)

    # Slice off batch/output padding and return batch-major (B, T, O).
    return jnp.transpose(out_tm[:, :B, :O], (1, 0, 2))


def init_params(key, input_dim, hidden_dim, out_dim):
    """Deterministic init matching PyTorch shapes (weights stored transposed)."""
    H = hidden_dim
    k_gru = 1.0 / jnp.sqrt(H)
    k_fc = 1.0 / jnp.sqrt(2.0 * H)
    keys = jax.random.split(key, 10)

    def u(k, shape, scale):
        return jax.random.uniform(k, shape, jnp.float32, -scale, scale)

    return {
        # forward direction
        'wih_f': u(keys[0], (input_dim, 3 * H), k_gru),
        'whh_f': u(keys[1], (H, 3 * H), k_gru),
        'bih_f': u(keys[2], (1, 3 * H), k_gru),
        'bhh_f': u(keys[3], (1, 3 * H), k_gru),
        # backward direction
        'wih_b': u(keys[4], (input_dim, 3 * H), k_gru),
        'whh_b': u(keys[5], (H, 3 * H), k_gru),
        'bih_b': u(keys[6], (1, 3 * H), k_gru),
        'bhh_b': u(keys[7], (1, 3 * H), k_gru),
        # fc_out: Linear(2H, out_dim)
        'wfc': u(keys[8], (2 * H, out_dim), k_fc),
        'bfc': u(keys[9], (1, out_dim), k_fc),
    }


def bigru_reference(x, params):
    """Pure-JAX reference of the same forward pass (for correctness check)."""
    H = params['whh_f'].shape[0]

    def run_dir(wih, whh, bih, bhh, xs):
        def step(h, x_t):
            gi = x_t @ wih + bih[0]
            gh = h @ whh + bhh[0]
            r = jax.nn.sigmoid(gi[:, :H] + gh[:, :H])
            z = jax.nn.sigmoid(gi[:, H:2 * H] + gh[:, H:2 * H])
            n = jnp.tanh(gi[:, 2 * H:] + r * gh[:, 2 * H:])
            h_new = (1.0 - z) * n + z * h
            return h_new, h_new

        h0 = jnp.zeros((xs.shape[1], H), jnp.float32)
        _, hs = lax.scan(step, h0, xs)
        return hs                                        # (T, B, H)

    xs = jnp.transpose(x, (1, 0, 2))                     # (T, B, D)
    hf = run_dir(params['wih_f'], params['whh_f'],
                 params['bih_f'], params['bhh_f'], xs)
    hb = run_dir(params['wih_b'], params['whh_b'],
                 params['bih_b'], params['bhh_b'], xs[::-1])[::-1]
    feats = jnp.concatenate([hf, hb], axis=-1)           # (T, B, 2H)
    out = feats @ params['wfc'] + params['bfc'][0]       # (T, B, O)
    return jnp.transpose(out, (1, 0, 2))                 # (B, T, O)


if __name__ == "__main__":
    B, T, INPUT_DIM, HIDDEN_DIM, OUT_DIM = 2, 8, 16, 32, 4

    key = jax.random.PRNGKey(0)
    kx, kp = jax.random.split(key)
    x = jax.random.normal(kx, (B, T, INPUT_DIM), jnp.float32)
    params = init_params(kp, INPUT_DIM, HIDDEN_DIM, OUT_DIM)

    velocity = jax.jit(bigru_forward)(x, params)
    jax.block_until_ready(velocity)

    ref = bigru_reference(x, params)
    assert velocity.shape == (B, T, OUT_DIM)
    err = jnp.max(jnp.abs(velocity - ref))
    assert jnp.allclose(velocity, ref, atol=1e-3, rtol=1e-3), f"max diff {err}"

    print("KERNEL_OK")
</pallas_src>

<mosaic_0001>
module attributes {stable_mosaic.version = 11 : i64} {
  func.func @_bigru_kernel(%arg0: i32, %arg1: memref<8x8x16xf32, #tpu.memory_space<vmem>>, %arg2: memref<16x768xf32, #tpu.memory_space<vmem>>, %arg3: memref<1x768xf32, #tpu.memory_space<vmem>>, %arg4: memref<128x384xf32, #tpu.memory_space<vmem>>, %arg5: memref<128x384xf32, #tpu.memory_space<vmem>>, %arg6: memref<1x128xf32, #tpu.memory_space<vmem>>, %arg7: memref<1x128xf32, #tpu.memory_space<vmem>>, %arg8: memref<128x128xf32, #tpu.memory_space<vmem>>, %arg9: memref<128x128xf32, #tpu.memory_space<vmem>>, %arg10: memref<1x128xf32, #tpu.memory_space<vmem>>, %arg11: memref<8x8x128xf32, #tpu.memory_space<vmem>>, %arg12: memref<8x8x768xf32, #tpu.memory_space<vmem>>, %arg13: memref<8x8x128xf32, #tpu.memory_space<vmem>>, %arg14: memref<8x8x128xf32, #tpu.memory_space<vmem>>) attributes {dimension_semantics = [#tpu.dimension_semantics<parallel>], iteration_bounds = array<i64: 1>, scalar_prefetch = 0 : i64, scratch_operands = 3 : i64, tpu.core_type = #tpu.core_type<tc>, window_params = [{transform_indices = @transform_0, window_bounds = array<i64: 8, 8, 16>}, {pipeline_mode = #tpu.pipeline_mode<synchronous>, transform_indices = @transform_1, window_bounds = array<i64: 16, 768>}, {pipeline_mode = #tpu.pipeline_mode<synchronous>, transform_indices = @transform_2, window_bounds = array<i64: 1, 768>}, {pipeline_mode = #tpu.pipeline_mode<synchronous>, transform_indices = @transform_3, window_bounds = array<i64: 128, 384>}, {pipeline_mode = #tpu.pipeline_mode<synchronous>, transform_indices = @transform_4, window_bounds = array<i64: 128, 384>}, {pipeline_mode = #tpu.pipeline_mode<synchronous>, transform_indices = @transform_5, window_bounds = array<i64: 1, 128>}, {pipeline_mode = #tpu.pipeline_mode<synchronous>, transform_indices = @transform_6, window_bounds = array<i64: 1, 128>}, {pipeline_mode = #tpu.pipeline_mode<synchronous>, transform_indices = @transform_7, window_bounds = array<i64: 128, 128>}, {pipeline_mode = #tpu.pipeline_mode<synchronous>, transform_indices = @transform_8, window_bounds = array<i64: 128, 128>}, {pipeline_mode = #tpu.pipeline_mode<synchronous>, transform_indices = @transform_9, window_bounds = array<i64: 1, 128>}, {transform_indices = @transform_10, window_bounds = array<i64: 8, 8, 128>}]} {
    %c0 = arith.constant 0 : index
    %c0_0 = arith.constant 0 : index
    %c0_1 = arith.constant 0 : index
    %0 = vector.load %arg1[%c0, %c0_0, %c0_1] : memref<8x8x16xf32, #tpu.memory_space<vmem>>, vector<8x8x16xf32>
    %1 = vector.shape_cast %0 : vector<8x8x16xf32> to vector<64x16xf32>
    %c0_2 = arith.constant 0 : index
    %c0_3 = arith.constant 0 : index
    %2 = vector.load %arg2[%c0_2, %c0_3] : memref<16x768xf32, #tpu.memory_space<vmem>>, vector<16x768xf32>
    %cst = arith.constant dense<0.000000e+00> : vector<64x768xf32>
    %3 = tpu.matmul %1, %2, %cst {dimension_numbers = #tpu.dot_dimension_numbers<[1], [0], [0], [1], [0, 0, 1, 1], [], []>} : vector<64x16xf32>, vector<16x768xf32>, vector<64x768xf32> -> vector<64x768xf32>
    %c0_4 = arith.constant 0 : index
    %c0_5 = arith.constant 0 : index
    %4 = vector.load %arg3[%c0_4, %c0_5] : memref<1x768xf32, #tpu.memory_space<vmem>>, vector<1x768xf32>
    %5 = vector.broadcast %4 : vector<1x768xf32> to vector<64x768xf32>
    %6 = arith.addf %3, %5 : vector<64x768xf32>
    %7 = vector.shape_cast %6 : vector<64x768xf32> to vector<8x8x768xf32>
    %c0_6 = arith.constant 0 : index
    %c0_7 = arith.constant 0 : index
    %c0_8 = arith.constant 0 : index
    %8 = vector.load %arg12[%c0_6, %c0_7, %c0_8] : memref<8x8x768xf32, #tpu.memory_space<vmem>>, vector<8x8x768xf32>
    tpu.vector_store %arg12[%c0_6, %c0_7, %c0_8], %7 {strides = array<i32>} : memref<8x8x768xf32, #tpu.memory_space<vmem>>, vector<8x8x768xf32>,
    %c0_9 = arith.constant 0 : index
    %c0_10 = arith.constant 0 : index
    %9 = vector.load %arg4[%c0_9, %c0_10] : memref<128x384xf32, #tpu.memory_space<vmem>>, vector<128x384xf32>
    %c0_11 = arith.constant 0 : index
    %c0_12 = arith.constant 0 : index
    %10 = vector.load %arg5[%c0_11, %c0_12] : memref<128x384xf32, #tpu.memory_space<vmem>>, vector<128x384xf32>
    %c0_13 = arith.constant 0 : index
    %c0_14 = arith.constant 0 : index
    %11 = vector.load %arg6[%c0_13, %c0_14] : memref<1x128xf32, #tpu.memory_space<vmem>>, vector<1x128xf32>
    %c0_15 = arith.constant 0 : index
    %c0_16 = arith.constant 0 : index
    %12 = vector.load %arg7[%c0_15, %c0_16] : memref<1x128xf32, #tpu.memory_space<vmem>>, vector<1x128xf32>
    %cst_17 = arith.constant 0.000000e+00 : f32
    %13 = vector.broadcast %cst_17 : f32 to vector<8x128xf32>
    %c0_i32 = arith.constant 0 : i32
    %c7_i32 = arith.constant 7 : i32
    %14 = arith.subi %c7_i32, %c0_i32 : i32
    %15 = arith.index_cast %c0_i32 : i32 to index
    %c0_18 = arith.constant 0 : index
    %c0_19 = arith.constant 0 : index
    %16 = vector.load %arg12[%15, %c0_18, %c0_19] : memref<8x8x768xf32, #tpu.memory_space<vmem>>, vector<1x8x768xf32>
    %17 = vector.shape_cast %16 : vector<1x8x768xf32> to vector<8x768xf32>
    %18 = arith.index_cast %14 : i32 to index
    %c0_20 = arith.constant 0 : index
    %c0_21 = arith.constant 0 : index
    %19 = vector.load %arg12[%18, %c0_20, %c0_21] : memref<8x8x768xf32, #tpu.memory_space<vmem>>, vector<1x8x768xf32>
    %20 = vector.shape_cast %19 : vector<1x8x768xf32> to vector<8x768xf32>
    %21 = vector.extract_strided_slice %17 {offsets = [0, 0], sizes = [8, 384], strides = [1, 1]} : vector<8x768xf32> to vector<8x384xf32>
    %cst_22 = arith.constant dense<0.000000e+00> : vector<8x384xf32>
    %22 = tpu.matmul %13, %9, %cst_22 {dimension_numbers = #tpu.dot_dimension_numbers<[1], [0], [0], [1], [0, 0, 1, 1], [], []>} : vector<8x128xf32>, vector<128x384xf32>, vector<8x384xf32> -> vector<8x384xf32>
    %23 = vector.extract_strided_slice %21 {offsets = [0, 0], sizes = [8, 128], strides = [1, 1]} : vector<8x384xf32> to vector<8x128xf32>
    %24 = vector.extract_strided_slice %22 {offsets = [0, 0], sizes = [8, 128], strides = [1, 1]} : vector<8x384xf32> to vector<8x128xf32>
    %25 = arith.addf %23, %24 : vector<8x128xf32>
    %26 = arith.negf %25 : vector<8x128xf32>
    %27 = math.exp %26 : vector<8x128xf32>
    %cst_23 = arith.constant 1.000000e+00 : f32
    %28 = vector.broadcast %cst_23 : f32 to vector<8x128xf32>
    %29 = arith.addf %28, %27 : vector<8x128xf32>
    %30 = arith.divf %28, %29 : vector<8x128xf32>
    %31 = vector.extract_strided_slice %21 {offsets = [0, 128], sizes = [8, 128], strides = [1, 1]} : vector<8x384xf32> to vector<8x128xf32>
    %32 = vector.extract_strided_slice %22 {offsets = [0, 128], sizes = [8, 128], strides = [1, 1]} : vector<8x384xf32> to vector<8x128xf32>
    %33 = arith.addf %31, %32 : vector<8x128xf32>
    %34 = arith.negf %33 : vector<8x128xf32>
    %35 = math.exp %34 : vector<8x128xf32>
    %cst_24 = arith.constant 1.000000e+00 : f32
    %36 = vector.broadcast %cst_24 : f32 to vector<8x128xf32>
    %37 = arith.addf %36, %35 : vector<8x128xf32>
    %38 = arith.divf %36, %37 : vector<8x128xf32>
    %39 = vector.extract_strided_slice %21 {offsets = [0, 256], sizes = [8, 128], strides = [1, 1]} : vector<8x384xf32> to vector<8x128xf32>
    %40 = vector.extract_strided_slice %22 {offsets = [0, 256], sizes = [8, 128], strides = [1, 1]} : vector<8x384xf32> to vector<8x128xf32>
    %41 = vector.broadcast %11 : vector<1x128xf32> to vector<8x128xf32>
    %42 = arith.addf %40, %41 : vector<8x128xf32>
    %43 = arith.mulf %30, %42 : vector<8x128xf32>
    %44 = arith.addf %39, %43 : vector<8x128xf32>
    %45 = math.tanh %44 : vector<8x128xf32>
    %cst_25 = arith.constant 1.000000e+00 : f32
    %46 = vector.broadcast %cst_25 : f32 to vector<8x128xf32>
    %47 = arith.subf %46, %38 : vector<8x128xf32>
    %48 = arith.mulf %47, %45 : vector<8x128xf32>
    %49 = arith.mulf %38, %13 : vector<8x128xf32>
    %50 = arith.addf %48, %49 : vector<8x128xf32>
    %51 = vector.extract_strided_slice %20 {offsets = [0, 384], sizes = [8, 384], strides = [1, 1]} : vector<8x768xf32> to vector<8x384xf32>
    %cst_26 = arith.constant dense<0.000000e+00> : vector<8x384xf32>
    %52 = tpu.matmul %13, %10, %cst_26 {dimension_numbers = #tpu.dot_dimension_numbers<[1], [0], [0], [1], [0, 0, 1, 1], [], []>} : vector<8x128xf32>, vector<128x384xf32>, vector<8x384xf32> -> vector<8x384xf32>
    %53 = vector.extract_strided_slice %51 {offsets = [0, 0], sizes = [8, 128], strides = [1, 1]} : vector<8x384xf32> to vector<8x128xf32>
    %54 = vector.extract_strided_slice %52 {offsets = [0, 0], sizes = [8, 128], strides = [1, 1]} : vector<8x384xf32> to vector<8x128xf32>
    %55 = arith.addf %53, %54 : vector<8x128xf32>
    %56 = arith.negf %55 : vector<8x128xf32>
    %57 = math.exp %56 : vector<8x128xf32>
    %cst_27 = arith.constant 1.000000e+00 : f32
    %58 = vector.broadcast %cst_27 : f32 to vector<8x128xf32>
    %59 = arith.addf %58, %57 : vector<8x128xf32>
    %60 = arith.divf %58, %59 : vector<8x128xf32>
    %61 = vector.extract_strided_slice %51 {offsets = [0, 128], sizes = [8, 128], strides = [1, 1]} : vector<8x384xf32> to vector<8x128xf32>
    %62 = vector.extract_strided_slice %52 {offsets = [0, 128], sizes = [8, 128], strides = [1, 1]} : vector<8x384xf32> to vector<8x128xf32>
    %63 = arith.addf %61, %62 : vector<8x128xf32>
    %64 = arith.negf %63 : vector<8x128xf32>
    %65 = math.exp %64 : vector<8x128xf32>
    %cst_28 = arith.constant 1.000000e+00 : f32
    %66 = vector.broadcast %cst_28 : f32 to vector<8x128xf32>
    %67 = arith.addf %66, %65 : vector<8x128xf32>
    %68 = arith.divf %66, %67 : vector<8x128xf32>
    %69 = vector.extract_strided_slice %51 {offsets = [0, 256], sizes = [8, 128], strides = [1, 1]} : vector<8x384xf32> to vector<8x128xf32>
    %70 = vector.extract_strided_slice %52 {offsets = [0, 256], sizes = [8, 128], strides = [1, 1]} : vector<8x384xf32> to vector<8x128xf32>
    %71 = vector.broadcast %12 : vector<1x128xf32> to vector<8x128xf32>
    %72 = arith.addf %70, %71 : vector<8x128xf32>
    %73 = arith.mulf %60, %72 : vector<8x128xf32>
    %74 = arith.addf %69, %73 : vector<8x128xf32>
    %75 = math.tanh %74 : vector<8x128xf32>
    %cst_29 = arith.constant 1.000000e+00 : f32
    %76 = vector.broadcast %cst_29 : f32 to vector<8x128xf32>
    %77 = arith.subf %76, %68 : vector<8x128xf32>
    %78 = arith.mulf %77, %75 : vector<8x128xf32>
    %79 = arith.mulf %68, %13 : vector<8x128xf32>
    %80 = arith.addf %78, %79 : vector<8x128xf32>
    %81 = arith.index_cast %c0_i32 : i32 to index
    %c0_30 = arith.constant 0 : index
    %c0_31 = arith.constant 0 : index
    %82 = vector.load %arg13[%81, %c0_30, %c0_31] : memref<8x8x128xf32, #tpu.memory_space<vmem>>, vector<1x8x128xf32>
    %83 = vector.shape_cast %82 : vector<1x8x128xf32> to vector<8x128xf32>
    %84 = vector.shape_cast %50 : vector<8x128xf32> to vector<1x8x128xf32>
    tpu.vector_store %arg13[%81, %c0_30, %c0_31], %84 {strides = array<i32>} : memref<8x8x128xf32, #tpu.memory_space<vmem>>, vector<1x8x128xf32>,
    %85 = arith.index_cast %14 : i32 to index
    %c0_32 = arith.constant 0 : index
    %c0_33 = arith.constant 0 : index
    %86 = vector.load %arg14[%85, %c0_32, %c0_33] : memref<8x8x128xf32, #tpu.memory_space<vmem>>, vector<1x8x128xf32>
    %87 = vector.shape_cast %86 : vector<1x8x128xf32> to vector<8x128xf32>
    %88 = vector.shape_cast %80 : vector<8x128xf32> to vector<1x8x128xf32>
    tpu.vector_store %arg14[%85, %c0_32, %c0_33], %88 {strides = array<i32>} : memref<8x8x128xf32, #tpu.memory_space<vmem>>, vector<1x8x128xf32>,
    %c1_i32 = arith.constant 1 : i32
    %c7_i32_34 = arith.constant 7 : i32
    %89 = arith.subi %c7_i32_34, %c1_i32 : i32
    %90 = arith.index_cast %c1_i32 : i32 to index
    %c0_35 = arith.constant 0 : index
    %c0_36 = arith.constant 0 : index
    %91 = vector.load %arg12[%90, %c0_35, %c0_36] : memref<8x8x768xf32, #tpu.memory_space<vmem>>, vector<1x8x768xf32>
    %92 = vector.shape_cast %91 : vector<1x8x768xf32> to vector<8x768xf32>
    %93 = arith.index_cast %89 : i32 to index
    %c0_37 = arith.constant 0 : index
    %c0_38 = arith.constant 0 : index
    %94 = vector.load %arg12[%93, %c0_37, %c0_38] : memref<8x8x768xf32, #tpu.memory_space<vmem>>, vector<1x8x768xf32>
    %95 = vector.shape_cast %94 : vector<1x8x768xf32> to vector<8x768xf32>
    %96 = vector.extract_strided_slice %92 {offsets = [0, 0], sizes = [8, 384], strides = [1, 1]} : vector<8x768xf32> to vector<8x384xf32>
    %cst_39 = arith.constant dense<0.000000e+00> : vector<8x384xf32>
    %97 = tpu.matmul %50, %9, %cst_39 {dimension_numbers = #tpu.dot_dimension_numbers<[1], [0], [0], [1], [0, 0, 1, 1], [], []>} : vector<8x128xf32>, vector<128x384xf32>, vector<8x384xf32> -> vector<8x384xf32>
    %98 = vector.extract_strided_slice %96 {offsets = [0, 0], sizes = [8, 128], strides = [1, 1]} : vector<8x384xf32> to vector<8x128xf32>
    %99 = vector.extract_strided_slice %97 {offsets = [0, 0], sizes = [8, 128], strides = [1, 1]} : vector<8x384xf32> to vector<8x128xf32>
    %100 = arith.addf %98, %99 : vector<8x128xf32>
    %101 = arith.negf %100 : vector<8x128xf32>
    %102 = math.exp %101 : vector<8x128xf32>
    %cst_40 = arith.constant 1.000000e+00 : f32
    %103 = vector.broadcast %cst_40 : f32 to vector<8x128xf32>
    %104 = arith.addf %103, %102 : vector<8x128xf32>
    %105 = arith.divf %103, %104 : vector<8x128xf32>
    %106 = vector.extract_strided_slice %96 {offsets = [0, 128], sizes = [8, 128], strides = [1, 1]} : vector<8x384xf32> to vector<8x128xf32>
    %107 = vector.extract_strided_slice %97 {offsets = [0, 128], sizes = [8, 128], strides = [1, 1]} : vector<8x384xf32> to vector<8x128xf32>
    %108 = arith.addf %106, %107 : vector<8x128xf32>
    %109 = arith.negf %108 : vector<8x128xf32>
    %110 = math.exp %109 : vector<8x128xf32>
    %cst_41 = arith.constant 1.000000e+00 : f32
    %111 = vector.broadcast %cst_41 : f32 to vector<8x128xf32>
    %112 = arith.addf %111, %110 : vector<8x128xf32>
    %113 = arith.divf %111, %112 : vector<8x128xf32>
    %114 = vector.extract_strided_slice %96 {offsets = [0, 256], sizes = [8, 128], strides = [1, 1]} : vector<8x384xf32> to vector<8x128xf32>
    %115 = vector.extract_strided_slice %97 {offsets = [0, 256], sizes = [8, 128], strides = [1, 1]} : vector<8x384xf32> to vector<8x128xf32>
    %116 = vector.broadcast %11 : vector<1x128xf32> to vector<8x128xf32>
    %117 = arith.addf %115, %116 : vector<8x128xf32>
    %118 = arith.mulf %105, %117 : vector<8x128xf32>
    %119 = arith.addf %114, %118 : vector<8x128xf32>
    %120 = math.tanh %119 : vector<8x128xf32>
    %cst_42 = arith.constant 1.000000e+00 : f32
    %121 = vector.broadcast %cst_42 : f32 to vector<8x128xf32>
    %122 = arith.subf %121, %113 : vector<8x128xf32>
    %123 = arith.mulf %122, %120 : vector<8x128xf32>
    %124 = arith.mulf %113, %50 : vector<8x128xf32>
    %125 = arith.addf %123, %124 : vector<8x128xf32>
    %126 = vector.extract_strided_slice %95 {offsets = [0, 384], sizes = [8, 384], strides = [1, 1]} : vector<8x768xf32> to vector<8x384xf32>
    %cst_43 = arith.constant dense<0.000000e+00> : vector<8x384xf32>
    %127 = tpu.matmul %80, %10, %cst_43 {dimension_numbers = #tpu.dot_dimension_numbers<[1], [0], [0], [1], [0, 0, 1, 1], [], []>} : vector<8x128xf32>, vector<128x384xf32>, vector<8x384xf32> -> vector<8x384xf32>
    %128 = vector.extract_strided_slice %126 {offsets = [0, 0], sizes = [8, 128], strides = [1, 1]} : vector<8x384xf32> to vector<8x128xf32>
    %129 = vector.extract_strided_slice %127 {offsets = [0, 0], sizes = [8, 128], strides = [1, 1]} : vector<8x384xf32> to vector<8x128xf32>
    %130 = arith.addf %128, %129 : vector<8x128xf32>
    %131 = arith.negf %130 : vector<8x128xf32>
    %132 = math.exp %131 : vector<8x128xf32>
    %cst_44 = arith.constant 1.000000e+00 : f32
    %133 = vector.broadcast %cst_44 : f32 to vector<8x128xf32>
    %134 = arith.addf %133, %132 : vector<8x128xf32>
    %135 = arith.divf %133, %134 : vector<8x128xf32>
    %136 = vector.extract_strided_slice %126 {offsets = [0, 128], sizes = [8, 128], strides = [1, 1]} : vector<8x384xf32> to vector<8x128xf32>
    %137 = vector.extract_strided_slice %127 {offsets = [0, 128], sizes = [8, 128], strides = [1, 1]} : vector<8x384xf32> to vector<8x128xf32>
    %138 = arith.addf %136, %137 : vector<8x128xf32>
    %139 = arith.negf %138 : vector<8x128xf32>
    %140 = math.exp %139 : vector<8x128xf32>
    %cst_45 = arith.constant 1.000000e+00 : f32
    %141 = vector.broadcast %cst_45 : f32 to vector<8x128xf32>
    %142 = arith.addf %141, %140 : vector<8x128xf32>
    %143 = arith.divf %141, %142 : vector<8x128xf32>
    %144 = vector.extract_strided_slice %126 {offsets = [0, 256], sizes = [8, 128], strides = [1, 1]} : vector<8x384xf32> to vector<8x128xf32>
    %145 = vector.extract_strided_slice %127 {offsets = [0, 256], sizes = [8, 128], strides = [1, 1]} : vector<8x384xf32> to vector<8x128xf32>
    %146 = vector.broadcast %12 : vector<1x128xf32> to vector<8x128xf32>
    %147 = arith.addf %145, %146 : vector<8x128xf32>
    %148 = arith.mulf %135, %147 : vector<8x128xf32>
    %149 = arith.addf %144, %148 : vector<8x128xf32>
    %150 = math.tanh %149 : vector<8x128xf32>
    %cst_46 = arith.constant 1.000000e+00 : f32
    %151 = vector.broadcast %cst_46 : f32 to vector<8x128xf32>
    %152 = arith.subf %151, %143 : vector<8x128xf32>
    %153 = arith.mulf %152, %150 : vector<8x128xf32>
    %154 = arith.mulf %143, %80 : vector<8x128xf32>
    %155 = arith.addf %153, %154 : vector<8x128xf32>
    %156 = arith.index_cast %c1_i32 : i32 to index
    %c0_47 = arith.constant 0 : index
    %c0_48 = arith.constant 0 : index
    %157 = vector.load %arg13[%156, %c0_47, %c0_48] : memref<8x8x128xf32, #tpu.memory_space<vmem>>, vector<1x8x128xf32>
    %158 = vector.shape_cast %157 : vector<1x8x128xf32> to vector<8x128xf32>
    %159 = vector.shape_cast %125 : vector<8x128xf32> to vector<1x8x128xf32>
    tpu.vector_store %arg13[%156, %c0_47, %c0_48], %159 {strides = array<i32>} : memref<8x8x128xf32, #tpu.memory_space<vmem>>, vector<1x8x128xf32>,
    %160 = arith.index_cast %89 : i32 to index
    %c0_49 = arith.constant 0 : index
    %c0_50 = arith.constant 0 : index
    %161 = vector.load %arg14[%160, %c0_49, %c0_50] : memref<8x8x128xf32, #tpu.memory_space<vmem>>, vector<1x8x128xf32>
    %162 = vector.shape_cast %161 : vector<1x8x128xf32> to vector<8x128xf32>
    %163 = vector.shape_cast %155 : vector<8x128xf32> to vector<1x8x128xf32>
    tpu.vector_store %arg14[%160, %c0_49, %c0_50], %163 {strides = array<i32>} : memref<8x8x128xf32, #tpu.memory_space<vmem>>, vector<1x8x128xf32>,
    %c2_i32 = arith.constant 2 : i32
    %c7_i32_51 = arith.constant 7 : i32
    %164 = arith.subi %c7_i32_51, %c2_i32 : i32
    %165 = arith.index_cast %c2_i32 : i32 to index
    %c0_52 = arith.constant 0 : index
    %c0_53 = arith.constant 0 : index
    %166 = vector.load %arg12[%165, %c0_52, %c0_53] : memref<8x8x768xf32, #tpu.memory_space<vmem>>, vector<1x8x768xf32>
    %167 = vector.shape_cast %166 : vector<1x8x768xf32> to vector<8x768xf32>
    %168 = arith.index_cast %164 : i32 to index
    %c0_54 = arith.constant 0 : index
    %c0_55 = arith.constant 0 : index
    %169 = vector.load %arg12[%168, %c0_54, %c0_55] : memref<8x8x768xf32, #tpu.memory_space<vmem>>, vector<1x8x768xf32>
    %170 = vector.shape_cast %169 : vector<1x8x768xf32> to vector<8x768xf32>
    %171 = vector.extract_strided_slice %167 {offsets = [0, 0], sizes = [8, 384], strides = [1, 1]} : vector<8x768xf32> to vector<8x384xf32>
    %cst_56 = arith.constant dense<0.000000e+00> : vector<8x384xf32>
    %172 = tpu.matmul %125, %9, %cst_56 {dimension_numbers = #tpu.dot_dimension_numbers<[1], [0], [0], [1], [0, 0, 1, 1], [], []>} : vector<8x128xf32>, vector<128x384xf32>, vector<8x384xf32> -> vector<8x384xf32>
    %173 = vector.extract_strided_slice %171 {offsets = [0, 0], sizes = [8, 128], strides = [1, 1]} : vector<8x384xf32> to vector<8x128xf32>
    %174 = vector.extract_strided_slice %172 {offsets = [0, 0], sizes = [8, 128], strides = [1, 1]} : vector<8x384xf32> to vector<8x128xf32>
    %175 = arith.addf %173, %174 : vector<8x128xf32>
    %176 = arith.negf %175 : vector<8x128xf32>
    %177 = math.exp %176 : vector<8x128xf32>
    %cst_57 = arith.constant 1.000000e+00 : f32
    %178 = vector.broadcast %cst_57 : f32 to vector<8x128xf32>
    %179 = arith.addf %178, %177 : vector<8x128xf32>
    %180 = arith.divf %178, %179 : vector<8x128xf32>
    %181 = vector.extract_strided_slice %171 {offsets = [0, 128], sizes = [8, 128], strides = [1, 1]} : vector<8x384xf32> to vector<8x128xf32>
    %182 = vector.extract_strided_slice %172 {offsets = [0, 128], sizes = [8, 128], strides = [1, 1]} : vector<8x384xf32> to vector<8x128xf32>
    %183 = arith.addf %181, %182 : vector<8x128xf32>
    %184 = arith.negf %183 : vector<8x128xf32>
    %185 = math.exp %184 : vector<8x128xf32>
    %cst_58 = arith.constant 1.000000e+00 : f32
    %186 = vector.broadcast %cst_58 : f32 to vector<8x128xf32>
    %187 = arith.addf %186, %185 : vector<8x128xf32>
    %188 = arith.divf %186, %187 : vector<8x128xf32>
    %189 = vector.extract_strided_slice %171 {offsets = [0, 256], sizes = [8, 128], strides = [1, 1]} : vector<8x384xf32> to vector<8x128xf32>
    %190 = vector.extract_strided_slice %172 {offsets = [0, 256], sizes = [8, 128], strides = [1, 1]} : vector<8x384xf32> to vector<8x128xf32>
    %191 = vector.broadcast %11 : vector<1x128xf32> to vector<8x128xf32>
    %192 = arith.addf %190, %191 : vector<8x128xf32>
    %193 = arith.mulf %180, %192 : vector<8x128xf32>
    %194 = arith.addf %189, %193 : vector<8x128xf32>
    %195 = math.tanh %194 : vector<8x128xf32>
    %cst_59 = arith.constant 1.000000e+00 : f32
    %196 = vector.broadcast %cst_59 : f32 to vector<8x128xf32>
    %197 = arith.subf %196, %188 : vector<8x128xf32>
    %198 = arith.mulf %197, %195 : vector<8x128xf32>
    %199 = arith.mulf %188, %125 : vector<8x128xf32>
    %200 = arith.addf %198, %199 : vector<8x128xf32>
    %201 = vector.extract_strided_slice %170 {offsets = [0, 384], sizes = [8, 384], strides = [1, 1]} : vector<8x768xf32> to vector<8x384xf32>
    %cst_60 = arith.constant dense<0.000000e+00> : vector<8x384xf32>
    %202 = tpu.matmul %155, %10, %cst_60 {dimension_numbers = #tpu.dot_dimension_numbers<[1], [0], [0], [1], [0, 0, 1, 1], [], []>} : vector<8x128xf32>, vector<128x384xf32>, vector<8x384xf32> -> vector<8x384xf32>
    %203 = vector.extract_strided_slice %201 {offsets = [0, 0], sizes = [8, 128], strides = [1, 1]} : vector<8x384xf32> to vector<8x128xf32>
    %204 = vector.extract_strided_slice %202 {offsets = [0, 0], sizes = [8, 128], strides = [1, 1]} : vector<8x384xf32> to vector<8x128xf32>
    %205 = arith.addf %203, %204 : vector<8x128xf32>
    %206 = arith.negf %205 : vector<8x128xf32>
    %207 = math.exp %206 : vector<8x128xf32>
    %cst_61 = arith.constant 1.000000e+00 : f32
    %208 = vector.broadcast %cst_61 : f32 to vector<8x128xf32>
    %209 = arith.addf %208, %207 : vector<8x128xf32>
    %210 = arith.divf %208, %209 : vector<8x128xf32>
    %211 = vector.extract_strided_slice %201 {offsets = [0, 128], sizes = [8, 128], strides = [1, 1]} : vector<8x384xf32> to vector<8x128xf32>
    %212 = vector.extract_strided_slice %202 {offsets = [0, 128], sizes = [8, 128], strides = [1, 1]} : vector<8x384xf32> to vector<8x128xf32>
    %213 = arith.addf %211, %212 : vector<8x128xf32>
    %214 = arith.negf %213 : vector<8x128xf32>
    %215 = math.exp %214 : vector<8x128xf32>
    %cst_62 = arith.constant 1.000000e+00 : f32
    %216 = vector.broadcast %cst_62 : f32 to vector<8x128xf32>
    %217 = arith.addf %216, %215 : vector<8x128xf32>
    %218 = arith.divf %216, %217 : vector<8x128xf32>
    %219 = vector.extract_strided_slice %201 {offsets = [0, 256], sizes = [8, 128], strides = [1, 1]} : vector<8x384xf32> to vector<8x128xf32>
    %220 = vector.extract_strided_slice %202 {offsets = [0, 256], sizes = [8, 128], strides = [1, 1]} : vector<8x384xf32> to vector<8x128xf32>
    %221 = vector.broadcast %12 : vector<1x128xf32> to vector<8x128xf32>
    %222 = arith.addf %220, %221 : vector<8x128xf32>
    %223 = arith.mulf %210, %222 : vector<8x128xf32>
    %224 = arith.addf %219, %223 : vector<8x128xf32>
    %225 = math.tanh %224 : vector<8x128xf32>
    %cst_63 = arith.constant 1.000000e+00 : f32
    %226 = vector.broadcast %cst_63 : f32 to vector<8x128xf32>
    %227 = arith.subf %226, %218 : vector<8x128xf32>
    %228 = arith.mulf %227, %225 : vector<8x128xf32>
    %229 = arith.mulf %218, %155 : vector<8x128xf32>
    %230 = arith.addf %228, %229 : vector<8x128xf32>
    %231 = arith.index_cast %c2_i32 : i32 to index
    %c0_64 = arith.constant 0 : index
    %c0_65 = arith.constant 0 : index
    %232 = vector.load %arg13[%231, %c0_64, %c0_65] : memref<8x8x128xf32, #tpu.memory_space<vmem>>, vector<1x8x128xf32>
    %233 = vector.shape_cast %232 : vector<1x8x128xf32> to vector<8x128xf32>
    %234 = vector.shape_cast %200 : vector<8x128xf32> to vector<1x8x128xf32>
    tpu.vector_store %arg13[%231, %c0_64, %c0_65], %234 {strides = array<i32>} : memref<8x8x128xf32, #tpu.memory_space<vmem>>, vector<1x8x128xf32>,
    %235 = arith.index_cast %164 : i32 to index
    %c0_66 = arith.constant 0 : index
    %c0_67 = arith.constant 0 : index
    %236 = vector.load %arg14[%235, %c0_66, %c0_67] : memref<8x8x128xf32, #tpu.memory_space<vmem>>, vector<1x8x128xf32>
    %237 = vector.shape_cast %236 : vector<1x8x128xf32> to vector<8x128xf32>
    %238 = vector.shape_cast %230 : vector<8x128xf32> to vector<1x8x128xf32>
    tpu.vector_store %arg14[%235, %c0_66, %c0_67], %238 {strides = array<i32>} : memref<8x8x128xf32, #tpu.memory_space<vmem>>, vector<1x8x128xf32>,
    %c3_i32 = arith.constant 3 : i32
    %c7_i32_68 = arith.constant 7 : i32
    %239 = arith.subi %c7_i32_68, %c3_i32 : i32
    %240 = arith.index_cast %c3_i32 : i32 to index
    %c0_69 = arith.constant 0 : index
    %c0_70 = arith.constant 0 : index
    %241 = vector.load %arg12[%240, %c0_69, %c0_70] : memref<8x8x768xf32, #tpu.memory_space<vmem>>, vector<1x8x768xf32>
    %242 = vector.shape_cast %241 : vector<1x8x768xf32> to vector<8x768xf32>
    %243 = arith.index_cast %239 : i32 to index
    %c0_71 = arith.constant 0 : index
    %c0_72 = arith.constant 0 : index
    %244 = vector.load %arg12[%243, %c0_71, %c0_72] : memref<8x8x768xf32, #tpu.memory_space<vmem>>, vector<1x8x768xf32>
    %245 = vector.shape_cast %244 : vector<1x8x768xf32> to vector<8x768xf32>
    %246 = vector.extract_strided_slice %242 {offsets = [0, 0], sizes = [8, 384], strides = [1, 1]} : vector<8x768xf32> to vector<8x384xf32>
    %cst_73 = arith.constant dense<0.000000e+00> : vector<8x384xf32>
    %247 = tpu.matmul %200, %9, %cst_73 {dimension_numbers = #tpu.dot_dimension_numbers<[1], [0], [0], [1], [0, 0, 1, 1], [], []>} : vector<8x128xf32>, vector<128x384xf32>, vector<8x384xf32> -> vector<8x384xf32>
    %248 = vector.extract_strided_slice %246 {offsets = [0, 0], sizes = [8, 128], strides = [1, 1]} : vector<8x384xf32> to vector<8x128xf32>
    %249 = vector.extract_strided_slice %247 {offsets = [0, 0], sizes = [8, 128], strides = [1, 1]} : vector<8x384xf32> to vector<8x128xf32>
    %250 = arith.addf %248, %249 : vector<8x128xf32>
    %251 = arith.negf %250 : vector<8x128xf32>
    %252 = math.exp %251 : vector<8x128xf32>
    %cst_74 = arith.constant 1.000000e+00 : f32
    %253 = vector.broadcast %cst_74 : f32 to vector<8x128xf32>
    %254 = arith.addf %253, %252 : vector<8x128xf32>
    %255 = arith.divf %253, %254 : vector<8x128xf32>
    %256 = vector.extract_strided_slice %246 {offsets = [0, 128], sizes = [8, 128], strides = [1, 1]} : vector<8x384xf32> to vector<8x128xf32>
    %257 = vector.extract_strided_slice %247 {offsets = [0, 128], sizes = [8, 128], strides = [1, 1]} : vector<8x384xf32> to vector<8x128xf32>
    %258 = arith.addf %256, %257 : vector<8x128xf32>
    %259 = arith.negf %258 : vector<8x128xf32>
    %260 = math.exp %259 : vector<8x128xf32>
    %cst_75 = arith.constant 1.000000e+00 : f32
    %261 = vector.broadcast %cst_75 : f32 to vector<8x128xf32>
    %262 = arith.addf %261, %260 : vector<8x128xf32>
    %263 = arith.divf %261, %262 : vector<8x128xf32>
    %264 = vector.extract_strided_slice %246 {offsets = [0, 256], sizes = [8, 128], strides = [1, 1]} : vector<8x384xf32> to vector<8x128xf32>
    %265 = vector.extract_strided_slice %247 {offsets = [0, 256], sizes = [8, 128], strides = [1, 1]} : vector<8x384xf32> to vector<8x128xf32>
    %266 = vector.broadcast %11 : vector<1x128xf32> to vector<8x128xf32>
    %267 = arith.addf %265, %266 : vector<8x128xf32>
    %268 = arith.mulf %255, %267 : vector<8x128xf32>
    %269 = arith.addf %264, %268 : vector<8x128xf32>
    %270 = math.tanh %269 : vector<8x128xf32>
    %cst_76 = arith.constant 1.000000e+00 : f32
    %271 = vector.broadcast %cst_76 : f32 to vector<8x128xf32>
    %272 = arith.subf %271, %263 : vector<8x128xf32>
    %273 = arith.mulf %272, %270 : vector<8x128xf32>
    %274 = arith.mulf %263, %200 : vector<8x128xf32>
    %275 = arith.addf %273, %274 : vector<8x128xf32>
    %276 = vector.extract_strided_slice %245 {offsets = [0, 384], sizes = [8, 384], strides = [1, 1]} : vector<8x768xf32> to vector<8x384xf32>
    %cst_77 = arith.constant dense<0.000000e+00> : vector<8x384xf32>
    %277 = tpu.matmul %230, %10, %cst_77 {dimension_numbers = #tpu.dot_dimension_numbers<[1], [0], [0], [1], [0, 0, 1, 1], [], []>} : vector<8x128xf32>, vector<128x384xf32>, vector<8x384xf32> -> vector<8x384xf32>
    %278 = vector.extract_strided_slice %276 {offsets = [0, 0], sizes = [8, 128], strides = [1, 1]} : vector<8x384xf32> to vector<8x128xf32>
    %279 = vector.extract_strided_slice %277 {offsets = [0, 0], sizes = [8, 128], strides = [1, 1]} : vector<8x384xf32> to vector<8x128xf32>
    %280 = arith.addf %278, %279 : vector<8x128xf32>
    %281 = arith.negf %280 : vector<8x128xf32>
    %282 = math.exp %281 : vector<8x128xf32>
    %cst_78 = arith.constant 1.000000e+00 : f32
    %283 = vector.broadcast %cst_78 : f32 to vector<8x128xf32>
    %284 = arith.addf %283, %282 : vector<8x128xf32>
    %285 = arith.divf %283, %284 : vector<8x128xf32>
    %286 = vector.extract_strided_slice %276 {offsets = [0, 128], sizes = [8, 128], strides = [1, 1]} : vector<8x384xf32> to vector<8x128xf32>
    %287 = vector.extract_strided_slice %277 {offsets = [0, 128], sizes = [8, 128], strides = [1, 1]} : vector<8x384xf32> to vector<8x128xf32>
    %288 = arith.addf %286, %287 : vector<8x128xf32>
    %289 = arith.negf %288 : vector<8x128xf32>
    %290 = math.exp %289 : vector<8x128xf32>
    %cst_79 = arith.constant 1.000000e+00 : f32
    %291 = vector.broadcast %cst_79 : f32 to vector<8x128xf32>
    %292 = arith.addf %291, %290 : vector<8x128xf32>
    %293 = arith.divf %291, %292 : vector<8x128xf32>
    %294 = vector.extract_strided_slice %276 {offsets = [0, 256], sizes = [8, 128], strides = [1, 1]} : vector<8x384xf32> to vector<8x128xf32>
    %295 = vector.extract_strided_slice %277 {offsets = [0, 256], sizes = [8, 128], strides = [1, 1]} : vector<8x384xf32> to vector<8x128xf32>
    %296 = vector.broadcast %12 : vector<1x128xf32> to vector<8x128xf32>
    %297 = arith.addf %295, %296 : vector<8x128xf32>
    %298 = arith.mulf %285, %297 : vector<8x128xf32>
    %299 = arith.addf %294, %298 : vector<8x128xf32>
    %300 = math.tanh %299 : vector<8x128xf32>
    %cst_80 = arith.constant 1.000000e+00 : f32
    %301 = vector.broadcast %cst_80 : f32 to vector<8x128xf32>
    %302 = arith.subf %301, %293 : vector<8x128xf32>
    %303 = arith.mulf %302, %300 : vector<8x128xf32>
    %304 = arith.mulf %293, %230 : vector<8x128xf32>
    %305 = arith.addf %303, %304 : vector<8x128xf32>
    %306 = arith.index_cast %c3_i32 : i32 to index
    %c0_81 = arith.constant 0 : index
    %c0_82 = arith.constant 0 : index
    %307 = vector.load %arg13[%306, %c0_81, %c0_82] : memref<8x8x128xf32, #tpu.memory_space<vmem>>, vector<1x8x128xf32>
    %308 = vector.shape_cast %307 : vector<1x8x128xf32> to vector<8x128xf32>
    %309 = vector.shape_cast %275 : vector<8x128xf32> to vector<1x8x128xf32>
    tpu.vector_store %arg13[%306, %c0_81, %c0_82], %309 {strides = array<i32>} : memref<8x8x128xf32, #tpu.memory_space<vmem>>, vector<1x8x128xf32>,
    %310 = arith.index_cast %239 : i32 to index
    %c0_83 = arith.constant 0 : index
    %c0_84 = arith.constant 0 : index
    %311 = vector.load %arg14[%310, %c0_83, %c0_84] : memref<8x8x128xf32, #tpu.memory_space<vmem>>, vector<1x8x128xf32>
    %312 = vector.shape_cast %311 : vector<1x8x128xf32> to vector<8x128xf32>
    %313 = vector.shape_cast %305 : vector<8x128xf32> to vector<1x8x128xf32>
    tpu.vector_store %arg14[%310, %c0_83, %c0_84], %313 {strides = array<i32>} : memref<8x8x128xf32, #tpu.memory_space<vmem>>, vector<1x8x128xf32>,
    %c4_i32 = arith.constant 4 : i32
    %c7_i32_85 = arith.constant 7 : i32
    %314 = arith.subi %c7_i32_85, %c4_i32 : i32
    %315 = arith.index_cast %c4_i32 : i32 to index
    %c0_86 = arith.constant 0 : index
    %c0_87 = arith.constant 0 : index
    %316 = vector.load %arg12[%315, %c0_86, %c0_87] : memref<8x8x768xf32, #tpu.memory_space<vmem>>, vector<1x8x768xf32>
    %317 = vector.shape_cast %316 : vector<1x8x768xf32> to vector<8x768xf32>
    %318 = arith.index_cast %314 : i32 to index
    %c0_88 = arith.constant 0 : index
    %c0_89 = arith.constant 0 : index
    %319 = vector.load %arg12[%318, %c0_88, %c0_89] : memref<8x8x768xf32, #tpu.memory_space<vmem>>, vector<1x8x768xf32>
    %320 = vector.shape_cast %319 : vector<1x8x768xf32> to vector<8x768xf32>
    %321 = vector.extract_strided_slice %317 {offsets = [0, 0], sizes = [8, 384], strides = [1, 1]} : vector<8x768xf32> to vector<8x384xf32>
    %cst_90 = arith.constant dense<0.000000e+00> : vector<8x384xf32>
    %322 = tpu.matmul %275, %9, %cst_90 {dimension_numbers = #tpu.dot_dimension_numbers<[1], [0], [0], [1], [0, 0, 1, 1], [], []>} : vector<8x128xf32>, vector<128x384xf32>, vector<8x384xf32> -> vector<8x384xf32>
    %323 = vector.extract_strided_slice %321 {offsets = [0, 0], sizes = [8, 128], strides = [1, 1]} : vector<8x384xf32> to vector<8x128xf32>
    %324 = vector.extract_strided_slice %322 {offsets = [0, 0], sizes = [8, 128], strides = [1, 1]} : vector<8x384xf32> to vector<8x128xf32>
    %325 = arith.addf %323, %324 : vector<8x128xf32>
    %326 = arith.negf %325 : vector<8x128xf32>
    %327 = math.exp %326 : vector<8x128xf32>
    %cst_91 = arith.constant 1.000000e+00 : f32
    %328 = vector.broadcast %cst_91 : f32 to vector<8x128xf32>
    %329 = arith.addf %328, %327 : vector<8x128xf32>
    %330 = arith.divf %328, %329 : vector<8x128xf32>
    %331 = vector.extract_strided_slice %321 {offsets = [0, 128], sizes = [8, 128], strides = [1, 1]} : vector<8x384xf32> to vector<8x128xf32>
    %332 = vector.extract_strided_slice %322 {offsets = [0, 128], sizes = [8, 128], strides = [1, 1]} : vector<8x384xf32> to vector<8x128xf32>
    %333 = arith.addf %331, %332 : vector<8x128xf32>
    %334 = arith.negf %333 : vector<8x128xf32>
    %335 = math.exp %334 : vector<8x128xf32>
    %cst_92 = arith.constant 1.000000e+00 : f32
    %336 = vector.broadcast %cst_92 : f32 to vector<8x128xf32>
    %337 = arith.addf %336, %335 : vector<8x128xf32>
    %338 = arith.divf %336, %337 : vector<8x128xf32>
    %339 = vector.extract_strided_slice %321 {offsets = [0, 256], sizes = [8, 128], strides = [1, 1]} : vector<8x384xf32> to vector<8x128xf32>
    %340 = vector.extract_strided_slice %322 {offsets = [0, 256], sizes = [8, 128], strides = [1, 1]} : vector<8x384xf32> to vector<8x128xf32>
    %341 = vector.broadcast %11 : vector<1x128xf32> to vector<8x128xf32>
    %342 = arith.addf %340, %341 : vector<8x128xf32>
    %343 = arith.mulf %330, %342 : vector<8x128xf32>
    %344 = arith.addf %339, %343 : vector<8x128xf32>
    %345 = math.tanh %344 : vector<8x128xf32>
    %cst_93 = arith.constant 1.000000e+00 : f32
    %346 = vector.broadcast %cst_93 : f32 to vector<8x128xf32>
    %347 = arith.subf %346, %338 : vector<8x128xf32>
    %348 = arith.mulf %347, %345 : vector<8x128xf32>
    %349 = arith.mulf %338, %275 : vector<8x128xf32>
    %350 = arith.addf %348, %349 : vector<8x128xf32>
    %351 = vector.extract_strided_slice %320 {offsets = [0, 384], sizes = [8, 384], strides = [1, 1]} : vector<8x768xf32> to vector<8x384xf32>
    %cst_94 = arith.constant dense<0.000000e+00> : vector<8x384xf32>
    %352 = tpu.matmul %305, %10, %cst_94 {dimension_numbers = #tpu.dot_dimension_numbers<[1], [0], [0], [1], [0, 0, 1, 1], [], []>} : vector<8x128xf32>, vector<128x384xf32>, vector<8x384xf32> -> vector<8x384xf32>
    %353 = vector.extract_strided_slice %351 {offsets = [0, 0], sizes = [8, 128], strides = [1, 1]} : vector<8x384xf32> to vector<8x128xf32>
    %354 = vector.extract_strided_slice %352 {offsets = [0, 0], sizes = [8, 128], strides = [1, 1]} : vector<8x384xf32> to vector<8x128xf32>
    %355 = arith.addf %353, %354 : vector<8x128xf32>
    %356 = arith.negf %355 : vector<8x128xf32>
    %357 = math.exp %356 : vector<8x128xf32>
    %cst_95 = arith.constant 1.000000e+00 : f32
    %358 = vector.broadcast %cst_95 : f32 to vector<8x128xf32>
    %359 = arith.addf %358, %357 : vector<8x128xf32>
    %360 = arith.divf %358, %359 : vector<8x128xf32>
    %361 = vector.extract_strided_slice %351 {offsets = [0, 128], sizes = [8, 128], strides = [1, 1]} : vector<8x384xf32> to vector<8x128xf32>
    %362 = vector.extract_strided_slice %352 {offsets = [0, 128], sizes = [8, 128], strides = [1, 1]} : vector<8x384xf32> to vector<8x128xf32>
    %363 = arith.addf %361, %362 : vector<8x128xf32>
    %364 = arith.negf %363 : vector<8x128xf32>
    %365 = math.exp %364 : vector<8x128xf32>
    %cst_96 = arith.constant 1.000000e+00 : f32
    %366 = vector.broadcast %cst_96 : f32 to vector<8x128xf32>
    %367 = arith.addf %366, %365 : vector<8x128xf32>
    %368 = arith.divf %366, %367 : vector<8x128xf32>
    %369 = vector.extract_strided_slice %351 {offsets = [0, 256], sizes = [8, 128], strides = [1, 1]} : vector<8x384xf32> to vector<8x128xf32>
    %370 = vector.extract_strided_slice %352 {offsets = [0, 256], sizes = [8, 128], strides = [1, 1]} : vector<8x384xf32> to vector<8x128xf32>
    %371 = vector.broadcast %12 : vector<1x128xf32> to vector<8x128xf32>
    %372 = arith.addf %370, %371 : vector<8x128xf32>
    %373 = arith.mulf %360, %372 : vector<8x128xf32>
    %374 = arith.addf %369, %373 : vector<8x128xf32>
    %375 = math.tanh %374 : vector<8x128xf32>
    %cst_97 = arith.constant 1.000000e+00 : f32
    %376 = vector.broadcast %cst_97 : f32 to vector<8x128xf32>
    %377 = arith.subf %376, %368 : vector<8x128xf32>
    %378 = arith.mulf %377, %375 : vector<8x128xf32>
    %379 = arith.mulf %368, %305 : vector<8x128xf32>
    %380 = arith.addf %378, %379 : vector<8x128xf32>
    %381 = arith.index_cast %c4_i32 : i32 to index
    %c0_98 = arith.constant 0 : index
    %c0_99 = arith.constant 0 : index
    %382 = vector.load %arg13[%381, %c0_98, %c0_99] : memref<8x8x128xf32, #tpu.memory_space<vmem>>, vector<1x8x128xf32>
    %383 = vector.shape_cast %382 : vector<1x8x128xf32> to vector<8x128xf32>
    %384 = vector.shape_cast %350 : vector<8x128xf32> to vector<1x8x128xf32>
    tpu.vector_store %arg13[%381, %c0_98, %c0_99], %384 {strides = array<i32>} : memref<8x8x128xf32, #tpu.memory_space<vmem>>, vector<1x8x128xf32>,
    %385 = arith.index_cast %314 : i32 to index
    %c0_100 = arith.constant 0 : index
    %c0_101 = arith.constant 0 : index
    %386 = vector.load %arg14[%385, %c0_100, %c0_101] : memref<8x8x128xf32, #tpu.memory_space<vmem>>, vector<1x8x128xf32>
    %387 = vector.shape_cast %386 : vector<1x8x128xf32> to vector<8x128xf32>
    %388 = vector.shape_cast %380 : vector<8x128xf32> to vector<1x8x128xf32>
    tpu.vector_store %arg14[%385, %c0_100, %c0_101], %388 {strides = array<i32>} : memref<8x8x128xf32, #tpu.memory_space<vmem>>, vector<1x8x128xf32>,
    %c5_i32 = arith.constant 5 : i32
    %c7_i32_102 = arith.constant 7 : i32
    %389 = arith.subi %c7_i32_102, %c5_i32 : i32
    %390 = arith.index_cast %c5_i32 : i32 to index
    %c0_103 = arith.constant 0 : index
    %c0_104 = arith.constant 0 : index
    %391 = vector.load %arg12[%390, %c0_103, %c0_104] : memref<8x8x768xf32, #tpu.memory_space<vmem>>, vector<1x8x768xf32>
    %392 = vector.shape_cast %391 : vector<1x8x768xf32> to vector<8x768xf32>
    %393 = arith.index_cast %389 : i32 to index
    %c0_105 = arith.constant 0 : index
    %c0_106 = arith.constant 0 : index
    %394 = vector.load %arg12[%393, %c0_105, %c0_106] : memref<8x8x768xf32, #tpu.memory_space<vmem>>, vector<1x8x768xf32>
    %395 = vector.shape_cast %394 : vector<1x8x768xf32> to vector<8x768xf32>
    %396 = vector.extract_strided_slice %392 {offsets = [0, 0], sizes = [8, 384], strides = [1, 1]} : vector<8x768xf32> to vector<8x384xf32>
    %cst_107 = arith.constant dense<0.000000e+00> : vector<8x384xf32>
    %397 = tpu.matmul %350, %9, %cst_107 {dimension_numbers = #tpu.dot_dimension_numbers<[1], [0], [0], [1], [0, 0, 1, 1], [], []>} : vector<8x128xf32>, vector<128x384xf32>, vector<8x384xf32> -> vector<8x384xf32>
    %398 = vector.extract_strided_slice %396 {offsets = [0, 0], sizes = [8, 128], strides = [1, 1]} : vector<8x384xf32> to vector<8x128xf32>
    %399 = vector.extract_strided_slice %397 {offsets = [0, 0], sizes = [8, 128], strides = [1, 1]} : vector<8x384xf32> to vector<8x128xf32>
    %400 = arith.addf %398, %399 : vector<8x128xf32>
    %401 = arith.negf %400 : vector<8x128xf32>
    %402 = math.exp %401 : vector<8x128xf32>
    %cst_108 = arith.constant 1.000000e+00 : f32
    %403 = vector.broadcast %cst_108 : f32 to vector<8x128xf32>
    %404 = arith.addf %403, %402 : vector<8x128xf32>
    %405 = arith.divf %403, %404 : vector<8x128xf32>
    %406 = vector.extract_strided_slice %396 {offsets = [0, 128], sizes = [8, 128], strides = [1, 1]} : vector<8x384xf32> to vector<8x128xf32>
    %407 = vector.extract_strided_slice %397 {offsets = [0, 128], sizes = [8, 128], strides = [1, 1]} : vector<8x384xf32> to vector<8x128xf32>
    %408 = arith.addf %406, %407 : vector<8x128xf32>
    %409 = arith.negf %408 : vector<8x128xf32>
    %410 = math.exp %409 : vector<8x128xf32>
    %cst_109 = arith.constant 1.000000e+00 : f32
    %411 = vector.broadcast %cst_109 : f32 to vector<8x128xf32>
    %412 = arith.addf %411, %410 : vector<8x128xf32>
    %413 = arith.divf %411, %412 : vector<8x128xf32>
    %414 = vector.extract_strided_slice %396 {offsets = [0, 256], sizes = [8, 128], strides = [1, 1]} : vector<8x384xf32> to vector<8x128xf32>
    %415 = vector.extract_strided_slice %397 {offsets = [0, 256], sizes = [8, 128], strides = [1, 1]} : vector<8x384xf32> to vector<8x128xf32>
    %416 = vector.broadcast %11 : vector<1x128xf32> to vector<8x128xf32>
    %417 = arith.addf %415, %416 : vector<8x128xf32>
    %418 = arith.mulf %405, %417 : vector<8x128xf32>
    %419 = arith.addf %414, %418 : vector<8x128xf32>
    %420 = math.tanh %419 : vector<8x128xf32>
    %cst_110 = arith.constant 1.000000e+00 : f32
    %421 = vector.broadcast %cst_110 : f32 to vector<8x128xf32>
    %422 = arith.subf %421, %413 : vector<8x128xf32>
    %423 = arith.mulf %422, %420 : vector<8x128xf32>
    %424 = arith.mulf %413, %350 : vector<8x128xf32>
    %425 = arith.addf %423, %424 : vector<8x128xf32>
    %426 = vector.extract_strided_slice %395 {offsets = [0, 384], sizes = [8, 384], strides = [1, 1]} : vector<8x768xf32> to vector<8x384xf32>
    %cst_111 = arith.constant dense<0.000000e+00> : vector<8x384xf32>
    %427 = tpu.matmul %380, %10, %cst_111 {dimension_numbers = #tpu.dot_dimension_numbers<[1], [0], [0], [1], [0, 0, 1, 1], [], []>} : vector<8x128xf32>, vector<128x384xf32>, vector<8x384xf32> -> vector<8x384xf32>
    %428 = vector.extract_strided_slice %426 {offsets = [0, 0], sizes = [8, 128], strides = [1, 1]} : vector<8x384xf32> to vector<8x128xf32>
    %429 = vector.extract_strided_slice %427 {offsets = [0, 0], sizes = [8, 128], strides = [1, 1]} : vector<8x384xf32> to vector<8x128xf32>
    %430 = arith.addf %428, %429 : vector<8x128xf32>
    %431 = arith.negf %430 : vector<8x128xf32>
    %432 = math.exp %431 : vector<8x128xf32>
    %cst_112 = arith.constant 1.000000e+00 : f32
    %433 = vector.broadcast %cst_112 : f32 to vector<8x128xf32>
    %434 = arith.addf %433, %432 : vector<8x128xf32>
    %435 = arith.divf %433, %434 : vector<8x128xf32>
    %436 = vector.extract_strided_slice %426 {offsets = [0, 128], sizes = [8, 128], strides = [1, 1]} : vector<8x384xf32> to vector<8x128xf32>
    %437 = vector.extract_strided_slice %427 {offsets = [0, 128], sizes = [8, 128], strides = [1, 1]} : vector<8x384xf32> to vector<8x128xf32>
    %438 = arith.addf %436, %437 : vector<8x128xf32>
    %439 = arith.negf %438 : vector<8x128xf32>
    %440 = math.exp %439 : vector<8x128xf32>
    %cst_113 = arith.constant 1.000000e+00 : f32
    %441 = vector.broadcast %cst_113 : f32 to vector<8x128xf32>
    %442 = arith.addf %441, %440 : vector<8x128xf32>
    %443 = arith.divf %441, %442 : vector<8x128xf32>
    %444 = vector.extract_strided_slice %426 {offsets = [0, 256], sizes = [8, 128], strides = [1, 1]} : vector<8x384xf32> to vector<8x128xf32>
    %445 = vector.extract_strided_slice %427 {offsets = [0, 256], sizes = [8, 128], strides = [1, 1]} : vector<8x384xf32> to vector<8x128xf32>
    %446 = vector.broadcast %12 : vector<1x128xf32> to vector<8x128xf32>
    %447 = arith.addf %445, %446 : vector<8x128xf32>
    %448 = arith.mulf %435, %447 : vector<8x128xf32>
    %449 = arith.addf %444, %448 : vector<8x128xf32>
    %450 = math.tanh %449 : vector<8x128xf32>
    %cst_114 = arith.constant 1.000000e+00 : f32
    %451 = vector.broadcast %cst_114 : f32 to vector<8x128xf32>
    %452 = arith.subf %451, %443 : vector<8x128xf32>
    %453 = arith.mulf %452, %450 : vector<8x128xf32>
    %454 = arith.mulf %443, %380 : vector<8x128xf32>
    %455 = arith.addf %453, %454 : vector<8x128xf32>
    %456 = arith.index_cast %c5_i32 : i32 to index
    %c0_115 = arith.constant 0 : index
    %c0_116 = arith.constant 0 : index
    %457 = vector.load %arg13[%456, %c0_115, %c0_116] : memref<8x8x128xf32, #tpu.memory_space<vmem>>, vector<1x8x128xf32>
    %458 = vector.shape_cast %457 : vector<1x8x128xf32> to vector<8x128xf32>
    %459 = vector.shape_cast %425 : vector<8x128xf32> to vector<1x8x128xf32>
    tpu.vector_store %arg13[%456, %c0_115, %c0_116], %459 {strides = array<i32>} : memref<8x8x128xf32, #tpu.memory_space<vmem>>, vector<1x8x128xf32>,
    %460 = arith.index_cast %389 : i32 to index
    %c0_117 = arith.constant 0 : index
    %c0_118 = arith.constant 0 : index
    %461 = vector.load %arg14[%460, %c0_117, %c0_118] : memref<8x8x128xf32, #tpu.memory_space<vmem>>, vector<1x8x128xf32>
    %462 = vector.shape_cast %461 : vector<1x8x128xf32> to vector<8x128xf32>
    %463 = vector.shape_cast %455 : vector<8x128xf32> to vector<1x8x128xf32>
    tpu.vector_store %arg14[%460, %c0_117, %c0_118], %463 {strides = array<i32>} : memref<8x8x128xf32, #tpu.memory_space<vmem>>, vector<1x8x128xf32>,
    %c6_i32 = arith.constant 6 : i32
    %c7_i32_119 = arith.constant 7 : i32
    %464 = arith.subi %c7_i32_119, %c6_i32 : i32
    %465 = arith.index_cast %c6_i32 : i32 to index
    %c0_120 = arith.constant 0 : index
    %c0_121 = arith.constant 0 : index
    %466 = vector.load %arg12[%465, %c0_120, %c0_121] : memref<8x8x768xf32, #tpu.memory_space<vmem>>, vector<1x8x768xf32>
    %467 = vector.shape_cast %466 : vector<1x8x768xf32> to vector<8x768xf32>
    %468 = arith.index_cast %464 : i32 to index
    %c0_122 = arith.constant 0 : index
    %c0_123 = arith.constant 0 : index
    %469 = vector.load %arg12[%468, %c0_122, %c0_123] : memref<8x8x768xf32, #tpu.memory_space<vmem>>, vector<1x8x768xf32>
    %470 = vector.shape_cast %469 : vector<1x8x768xf32> to vector<8x768xf32>
    %471 = vector.extract_strided_slice %467 {offsets = [0, 0], sizes = [8, 384], strides = [1, 1]} : vector<8x768xf32> to vector<8x384xf32>
    %cst_124 = arith.constant dense<0.000000e+00> : vector<8x384xf32>
    %472 = tpu.matmul %425, %9, %cst_124 {dimension_numbers = #tpu.dot_dimension_numbers<[1], [0], [0], [1], [0, 0, 1, 1], [], []>} : vector<8x128xf32>, vector<128x384xf32>, vector<8x384xf32> -> vector<8x384xf32>
    %473 = vector.extract_strided_slice %471 {offsets = [0, 0], sizes = [8, 128], strides = [1, 1]} : vector<8x384xf32> to vector<8x128xf32>
    %474 = vector.extract_strided_slice %472 {offsets = [0, 0], sizes = [8, 128], strides = [1, 1]} : vector<8x384xf32> to vector<8x128xf32>
    %475 = arith.addf %473, %474 : vector<8x128xf32>
    %476 = arith.negf %475 : vector<8x128xf32>
    %477 = math.exp %476 : vector<8x128xf32>
    %cst_125 = arith.constant 1.000000e+00 : f32
    %478 = vector.broadcast %cst_125 : f32 to vector<8x128xf32>
    %479 = arith.addf %478, %477 : vector<8x128xf32>
    %480 = arith.divf %478, %479 : vector<8x128xf32>
    %481 = vector.extract_strided_slice %471 {offsets = [0, 128], sizes = [8, 128], strides = [1, 1]} : vector<8x384xf32> to vector<8x128xf32>
    %482 = vector.extract_strided_slice %472 {offsets = [0, 128], sizes = [8, 128], strides = [1, 1]} : vector<8x384xf32> to vector<8x128xf32>
    %483 = arith.addf %481, %482 : vector<8x128xf32>
    %484 = arith.negf %483 : vector<8x128xf32>
    %485 = math.exp %484 : vector<8x128xf32>
    %cst_126 = arith.constant 1.000000e+00 : f32
    %486 = vector.broadcast %cst_126 : f32 to vector<8x128xf32>
    %487 = arith.addf %486, %485 : vector<8x128xf32>
    %488 = arith.divf %486, %487 : vector<8x128xf32>
    %489 = vector.extract_strided_slice %471 {offsets = [0, 256], sizes = [8, 128], strides = [1, 1]} : vector<8x384xf32> to vector<8x128xf32>
    %490 = vector.extract_strided_slice %472 {offsets = [0, 256], sizes = [8, 128], strides = [1, 1]} : vector<8x384xf32> to vector<8x128xf32>
    %491 = vector.broadcast %11 : vector<1x128xf32> to vector<8x128xf32>
    %492 = arith.addf %490, %491 : vector<8x128xf32>
    %493 = arith.mulf %480, %492 : vector<8x128xf32>
    %494 = arith.addf %489, %493 : vector<8x128xf32>
    %495 = math.tanh %494 : vector<8x128xf32>
    %cst_127 = arith.constant 1.000000e+00 : f32
    %496 = vector.broadcast %cst_127 : f32 to vector<8x128xf32>
    %497 = arith.subf %496, %488 : vector<8x128xf32>
    %498 = arith.mulf %497, %495 : vector<8x128xf32>
    %499 = arith.mulf %488, %425 : vector<8x128xf32>
    %500 = arith.addf %498, %499 : vector<8x128xf32>
    %501 = vector.extract_strided_slice %470 {offsets = [0, 384], sizes = [8, 384], strides = [1, 1]} : vector<8x768xf32> to vector<8x384xf32>
    %cst_128 = arith.constant dense<0.000000e+00> : vector<8x384xf32>
    %502 = tpu.matmul %455, %10, %cst_128 {dimension_numbers = #tpu.dot_dimension_numbers<[1], [0], [0], [1], [0, 0, 1, 1], [], []>} : vector<8x128xf32>, vector<128x384xf32>, vector<8x384xf32> -> vector<8x384xf32>
    %503 = vector.extract_strided_slice %501 {offsets = [0, 0], sizes = [8, 128], strides = [1, 1]} : vector<8x384xf32> to vector<8x128xf32>
    %504 = vector.extract_strided_slice %502 {offsets = [0, 0], sizes = [8, 128], strides = [1, 1]} : vector<8x384xf32> to vector<8x128xf32>
    %505 = arith.addf %503, %504 : vector<8x128xf32>
    %506 = arith.negf %505 : vector<8x128xf32>
    %507 = math.exp %506 : vector<8x128xf32>
    %cst_129 = arith.constant 1.000000e+00 : f32
    %508 = vector.broadcast %cst_129 : f32 to vector<8x128xf32>
    %509 = arith.addf %508, %507 : vector<8x128xf32>
    %510 = arith.divf %508, %509 : vector<8x128xf32>
    %511 = vector.extract_strided_slice %501 {offsets = [0, 128], sizes = [8, 128], strides = [1, 1]} : vector<8x384xf32> to vector<8x128xf32>
    %512 = vector.extract_strided_slice %502 {offsets = [0, 128], sizes = [8, 128], strides = [1, 1]} : vector<8x384xf32> to vector<8x128xf32>
    %513 = arith.addf %511, %512 : vector<8x128xf32>
    %514 = arith.negf %513 : vector<8x128xf32>
    %515 = math.exp %514 : vector<8x128xf32>
    %cst_130 = arith.constant 1.000000e+00 : f32
    %516 = vector.broadcast %cst_130 : f32 to vector<8x128xf32>
    %517 = arith.addf %516, %515 : vector<8x128xf32>
    %518 = arith.divf %516, %517 : vector<8x128xf32>
    %519 = vector.extract_strided_slice %501 {offsets = [0, 256], sizes = [8, 128], strides = [1, 1]} : vector<8x384xf32> to vector<8x128xf32>
    %520 = vector.extract_strided_slice %502 {offsets = [0, 256], sizes = [8, 128], strides = [1, 1]} : vector<8x384xf32> to vector<8x128xf32>
    %521 = vector.broadcast %12 : vector<1x128xf32> to vector<8x128xf32>
    %522 = arith.addf %520, %521 : vector<8x128xf32>
    %523 = arith.mulf %510, %522 : vector<8x128xf32>
    %524 = arith.addf %519, %523 : vector<8x128xf32>
    %525 = math.tanh %524 : vector<8x128xf32>
    %cst_131 = arith.constant 1.000000e+00 : f32
    %526 = vector.broadcast %cst_131 : f32 to vector<8x128xf32>
    %527 = arith.subf %526, %518 : vector<8x128xf32>
    %528 = arith.mulf %527, %525 : vector<8x128xf32>
    %529 = arith.mulf %518, %455 : vector<8x128xf32>
    %530 = arith.addf %528, %529 : vector<8x128xf32>
    %531 = arith.index_cast %c6_i32 : i32 to index
    %c0_132 = arith.constant 0 : index
    %c0_133 = arith.constant 0 : index
    %532 = vector.load %arg13[%531, %c0_132, %c0_133] : memref<8x8x128xf32, #tpu.memory_space<vmem>>, vector<1x8x128xf32>
    %533 = vector.shape_cast %532 : vector<1x8x128xf32> to vector<8x128xf32>
    %534 = vector.shape_cast %500 : vector<8x128xf32> to vector<1x8x128xf32>
    tpu.vector_store %arg13[%531, %c0_132, %c0_133], %534 {strides = array<i32>} : memref<8x8x128xf32, #tpu.memory_space<vmem>>, vector<1x8x128xf32>,
    %535 = arith.index_cast %464 : i32 to index
    %c0_134 = arith.constant 0 : index
    %c0_135 = arith.constant 0 : index
    %536 = vector.load %arg14[%535, %c0_134, %c0_135] : memref<8x8x128xf32, #tpu.memory_space<vmem>>, vector<1x8x128xf32>
    %537 = vector.shape_cast %536 : vector<1x8x128xf32> to vector<8x128xf32>
    %538 = vector.shape_cast %530 : vector<8x128xf32> to vector<1x8x128xf32>
    tpu.vector_store %arg14[%535, %c0_134, %c0_135], %538 {strides = array<i32>} : memref<8x8x128xf32, #tpu.memory_space<vmem>>, vector<1x8x128xf32>,
    %c7_i32_136 = arith.constant 7 : i32
    %c7_i32_137 = arith.constant 7 : i32
    %539 = arith.subi %c7_i32_137, %c7_i32_136 : i32
    %540 = arith.index_cast %c7_i32_136 : i32 to index
    %c0_138 = arith.constant 0 : index
    %c0_139 = arith.constant 0 : index
    %541 = vector.load %arg12[%540, %c0_138, %c0_139] : memref<8x8x768xf32, #tpu.memory_space<vmem>>, vector<1x8x768xf32>
    %542 = vector.shape_cast %541 : vector<1x8x768xf32> to vector<8x768xf32>
    %543 = arith.index_cast %539 : i32 to index
    %c0_140 = arith.constant 0 : index
    %c0_141 = arith.constant 0 : index
    %544 = vector.load %arg12[%543, %c0_140, %c0_141] : memref<8x8x768xf32, #tpu.memory_space<vmem>>, vector<1x8x768xf32>
    %545 = vector.shape_cast %544 : vector<1x8x768xf32> to vector<8x768xf32>
    %546 = vector.extract_strided_slice %542 {offsets = [0, 0], sizes = [8, 384], strides = [1, 1]} : vector<8x768xf32> to vector<8x384xf32>
    %cst_142 = arith.constant dense<0.000000e+00> : vector<8x384xf32>
    %547 = tpu.matmul %500, %9, %cst_142 {dimension_numbers = #tpu.dot_dimension_numbers<[1], [0], [0], [1], [0, 0, 1, 1], [], []>} : vector<8x128xf32>, vector<128x384xf32>, vector<8x384xf32> -> vector<8x384xf32>
    %548 = vector.extract_strided_slice %546 {offsets = [0, 0], sizes = [8, 128], strides = [1, 1]} : vector<8x384xf32> to vector<8x128xf32>
    %549 = vector.extract_strided_slice %547 {offsets = [0, 0], sizes = [8, 128], strides = [1, 1]} : vector<8x384xf32> to vector<8x128xf32>
    %550 = arith.addf %548, %549 : vector<8x128xf32>
    %551 = arith.negf %550 : vector<8x128xf32>
    %552 = math.exp %551 : vector<8x128xf32>
    %cst_143 = arith.constant 1.000000e+00 : f32
    %553 = vector.broadcast %cst_143 : f32 to vector<8x128xf32>
    %554 = arith.addf %553, %552 : vector<8x128xf32>
    %555 = arith.divf %553, %554 : vector<8x128xf32>
    %556 = vector.extract_strided_slice %546 {offsets = [0, 128], sizes = [8, 128], strides = [1, 1]} : vector<8x384xf32> to vector<8x128xf32>
    %557 = vector.extract_strided_slice %547 {offsets = [0, 128], sizes = [8, 128], strides = [1, 1]} : vector<8x384xf32> to vector<8x128xf32>
    %558 = arith.addf %556, %557 : vector<8x128xf32>
    %559 = arith.negf %558 : vector<8x128xf32>
    %560 = math.exp %559 : vector<8x128xf32>
    %cst_144 = arith.constant 1.000000e+00 : f32
    %561 = vector.broadcast %cst_144 : f32 to vector<8x128xf32>
    %562 = arith.addf %561, %560 : vector<8x128xf32>
    %563 = arith.divf %561, %562 : vector<8x128xf32>
    %564 = vector.extract_strided_slice %546 {offsets = [0, 256], sizes = [8, 128], strides = [1, 1]} : vector<8x384xf32> to vector<8x128xf32>
    %565 = vector.extract_strided_slice %547 {offsets = [0, 256], sizes = [8, 128], strides = [1, 1]} : vector<8x384xf32> to vector<8x128xf32>
    %566 = vector.broadcast %11 : vector<1x128xf32> to vector<8x128xf32>
    %567 = arith.addf %565, %566 : vector<8x128xf32>
    %568 = arith.mulf %555, %567 : vector<8x128xf32>
    %569 = arith.addf %564, %568 : vector<8x128xf32>
    %570 = math.tanh %569 : vector<8x128xf32>
    %cst_145 = arith.constant 1.000000e+00 : f32
    %571 = vector.broadcast %cst_145 : f32 to vector<8x128xf32>
    %572 = arith.subf %571, %563 : vector<8x128xf32>
    %573 = arith.mulf %572, %570 : vector<8x128xf32>
    %574 = arith.mulf %563, %500 : vector<8x128xf32>
    %575 = arith.addf %573, %574 : vector<8x128xf32>
    %576 = vector.extract_strided_slice %545 {offsets = [0, 384], sizes = [8, 384], strides = [1, 1]} : vector<8x768xf32> to vector<8x384xf32>
    %cst_146 = arith.constant dense<0.000000e+00> : vector<8x384xf32>
    %577 = tpu.matmul %530, %10, %cst_146 {dimension_numbers = #tpu.dot_dimension_numbers<[1], [0], [0], [1], [0, 0, 1, 1], [], []>} : vector<8x128xf32>, vector<128x384xf32>, vector<8x384xf32> -> vector<8x384xf32>
    %578 = vector.extract_strided_slice %576 {offsets = [0, 0], sizes = [8, 128], strides = [1, 1]} : vector<8x384xf32> to vector<8x128xf32>
    %579 = vector.extract_strided_slice %577 {offsets = [0, 0], sizes = [8, 128], strides = [1, 1]} : vector<8x384xf32> to vector<8x128xf32>
    %580 = arith.addf %578, %579 : vector<8x128xf32>
    %581 = arith.negf %580 : vector<8x128xf32>
    %582 = math.exp %581 : vector<8x128xf32>
    %cst_147 = arith.constant 1.000000e+00 : f32
    %583 = vector.broadcast %cst_147 : f32 to vector<8x128xf32>
    %584 = arith.addf %583, %582 : vector<8x128xf32>
    %585 = arith.divf %583, %584 : vector<8x128xf32>
    %586 = vector.extract_strided_slice %576 {offsets = [0, 128], sizes = [8, 128], strides = [1, 1]} : vector<8x384xf32> to vector<8x128xf32>
    %587 = vector.extract_strided_slice %577 {offsets = [0, 128], sizes = [8, 128], strides = [1, 1]} : vector<8x384xf32> to vector<8x128xf32>
    %588 = arith.addf %586, %587 : vector<8x128xf32>
    %589 = arith.negf %588 : vector<8x128xf32>
    %590 = math.exp %589 : vector<8x128xf32>
    %cst_148 = arith.constant 1.000000e+00 : f32
    %591 = vector.broadcast %cst_148 : f32 to vector<8x128xf32>
    %592 = arith.addf %591, %590 : vector<8x128xf32>
    %593 = arith.divf %591, %592 : vector<8x128xf32>
    %594 = vector.extract_strided_slice %576 {offsets = [0, 256], sizes = [8, 128], strides = [1, 1]} : vector<8x384xf32> to vector<8x128xf32>
    %595 = vector.extract_strided_slice %577 {offsets = [0, 256], sizes = [8, 128], strides = [1, 1]} : vector<8x384xf32> to vector<8x128xf32>
    %596 = vector.broadcast %12 : vector<1x128xf32> to vector<8x128xf32>
    %597 = arith.addf %595, %596 : vector<8x128xf32>
    %598 = arith.mulf %585, %597 : vector<8x128xf32>
    %599 = arith.addf %594, %598 : vector<8x128xf32>
    %600 = math.tanh %599 : vector<8x128xf32>
    %cst_149 = arith.constant 1.000000e+00 : f32
    %601 = vector.broadcast %cst_149 : f32 to vector<8x128xf32>
    %602 = arith.subf %601, %593 : vector<8x128xf32>
    %603 = arith.mulf %602, %600 : vector<8x128xf32>
    %604 = arith.mulf %593, %530 : vector<8x128xf32>
    %605 = arith.addf %603, %604 : vector<8x128xf32>
    %606 = arith.index_cast %c7_i32_136 : i32 to index
    %c0_150 = arith.constant 0 : index
    %c0_151 = arith.constant 0 : index
    %607 = vector.load %arg13[%606, %c0_150, %c0_151] : memref<8x8x128xf32, #tpu.memory_space<vmem>>, vector<1x8x128xf32>
    %608 = vector.shape_cast %607 : vector<1x8x128xf32> to vector<8x128xf32>
    %609 = vector.shape_cast %575 : vector<8x128xf32> to vector<1x8x128xf32>
    tpu.vector_store %arg13[%606, %c0_150, %c0_151], %609 {strides = array<i32>} : memref<8x8x128xf32, #tpu.memory_space<vmem>>, vector<1x8x128xf32>,
    %610 = arith.index_cast %539 : i32 to index
    %c0_152 = arith.constant 0 : index
    %c0_153 = arith.constant 0 : index
    %611 = vector.load %arg14[%610, %c0_152, %c0_153] : memref<8x8x128xf32, #tpu.memory_space<vmem>>, vector<1x8x128xf32>
    %612 = vector.shape_cast %611 : vector<1x8x128xf32> to vector<8x128xf32>
    %613 = vector.shape_cast %605 : vector<8x128xf32> to vector<1x8x128xf32>
    tpu.vector_store %arg14[%610, %c0_152, %c0_153], %613 {strides = array<i32>} : memref<8x8x128xf32, #tpu.memory_space<vmem>>, vector<1x8x128xf32>,
    %c8_i32 = arith.constant 8 : i32
    %c0_154 = arith.constant 0 : index
    %c0_155 = arith.constant 0 : index
    %c0_156 = arith.constant 0 : index
    %614 = vector.load %arg13[%c0_154, %c0_155, %c0_156] : memref<8x8x128xf32, #tpu.memory_space<vmem>>, vector<8x8x128xf32>
    %615 = vector.shape_cast %614 : vector<8x8x128xf32> to vector<64x128xf32>
    %c0_157 = arith.constant 0 : index
    %c0_158 = arith.constant 0 : index
    %c0_159 = arith.constant 0 : index
    %616 = vector.load %arg14[%c0_157, %c0_158, %c0_159] : memref<8x8x128xf32, #tpu.memory_space<vmem>>, vector<8x8x128xf32>
    %617 = vector.shape_cast %616 : vector<8x8x128xf32> to vector<64x128xf32>
    %c0_160 = arith.constant 0 : index
    %c0_161 = arith.constant 0 : index
    %618 = vector.load %arg8[%c0_160, %c0_161] : memref<128x128xf32, #tpu.memory_space<vmem>>, vector<128x128xf32>
    %cst_162 = arith.constant dense<0.000000e+00> : vector<64x128xf32>
    %619 = tpu.matmul %615, %618, %cst_162 {dimension_numbers = #tpu.dot_dimension_numbers<[1], [0], [0], [1], [0, 0, 1, 1], [], []>} : vector<64x128xf32>, vector<128x128xf32>, vector<64x128xf32> -> vector<64x128xf32>
    %c0_163 = arith.constant 0 : index
    %c0_164 = arith.constant 0 : index
    %620 = vector.load %arg9[%c0_163, %c0_164] : memref<128x128xf32, #tpu.memory_space<vmem>>, vector<128x128xf32>
    %cst_165 = arith.constant dense<0.000000e+00> : vector<64x128xf32>
    %621 = tpu.matmul %617, %620, %cst_165 {dimension_numbers = #tpu.dot_dimension_numbers<[1], [0], [0], [1], [0, 0, 1, 1], [], []>} : vector<64x128xf32>, vector<128x128xf32>, vector<64x128xf32> -> vector<64x128xf32>
    %622 = arith.addf %619, %621 : vector<64x128xf32>
    %c0_166 = arith.constant 0 : index
    %c0_167 = arith.constant 0 : index
    %623 = vector.load %arg10[%c0_166, %c0_167] : memref<1x128xf32, #tpu.memory_space<vmem>>, vector<1x128xf32>
    %624 = vector.broadcast %623 : vector<1x128xf32> to vector<64x128xf32>
    %625 = arith.addf %622, %624 : vector<64x128xf32>
    %626 = vector.shape_cast %625 : vector<64x128xf32> to vector<8x8x128xf32>
    %c0_168 = arith.constant 0 : index
    %c0_169 = arith.constant 0 : index
    %c0_170 = arith.constant 0 : index
    %627 = vector.load %arg11[%c0_168, %c0_169, %c0_170] : memref<8x8x128xf32, #tpu.memory_space<vmem>>, vector<8x8x128xf32>
    tpu.vector_store %arg11[%c0_168, %c0_169, %c0_170], %626 {strides = array<i32>} : memref<8x8x128xf32, #tpu.memory_space<vmem>>, vector<8x8x128xf32>,
    return
  }
  func.func @transform_0(%arg0: i32) -> (i32, i32, i32) {
    %c0_i32 = arith.constant 0 : i32
    %c0_i32_0 = arith.constant 0 : i32
    %c0_i32_1 = arith.constant 0 : i32
    return %c0_i32, %arg0, %c0_i32_0 : i32, i32, i32
  }
  func.func @transform_1(%arg0: i32) -> (i32, i32) {
    %c0_i32 = arith.constant 0 : i32
    %c0_i32_0 = arith.constant 0 : i32
    %c0_i32_1 = arith.constant 0 : i32
    return %c0_i32, %c0_i32_0 : i32, i32
  }
  func.func @transform_2(%arg0: i32) -> (i32, i32) {
    %c0_i32 = arith.constant 0 : i32
    %c0_i32_0 = arith.constant 0 : i32
    %c0_i32_1 = arith.constant 0 : i32
    return %c0_i32, %c0_i32_0 : i32, i32
  }
  func.func @transform_3(%arg0: i32) -> (i32, i32) {
    %c0_i32 = arith.constant 0 : i32
    %c0_i32_0 = arith.constant 0 : i32
    %c0_i32_1 = arith.constant 0 : i32
    return %c0_i32, %c0_i32_0 : i32, i32
  }
  func.func @transform_4(%arg0: i32) -> (i32, i32) {
    %c0_i32 = arith.constant 0 : i32
    %c0_i32_0 = arith.constant 0 : i32
    %c0_i32_1 = arith.constant 0 : i32
    return %c0_i32, %c0_i32_0 : i32, i32
  }
  func.func @transform_5(%arg0: i32) -> (i32, i32) {
    %c0_i32 = arith.constant 0 : i32
    %c0_i32_0 = arith.constant 0 : i32
    %c0_i32_1 = arith.constant 0 : i32
    return %c0_i32, %c0_i32_0 : i32, i32
  }
  func.func @transform_6(%arg0: i32) -> (i32, i32) {
    %c0_i32 = arith.constant 0 : i32
    %c0_i32_0 = arith.constant 0 : i32
    %c0_i32_1 = arith.constant 0 : i32
    return %c0_i32, %c0_i32_0 : i32, i32
  }
  func.func @transform_7(%arg0: i32) -> (i32, i32) {
    %c0_i32 = arith.constant 0 : i32
    %c0_i32_0 = arith.constant 0 : i32
    %c0_i32_1 = arith.constant 0 : i32
    return %c0_i32, %c0_i32_0 : i32, i32
  }
  func.func @transform_8(%arg0: i32) -> (i32, i32) {
    %c0_i32 = arith.constant 0 : i32
    %c0_i32_0 = arith.constant 0 : i32
    %c0_i32_1 = arith.constant 0 : i32
    return %c0_i32, %c0_i32_0 : i32, i32
  }
  func.func @transform_9(%arg0: i32) -> (i32, i32) {
    %c0_i32 = arith.constant 0 : i32
    %c0_i32_0 = arith.constant 0 : i32
    %c0_i32_1 = arith.constant 0 : i32
    return %c0_i32, %c0_i32_0 : i32, i32
  }
  func.func @transform_10(%arg0: i32) -> (i32, i32, i32) {
    %c0_i32 = arith.constant 0 : i32
    %c0_i32_0 = arith.constant 0 : i32
    %c0_i32_1 = arith.constant 0 : i32
    return %c0_i32, %arg0, %c0_i32_0 : i32, i32, i32
  }
}

</mosaic_0001>

<bundles_post_ra>
// kernel: bigru_forward.1
= control target key start
LH: loop header
LB: loop body
LE: loop exit
PB: predicated region body
PF: predicated region fallthrough
CT: control target
= control target key end

     0   :  { %vm69_vm0 = vcmask 130048   ;;  %s5919_s1 = inlined_call_operand.vmem [shape: f32[16,768], index: 1, kind: input, shape index: {}]   ;;  %s5920_s0 = inlined_call_operand.vmem [shape: f32[8,8,16], index: 0, kind: input, shape index: {}]   ;;  %s5921_s3 = inlined_call_operand.vmem [shape: f32[128,384], index: 3, kind: input, shape index: {}]   ;;  %s5922_s4 = inlined_call_operand.vmem [shape: f32[128,384], index: 4, kind: input, shape index: {}]   ;;  %s5923_s5 = inlined_call_operand.vmem [shape: f32[1,128], index: 5, kind: input, shape index: {}]   ;;  %s5924_s2 = inlined_call_operand.vmem [shape: f32[1,768], index: 2, kind: input, shape index: {}]   ;;  %s5925_s6 = inlined_call_operand.vmem [shape: f32[1,128], index: 6, kind: input, shape index: {}]   ;;  %s5926_s7 = inlined_call_operand.vmem [shape: f32[128,128], index: 7, kind: input, shape index: {}]   ;;  %s5927_s8 = inlined_call_operand.vmem [shape: f32[128,128], index: 8, kind: input, shape index: {}]   ;;  %s5928_s9 = inlined_call_operand.vmem [shape: f32[1,128], index: 9, kind: input, shape index: {}]   ;;  %s5929_s10 = inlined_call_operand.vmem [shape: f32[8,8,128], index: 10, kind: output, shape index: {}]  }
   0x1   :  { %v49_v0 = vld [vmem:[%s5919_s1 + $0x30] sm:$0xff]  ;;  %v50_v1 = vld [vmem:[%s5919_s1 + $0x38] sm:$0xff]  ;;  %v43_v2 = vld [vmem:[%s5919_s1] sm:$0xff] }
   0x2   :  { %2539 = vmatpush.msra.mxu2 %v49_v0  ;;  %2541 = vmatpush.msra.mxu3 %v50_v1  ;;  %v44_v3 = vld [vmem:[%s5919_s1 + $0x8] sm:$0xff]  ;;  %v2974_v4 = vld [vmem:[%s5920_s0 + $0x18] sm:$0xff]  ;;  %v51_v6 = vld [vmem:[%s5919_s1 + $0x40] sm:$0xff] }
   0x3   :  { %v52_v5 = vld [vmem:[%s5919_s1 + $0x48] sm:$0xff]  ;;  %108 = vmatpush.msra.mxu0 %v49_v0  ;;  %149 = vmatpush.msra.mxu1 %v50_v1  ;;  %v2989_v7 = vld [vmem:[%s5920_s0] sm:$0xff]  ;;  %v46_v8 = vld [vmem:[%s5919_s1 + $0x18] sm:$0xff] }
   0x4   :  { %2540 = vmatpush.msra.mxu2 %v43_v2  ;;  %2542 = vmatpush.msra.mxu3 %v44_v3  ;;  %v45_v9 = vld [vmem:[%s5919_s1 + $0x10] sm:$0xff]  ;;  %v3005_v11 = vld [vmem:[%s5920_s0 + $0x20] sm:$0xff]  ;;  %v3012_v12 = vld [vmem:[%s5920_s0 + $0x8] sm:$0xff] }
   0x5   :  { %2462 = vmatmul.msk.f32.vlgmr.msra.gmra.mxu2 %vm69_vm0, %v2974_v4  ;;  %2470 = vmatmul.msk.f32.vlgmr.msra.gmra.mxu3 %vm69_vm0, %v2974_v4  ;;  %v53_v10 = vld [vmem:[%s5919_s1 + $0x50] sm:$0xff]  ;;  %v47_v14 = vld [vmem:[%s5919_s1 + $0x20] sm:$0xff]  ;;  %v3029_v15 = vld [vmem:[%s5921_s3 + $0x168] sm:$0xff] }
   0x6   :  { %231 = vmatpush.msrb.mxu3 %v52_v5  ;;  %190 = vmatpush.msrb.mxu2 %v51_v6  ;;  %v3021_v13 = vld [vmem:[%s5921_s3 + $0x170] sm:$0xff]  ;;  %v3035_v16 = vld [vmem:[%s5921_s3 + $0x158] sm:$0xff]  ;;  %v3050_v18 = vld [vmem:[%s5920_s0 + $0x28] sm:$0xff] }
   0x7   :  { %109 = vmatpush.msra.mxu0 %v43_v2  ;;  %150 = vmatpush.msra.mxu1 %v44_v3  ;;  %v3040_v17 = vld [vmem:[%s5921_s3 + $0x150] sm:$0xff]  ;;  %v3066_v20 = vld [vmem:[%s5921_s3 + $0x140] sm:$0xff]  ;;  %v3071_v21 = vld [vmem:[%s5921_s3 + $0x138] sm:$0xff] }
   0x8   :  { %2459 = vmatmul.msk.f32.vlgmr.msra.gmra.mxu0 %vm69_vm0, %v2989_v7  ;;  %232 = vmatpush.msrb.mxu3 %v46_v8  ;;  %v3057_v19 = vld [vmem:[%s5920_s0 + $0x10] sm:$0xff]  ;;  %v3076_v22 = vld [vmem:[%s5921_s3 + $0x128] sm:$0xff]  ;;  %v3083_v23 = vld [vmem:[%s5921_s3 + $0x120] sm:$0xff] }
   0x9   :  { %191 = vmatpush.msrb.mxu2 %v45_v9  ;;  %272 = vmatpush.msrb.mxu0 %v53_v10  ;;  %v3092_v24 = vld [vmem:[%s5920_s0 + $0x30] sm:$0xff]  ;;  %v54_v26 = vld [vmem:[%s5919_s1 + $0x58] sm:$0xff]  ;;  %v3111_v27 = vld [vmem:[%s5921_s3 + $0x108] sm:$0xff] }
   0xa   :  { %2467 = vmatmul.msk.f32.vlgmr.msra.gmra.mxu1 %vm69_vm0, %v2989_v7  ;;  %513 = vmatpush.msra.mxu3 %v3021_v13  ;;  %v3103_v25 = vld [vmem:[%s5921_s3 + $0x110] sm:$0xff]  ;;  %v3117_v28 = vld [vmem:[%s5921_s3 + $0xf8] sm:$0xff]  ;;  %v3128_v30 = vld [vmem:[%s5921_s3 + $0xe0] sm:$0xff] }
   0xb   :  { %273 = vmatpush.msrb.mxu0 %v47_v14  ;;  %493 = vmatpush.msra.mxu2 %v3029_v15  ;;  %v3122_v29 = vld [vmem:[%s5921_s3 + $0xf0] sm:$0xff]  ;;  %v3143_v32 = vld [vmem:[%s5920_s0 + $0x38] sm:$0xff]  ;;  %v3149_v33 = vld [vmem:[%s5921_s3 + $0xc8] sm:$0xff] }
   0xc   :  { %514 = vmatpush.msra.mxu3 %v3035_v16  ;;  %313 = vmatpush.msrb.mxu1 %v54_v26  ;;  %v3133_v31 = vld [vmem:[%s5922_s4 + $0x170] sm:$0xff]  ;;  %v3163_v35 = vld [vmem:[%s5921_s3 + $0xd8] sm:$0xff]  ;;  %v48_v37 = vld [vmem:[%s5919_s1 + $0x28] sm:$0xff] }
   0xd   :  { %2463 = vmatmul.msk.f32.gmra.mxu2 %vm69_vm0, %v3005_v11  ;;  %2471 = vmatmul.msk.f32.gmra.mxu3 %vm69_vm0, %v3005_v11  ;;  %v3158_v34 = vld [vmem:[%s5921_s3 + $0xb0] sm:$0xff]  ;;  %v3168_v36 = vld [vmem:[%s5922_s4 + $0x158] sm:$0xff]  ;;  %v3184_v39 = vld [vmem:[%s5921_s3 + $0xc0] sm:$0xff] }
   0xe   :  { %494 = vmatpush.msra.mxu2 %v3040_v17  ;;  %515 = vmatpush.msra.mxu3 %v3066_v20  ;;  %v3179_v38 = vld [vmem:[%s5921_s3 + $0x98] sm:$0xff]  ;;  %v3189_v40 = vld [vmem:[%s5922_s4 + $0x140] sm:$0xff]  ;;  %v3208_v42 = vld [vmem:[%s5921_s3 + $0x68] sm:$0xff] }
   0xf   :  { %624 = vmatpush.msra.mxu0 %v3133_v31  ;;  %314 = vmatpush.msrb.mxu1 %v48_v37  ;;  %6152 = vst [vmem:[#allocation5_spill] sm:$0xff] %v3189_v40  ;;  %v3197_v41 = vld [vmem:[%s5921_s3 + $0x80] sm:$0xff]  ;;  %v3217_v43 = vld [vmem:[%s5921_s3 + $0x50] sm:$0xff]  ;;  %v3222_v44 = vld [vmem:[%s5921_s3 + $0xa8] sm:$0xff] }
  0x10   :  { %2460 = vmatmul.msk.f32.gmra.mxu0 %vm69_vm0, %v3012_v12  ;;  %495 = vmatpush.msra.mxu2 %v3071_v21  ;;  %v3227_v45 = vld [vmem:[%s5922_s4 + $0x128] sm:$0xff]  ;;  %v3234_v46 = vld [vmem:[%s5921_s3 + $0x90] sm:$0xff]  ;;  %v3240_v47 = vld [vmem:[%s5921_s3 + $0x38] sm:$0xff] }
  0x11   :  { %516 = vmatpush.msra.mxu3 %v3076_v22  ;;  %625 = vmatpush.msra.mxu0 %v3168_v36  ;;  %6153 = vst [vmem:[#allocation6_spill] sm:$0xff] %v3227_v45  ;;  %v3245_v48 = vld [vmem:[%s5922_s4 + $0x110] sm:$0xff]  ;;  %v3253_v49 = vld [vmem:[%s5921_s3 + $0x20] sm:$0xff]  ;;  %v3264_v50 = vld [vmem:[%s5921_s3 + $0x8] sm:$0xff] }
  0x12   :  { %2468 = vmatmul.msk.f32.gmra.mxu1 %vm69_vm0, %v3012_v12  ;;  %496 = vmatpush.msra.mxu2 %v3083_v23  ;;  %6154 = vst [vmem:[#allocation7_spill] sm:$0xff] %v3245_v48  ;;  %v3273_v51 = vld [vmem:[%s5922_s4 + $0x168] sm:$0xff]  ;;  %v3278_v52 = vld [vmem:[%s5922_s4 + $0x178] sm:$0xff]  ;;  %v3290_v54 = vld [vmem:[%s5922_s4 + $0x150] sm:$0xff] }
  0x13   :  { %517 = vmatpush.msra.mxu3 %v3103_v25  ;;  %626 = vmatpush.msra.mxu0 %v3189_v40  ;;  %v3283_v53 = vld [vmem:[%s5921_s3 + $0x78] sm:$0xff]  ;;  %v3302_v56 = vld [vmem:[%s5922_s4 + $0x160] sm:$0xff]  ;;  %v3341_v61 = vld [vmem:[%s5922_s4 + $0x108] sm:$0xff] }
  0x14   :  { %497 = vmatpush.msra.mxu2 %v3111_v27  ;;  %644 = vmatpush.msra.mxu1 %v3278_v52  ;;  %v3295_v55 = vld [vmem:[%s5922_s4 + $0xf8] sm:$0xff]  ;;  %6156 = vst [vmem:[#allocation9_spill] sm:$0xff] %v3302_v56  ;;  %v3307_v57 = vld [vmem:[%s5921_s3 + $0x60] sm:$0xff]  ;;  %v3346_v62 = vld [vmem:[%s5922_s4 + $0x148] sm:$0xff] }
  0x15   :  { %2464 = vmatmul.msk.f32.gmra.mxu2 %vm69_vm0, %v3050_v18  ;;  %2472 = vmatmul.msk.f32.gmra.mxu3 %vm69_vm0, %v3050_v18  ;;  %6155 = vst [vmem:[#allocation8_spill] sm:$0xff] %v3295_v55  ;;  %v3314_v58 = vld [vmem:[%s5922_s4 + $0x138] sm:$0xff]  ;;  %v3320_v59 = vld [vmem:[%s5922_s4 + $0xe0] sm:$0xff]  ;;  %v3351_v63 = vld [vmem:[%s5921_s3 + $0x48] sm:$0xff] }
  0x16   :  { %518 = vmatpush.msra.mxu3 %v3117_v28  ;;  %498 = vmatpush.msra.mxu2 %v3122_v29  ;;  %6157 = vst [vmem:[#allocation10_spill] sm:$0xff] %v3320_v59  ;;  %v3331_v60 = vld [vmem:[%s5922_s4 + $0x120] sm:$0xff]  ;;  %v3358_v0 = vld [vmem:[%s5922_s4 + $0xf0] sm:$0xff]  ;;  %v3363_v1 = vld [vmem:[%s5922_s4 + $0xc8] sm:$0xff] }
  0x17   :  { %627 = vmatpush.msra.mxu0 %v3227_v45  ;;  %645 = vmatpush.msra.mxu1 %v3302_v56  ;;  %6158 = vst [vmem:[#allocation11_spill] sm:$0xff] %v3346_v62  ;;  %v3370_v2 = vld [vmem:[%s5922_s4 + $0xb0] sm:$0xff]  ;;  %v3388_v6 = vld [vmem:[%s5922_s4 + $0x98] sm:$0xff]  ;;  %v3402_v8 = vld [vmem:[%s5922_s4 + $0xc0] sm:$0xff] }
  0x18   :  { %2461 = vmatmul.msk.f32.gmra.mxu0 %vm69_vm0, %v3057_v19  ;;  %519 = vmatpush.msra.mxu3 %v3128_v30  ;;  %6159 = vst [vmem:[#allocation12_spill] sm:$0xff] %v3363_v1  ;;  %v3375_v3 = vld [vmem:[%s5922_s4 + $0x130] sm:$0xff]  ;;  %v3415_v9 = vld [vmem:[%s5922_s4 + $0xa8] sm:$0xff]  ;;  %v3420_v10 = vld [vmem:[%s5922_s4 + $0x80] sm:$0xff] }
  0x19   :  { %499 = vmatpush.msra.mxu2 %v3163_v35  ;;  %628 = vmatpush.msra.mxu0 %v3245_v48  ;;  %6160 = vst [vmem:[#allocation13_spill] sm:$0xff] %v3370_v2  ;;  %v3380_v5 = vld [vmem:[%s5921_s3 + $0x30] sm:$0xff]  ;;  %v3437_v14 = vld [vmem:[%s5922_s4 + $0x68] sm:$0xff]  ;;  %v3449_v26 = vld [vmem:[%s5921_s3] sm:$0xff] }
  0x1a   :  { %2469 = vmatmul.msk.f32.gmra.mxu1 %vm69_vm0, %v3057_v19  ;;  %520 = vmatpush.msra.mxu3 %v3149_v33  ;;  %6161 = vst [vmem:[#allocation14_spill] sm:$0xff] %v3375_v3  ;;  %v3454_v37 = vld [vmem:[%s5921_s3 + $0x178] sm:$0xff]  ;;  %v3526_v48 = vld [vmem:[%s5921_s3 + $0x130] sm:$0xff]  ;;  %v3567_v40 = vld [vmem:[%s5921_s3 + $0x100] sm:$0xff] }
  0x1b   :  { %500 = vmatpush.msra.mxu2 %v3184_v39  ;;  %629 = vmatpush.msra.mxu0 %v3295_v55  ;;  %6162 = vst [vmem:[#allocation15_spill] sm:$0xff] %v3388_v6  ;;  %v3516_v55 = vld [vmem:[%s5922_s4 + $0x20] sm:$0xff]  ;;  %v3546_v45 = vld [vmem:[%s5921_s3 + $0x118] sm:$0xff]  ;;  %v3630_v56 = vld [vmem:[%s5922_s4 + $0x70] sm:$0xff] }
  0x1c   :  { %521 = vmatpush.msra.mxu3 %v3158_v34  ;;  %646 = vmatpush.msra.mxu1 %v3346_v62  ;;  %6163 = vst [vmem:[#allocation16_spill] sm:$0xff] %v3420_v10  ;;  %v3558_v62 = vld [vmem:[%s5922_s4 + $0x18] sm:$0xff] }
  0x1d   :  { %2465 = vmatmul.msk.f32.gmra.mxu2 %vm69_vm0, %v3092_v24  ;;  %2473 = vmatmul.msk.f32.gmra.mxu3 %vm69_vm0, %v3092_v24  ;;  %6165 = vst [vmem:[#allocation18_spill] sm:$0xff] %v3437_v14 }
  0x1e   :  { %522 = vmatpush.msra.mxu3 %v3179_v38  ;;  %501 = vmatpush.msra.mxu2 %v3222_v44  ;;  %6166 = vst [vmem:[#allocation19_spill] sm:$0xff] %v3454_v37 }
  0x1f   :  { %630 = vmatpush.msra.mxu0 %v3320_v59  ;;  %647 = vmatpush.msra.mxu1 %v3375_v3  ;;  %v3493_v59 = vld [vmem:[%s5922_s4 + $0x38] sm:$0xff]  ;;  %6173 = vst [vmem:[#allocation26_spill] sm:$0xff] %v3516_v55  ;;  %v3541_v3 = vld [vmem:[%s5922_s4 + $0x8] sm:$0xff] }
  0x20   :  { %2491 = vmatmul.msk.f32.vlgmr.msrb.gmra.mxu0 %vm69_vm0, %v2989_v7  ;;  %523 = vmatpush.msra.mxu3 %v3197_v41  ;;  %6170 = vst [vmem:[#allocation23_spill] sm:$0xff] %v3493_v59 }
  0x21   :  { %502 = vmatpush.msra.mxu2 %v3234_v46  ;;  %631 = vmatpush.msra.mxu0 %v3363_v1  ;;  %v3479_v1 = vld [vmem:[%s5921_s3 + $0x160] sm:$0xff]  ;;  %6176 = vst [vmem:[#allocation29_spill] sm:$0xff] %v3541_v3 }
  0x22   :  { %2499 = vmatmul.msk.f32.vlgmr.msrb.gmra.mxu1 %vm69_vm0, %v2989_v7  ;;  %524 = vmatpush.msra.mxu3 %v3208_v42  ;;  %6169 = vst [vmem:[#allocation22_spill] sm:$0xff] %v3479_v1 }
  0x23   :  { %503 = vmatpush.msra.mxu2 %v3283_v53  ;;  %632 = vmatpush.msra.mxu0 %v3370_v2  ;;  %v3474_v2 = vld [vmem:[%s5922_s4 + $0x78] sm:$0xff]  ;;  %6177 = vst [vmem:[#allocation30_spill] sm:$0xff] %v3546_v45 }
  0x24   :  { %525 = vmatpush.msra.mxu3 %v3217_v43  ;;  %6179 = vst [vmem:[#allocation32_spill] sm:$0xff] %v3558_v62 }
  0x25   :  { %2466 = vmatmul.msk.f32.gmra.mxu2 %vm69_vm0, %v3143_v32  ;;  %2474 = vmatmul.msk.f32.gmra.mxu3 %vm69_vm0, %v3143_v32  ;;  %6180 = vst [vmem:[#allocation33_spill] sm:$0xff] %v3567_v40 }
  0x26   :  { %526 = vmatpush.msra.mxu3 %v3240_v47  ;;  %504 = vmatpush.msra.mxu2 %v3307_v57  ;;  %6187 = vst [vmem:[#allocation40_spill] sm:$0xff] %v3630_v56 }
  0x27   :  { %633 = vmatpush.msra.mxu0 %v3388_v6  ;;  %v3467_v6 = vld [vmem:[%s5922_s4 + $0x100] sm:$0xff] }
  0x28   :  { %2492 = vmatmul.msk.f32.gmra.mxu0 %vm69_vm0, %v3012_v12  ;;  %527 = vmatpush.msra.mxu3 %v3253_v49  ;;  %6168 = vst [vmem:[#allocation21_spill] sm:$0xff] %v3467_v6 }
  0x29   :  { %505 = vmatpush.msra.mxu2 %v3351_v63  ;;  %634 = vmatpush.msra.mxu0 %v3420_v10  ;;  %v3462_v10 = vld [vmem:[%s5922_s4 + $0x50] sm:$0xff] }
  0x2a   :  { %2500 = vmatmul.msk.f32.gmra.mxu1 %vm69_vm0, %v3012_v12  ;;  %528 = vmatpush.msra.mxu3 %v3264_v50  ;;  %6167 = vst [vmem:[#allocation20_spill] sm:$0xff] %v3462_v10 }
  0x2b   :  { %506 = vmatpush.msra.mxu2 %v3380_v5  ;;  %635 = vmatpush.msra.mxu0 %v3437_v14  ;;  %v3488_v14 = vld [vmem:[%s5922_s4 + $0x60] sm:$0xff] }
  0x2d   :  { %2475 = vmatmul.msk.f32.vlgmr.msrb.gmra.mxu2 %vm69_vm0, %v2989_v7  ;;  %2483 = vmatmul.msk.f32.vlgmr.msrb.gmra.mxu3 %vm69_vm0, %v2989_v7  ;;  %v3393_v7 = vld [vmem:[%s5922_s4 + $0xd8] sm:$0xff] }
  0x2e   :  { %604 = vmatpush.msrb.mxu3 %v3273_v51  ;;  %636 = vmatpush.msra.mxu0 %v3462_v10  ;;  %v3504_v10 = vld [vmem:[%s5921_s3 + $0x148] sm:$0xff] }
  0x2f   :  { %6171 = vst [vmem:[#allocation24_spill] sm:$0xff] %v3504_v10 }
  0x30   :  { %2493 = vmatmul.msk.f32.gmra.mxu0 %vm69_vm0, %v3057_v19  ;;  %605 = vmatpush.msrb.mxu3 %v3290_v54 }
  0x31   :  { %637 = vmatpush.msra.mxu0 %v3493_v59  ;;  %v3533_v59 = vld [vmem:[%s5922_s4 + $0x30] sm:$0xff] }
  0x32   :  { %2501 = vmatmul.msk.f32.gmra.mxu1 %vm69_vm0, %v3057_v19  ;;  %606 = vmatpush.msrb.mxu3 %v3314_v58  ;;  %6175 = vst [vmem:[#allocation28_spill] sm:$0xff] %v3533_v59 }
  0x33   :  { %638 = vmatpush.msra.mxu0 %v3516_v55  ;;  %v3572_v55 = vld [vmem:[%s5922_s4] sm:$0xff] }
  0x34   :  { %607 = vmatpush.msrb.mxu3 %v3331_v60  ;;  %6181 = vst [vmem:[#allocation34_spill] sm:$0xff] %v3572_v55 }
  0x35   :  { %2476 = vmatmul.msk.f32.gmra.mxu2 %vm69_vm0, %v3012_v12  ;;  %2484 = vmatmul.msk.f32.gmra.mxu3 %vm69_vm0, %v3012_v12  ;;  %v3425_v12 = vld [vmem:[%s5921_s3 + $0x18] sm:$0xff] }
  0x36   :  { %608 = vmatpush.msrb.mxu3 %v3341_v61  ;;  %507 = vmatpush.msra.mxu2 %v3425_v12 }
  0x37   :  { %639 = vmatpush.msra.mxu0 %v3541_v3  ;;  %v3584_v3 = vld [vmem:[%s5921_s3 + $0xe8] sm:$0xff] }
  0x38   :  { %2494 = vmatmul.msk.f32.gmra.mxu0 %vm69_vm0, %v2974_v4  ;;  %609 = vmatpush.msrb.mxu3 %v3358_v0  ;;  %6182 = vst [vmem:[#allocation35_spill] sm:$0xff] %v3584_v3 }
  0x39   :  { %508 = vmatpush.msra.mxu2 %v3449_v26  ;;  %766 = vmatpush.msrb.mxu0 %v3454_v37 }
  0x3a   :  { %2502 = vmatmul.msk.f32.gmra.mxu1 %vm69_vm0, %v2974_v4  ;;  %610 = vmatpush.msrb.mxu3 %v3393_v7 }
  0x3b   :  { %533 = vmatpush.msrb.mxu2 %v3454_v37  ;;  %767 = vmatpush.msrb.mxu0 %v3479_v1  ;;  %v3624_v37 = vld [vmem:[%s5921_s3 + $0xa0] sm:$0xff] }
  0x3c   :  { %611 = vmatpush.msrb.mxu3 %v3402_v8 }
  0x3d   :  { %2477 = vmatmul.msk.f32.gmra.mxu2 %vm69_vm0, %v3057_v19  ;;  %2485 = vmatmul.msk.f32.gmra.mxu3 %vm69_vm0, %v3057_v19  ;;  %v3444_v19 = vld [vmem:[%s5922_s4 + $0x90] sm:$0xff] }
  0x3e   :  { %612 = vmatpush.msrb.mxu3 %v3415_v9  ;;  %534 = vmatpush.msrb.mxu2 %v3479_v1  ;;  %v3643_v1 = vld [vmem:[%s5921_s3 + $0x88] sm:$0xff] }
  0x3f   :  { %768 = vmatpush.msrb.mxu0 %v3504_v10 }
  0x40   :  { %2495 = vmatmul.msk.f32.gmra.mxu0 %vm69_vm0, %v3005_v11  ;;  %613 = vmatpush.msrb.mxu3 %v3444_v19 }
  0x41   :  { %535 = vmatpush.msrb.mxu2 %v3504_v10  ;;  %v3650_v10 = vld [vmem:[%s5922_s4 + $0x58] sm:$0xff]  ;;  %769 = vmatpush.msrb.mxu0 %v3526_v48 }
  0x42   :  { %614 = vmatpush.msrb.mxu3 %v3474_v2  ;;  %2503 = vmatmul.msk.f32.gmra.mxu1 %vm69_vm0, %v3005_v11  ;;  %6188 = vst [vmem:[#allocation41_spill] sm:$0xff] %v3650_v10 }
  0x43   :  { %536 = vmatpush.msrb.mxu2 %v3526_v48  ;;  %770 = vmatpush.msrb.mxu0 %v3546_v45 }
  0x44   :  { %615 = vmatpush.msrb.mxu3 %v3488_v14 }
  0x45   :  { %2478 = vmatmul.msk.f32.gmra.mxu2 %vm69_vm0, %v2974_v4  ;;  %2486 = vmatmul.msk.f32.gmra.mxu3 %vm69_vm0, %v2974_v4  ;;  %v3432_v4 = vld [vmem:[%s5922_s4 + $0x118] sm:$0xff] }
  0x46   :  { %6164 = vst [vmem:[#allocation17_spill] sm:$0xff] %v3432_v4  ;;  %648 = vmatpush.msra.mxu1 %v3432_v4  ;;  %v3521_v4 = vld [vmem:[%s5922_s4 + $0xe8] sm:$0xff]  ;;  %537 = vmatpush.msrb.mxu2 %v3546_v45 }
  0x47   :  { %6174 = vst [vmem:[#allocation27_spill] sm:$0xff] %v3521_v4  ;;  %771 = vmatpush.msrb.mxu0 %v3567_v40  ;;  %v3683_v45 = vld [vmem:[%s5921_s3 + $0x28] sm:$0xff] }
  0x48   :  { %2496 = vmatmul.msk.f32.gmra.mxu0 %vm69_vm0, %v3050_v18  ;;  %649 = vmatpush.msra.mxu1 %v3467_v6  ;;  %v3509_v6 = vld [vmem:[%s5922_s4 + $0x48] sm:$0xff]  ;;  %6189 = vst [vmem:[#allocation42_spill] sm:$0xff] %v3683_v45 }
  0x49   :  { %6172 = vst [vmem:[#allocation25_spill] sm:$0xff] %v3509_v6  ;;  %616 = vmatpush.msrb.mxu3 %v3509_v6  ;;  %538 = vmatpush.msrb.mxu2 %v3567_v40  ;;  %v3690_v40 = vld [vmem:[%s5921_s3 + $0x10] sm:$0xff] }
  0x4a   :  { %650 = vmatpush.msra.mxu1 %v3521_v4  ;;  %v3551_v4 = vld [vmem:[%s5922_s4 + $0xd0] sm:$0xff]  ;;  %772 = vmatpush.msrb.mxu0 %v3584_v3  ;;  %6190 = vst [vmem:[#allocation43_spill] sm:$0xff] %v3690_v40 }
  0x4b   :  { %6178 = vst [vmem:[#allocation31_spill] sm:$0xff] %v3551_v4  ;;  %617 = vmatpush.msrb.mxu3 %v3533_v59  ;;  %539 = vmatpush.msrb.mxu2 %v3584_v3  ;;  %v3704_v3 = vld [vmem:[%s5922_s4 + $0x28] sm:$0xff] }
  0x4c   :  { %651 = vmatpush.msra.mxu1 %v3551_v4  ;;  %v3589_v4 = vld [vmem:[%s5922_s4 + $0xb8] sm:$0xff]  ;;  %6192 = vst [vmem:[#allocation45_spill] sm:$0xff] %v3704_v3 }
  0x4d   :  { %2479 = vmatmul.msk.f32.gmra.mxu2 %vm69_vm0, %v3005_v11  ;;  %2487 = vmatmul.msk.f32.gmra.mxu3 %vm69_vm0, %v3005_v11  ;;  %6183 = vst [vmem:[#allocation36_spill] sm:$0xff] %v3589_v4  ;;  %v3596_v11 = vld [vmem:[%s5922_s4 + $0xa0] sm:$0xff] }
  0x4e   :  { %618 = vmatpush.msrb.mxu3 %v3558_v62  ;;  %6184 = vst [vmem:[#allocation37_spill] sm:$0xff] %v3596_v11  ;;  %652 = vmatpush.msra.mxu1 %v3589_v4  ;;  %v3602_v62 = vld [vmem:[%s5921_s3 + $0xd0] sm:$0xff]  ;;  %v3616_v4 = vld [vmem:[%s5921_s3 + $0xb8] sm:$0xff] }
  0x4f   :  { %6185 = vst [vmem:[#allocation38_spill] sm:$0xff] %v3602_v62  ;;  %540 = vmatpush.msrb.mxu2 %v3602_v62  ;;  %2504 = vmatmul.msk.f32.gmra.mxu1 %vm69_vm0, %v3050_v18 }
  0x50   :  { %2497 = vmatmul.msk.f32.gmra.mxu0 %vm69_vm0, %v3092_v24  ;;  %619 = vmatpush.msrb.mxu3 %v3572_v55  ;;  %v3611_v55 = vld [vmem:[%s5922_s4 + $0x88] sm:$0xff] }
  0x51   :  { %6186 = vst [vmem:[#allocation39_spill] sm:$0xff] %v3611_v55  ;;  %653 = vmatpush.msra.mxu1 %v3596_v11  ;;  %541 = vmatpush.msrb.mxu2 %v3616_v4  ;;  %v3670_v11 = vld [vmem:[%s5921_s3 + $0x40] sm:$0xff] }
  0x52   :  { %773 = vmatpush.msrb.mxu0 %v3602_v62  ;;  %v3717_v62 = vld [vmem:[%s5922_s4 + $0x10] sm:$0xff] }
  0x53   :  { %654 = vmatpush.msra.mxu1 %v3611_v55  ;;  %542 = vmatpush.msrb.mxu2 %v3624_v37  ;;  %v2903_v55 = vmov 0.0   ;;  %6193 = vst [vmem:[#allocation46_spill] sm:$0xff] %v3717_v62 }
  0x54   :  { %774 = vmatpush.msrb.mxu0 %v3616_v4 }
  0x55   :  { %2480 = vmatmul.msk.f32.gmra.mxu2 %vm69_vm0, %v3050_v18  ;;  %2488 = vmatmul.msk.f32.gmra.mxu3 %vm69_vm0, %v3050_v18  ;;  %v3655_v18 = vld [vmem:[%s5921_s3 + $0x70] sm:$0xff] }
  0x56   :  { %655 = vmatpush.msra.mxu1 %v3630_v56  ;;  %543 = vmatpush.msrb.mxu2 %v3643_v1  ;;  %v3662_v56 = vld [vmem:[%s5921_s3 + $0x58] sm:$0xff] }
  0x57   :  { %2505 = vmatmul.msk.f32.gmra.mxu1 %vm69_vm0, %v3092_v24  ;;  %775 = vmatpush.msrb.mxu0 %v3624_v37 }
  0x58   :  { %2498 = vmatmul.msk.f32.gmra.mxu0 %vm69_vm0, %v3143_v32  ;;  %656 = vmatpush.msra.mxu1 %v3650_v10 }
  0x59   :  { %544 = vmatpush.msrb.mxu2 %v3655_v18  ;;  %776 = vmatpush.msrb.mxu0 %v3643_v1 }
  0x5b   :  { %545 = vmatpush.msrb.mxu2 %v3662_v56  ;;  %777 = vmatpush.msrb.mxu0 %v3655_v18 }
  0x5d   :  { %2481 = vmatmul.msk.f32.gmra.mxu2 %vm69_vm0, %v3092_v24  ;;  %2489 = vmatmul.msk.f32.gmra.mxu3 %vm69_vm0, %v3092_v24  ;;  %v3697_v24 = vld [vmem:[%s5922_s4 + $0x40] sm:$0xff] }
  0x5e   :  { %546 = vmatpush.msrb.mxu2 %v3670_v11  ;;  %6191 = vst [vmem:[#allocation44_spill] sm:$0xff] %v3697_v24  ;;  %657 = vmatpush.msra.mxu1 %v3697_v24 }
  0x5f   :  { %2506 = vmatmul.msk.f32.gmra.mxu1 %vm69_vm0, %v3143_v32  ;;  %778 = vmatpush.msrb.mxu0 %v3662_v56 }
  0x60   :  { %640 = vmatmul.f32.vlgmr.msra.gmra.mxu0 %v2903_v55  ;;  %547 = vmatpush.msrb.mxu2 %v3683_v45 }
  0x61   :  { %658 = vmatpush.msra.mxu1 %v3704_v3  ;;  %779 = vmatpush.msrb.mxu0 %v3670_v11 }
  0x62   :  { %548 = vmatpush.msrb.mxu2 %v3690_v40 }
  0x63   :  { %659 = vmatpush.msra.mxu1 %v3717_v62  ;;  %780 = vmatpush.msrb.mxu0 %v3683_v45  ;;  %v6229_v45 = vld [vmem:[#allocation18_spill] sm:$0xff] }
  0x65   :  { %2482 = vmatmul.msk.f32.gmra.mxu2 %vm69_vm0, %v3143_v32  ;;  %2490 = vmatmul.msk.f32.gmra.mxu3 %vm69_vm0, %v3143_v32 }
  0x66   :  { %834 = vmatpush.msrb.mxu1 %v3273_v51  ;;  %781 = vmatpush.msrb.mxu0 %v3690_v40  ;;  %v6216_v40 = vld [vmem:[#allocation27_spill] sm:$0xff] }
  0x67   :  { %660 = vmatmul.f32.vlgmr.msra.gmra.mxu1 %v2903_v55 }
  0x68   :  { %835 = vmatpush.msrb.mxu1 %v3290_v54  ;;  %954 = vmatpush.msra.mxu0 %v3029_v15 }
  0x6a   :  { %836 = vmatpush.msrb.mxu1 %v3314_v58  ;;  %955 = vmatpush.msra.mxu0 %v3040_v17 }
  0x6c   :  { %837 = vmatpush.msrb.mxu1 %v3331_v60  ;;  %956 = vmatpush.msra.mxu0 %v3071_v21 }
  0x6d   :  { %509 = vmatmul.f32.vlgmr.msra.gmra.mxu2 %v2903_v55  ;;  %529 = vmatmul.f32.vlgmr.msra.gmra.mxu3 %v2903_v55 }
  0x6e   :  { %726 = vmatpush.msra.mxu2 %v3029_v15  ;;  %746 = vmatpush.msra.mxu3 %v3021_v13 }
  0x6f   :  { %838 = vmatpush.msrb.mxu1 %v3341_v61  ;;  %957 = vmatpush.msra.mxu0 %v3083_v23 }
  0x70   :  { %727 = vmatpush.msra.mxu2 %v3040_v17  ;;  %747 = vmatpush.msra.mxu3 %v3035_v16 }
  0x71   :  { %839 = vmatpush.msrb.mxu1 %v3358_v0  ;;  %958 = vmatpush.msra.mxu0 %v3111_v27 }
  0x72   :  { %728 = vmatpush.msra.mxu2 %v3071_v21  ;;  %748 = vmatpush.msra.mxu3 %v3066_v20 }
  0x73   :  { %840 = vmatpush.msrb.mxu1 %v3393_v7  ;;  %959 = vmatpush.msra.mxu0 %v3122_v29 }
  0x74   :  { %729 = vmatpush.msra.mxu2 %v3083_v23  ;;  %749 = vmatpush.msra.mxu3 %v3076_v22 }
  0x75   :  { %620 = vmatmul.f32.vlgmr.msrb.gmra.mxu3 %v2903_v55  ;;  %549 = vmatmul.f32.vlgmr.msrb.gmra.mxu2 %v2903_v55  ;;  %v6201_v55 = vld [vmem:[#allocation32_spill] sm:$0xff] }
  0x76   :  { %730 = vmatpush.msra.mxu2 %v3111_v27  ;;  %750 = vmatpush.msra.mxu3 %v3103_v25 }
  0x77   :  { %841 = vmatpush.msrb.mxu1 %v3402_v8  ;;  %960 = vmatpush.msra.mxu0 %v3163_v35 }
  0x78   :  { %731 = vmatpush.msra.mxu2 %v3122_v29  ;;  %751 = vmatpush.msra.mxu3 %v3117_v28  ;;  %v6199_v29 = vld [vmem:[#allocation9_spill] sm:$0xff] }
  0x79   :  { %842 = vmatpush.msrb.mxu1 %v3415_v9  ;;  %961 = vmatpush.msra.mxu0 %v3184_v39 }
  0x7a   :  { %732 = vmatpush.msra.mxu2 %v3163_v35  ;;  %752 = vmatpush.msra.mxu3 %v3128_v30  ;;  %v6202_v35 = vld [vmem:[#allocation11_spill] sm:$0xff] }
  0x7b   :  { %843 = vmatpush.msrb.mxu1 %v3444_v19  ;;  %962 = vmatpush.msra.mxu0 %v3222_v44 }
  0x7c   :  { %733 = vmatpush.msra.mxu2 %v3184_v39  ;;  %753 = vmatpush.msra.mxu3 %v3149_v33 }
  0x7d   :  { %844 = vmatpush.msrb.mxu1 %v3474_v2  ;;  %963 = vmatpush.msra.mxu0 %v3234_v46 }
  0x7e   :  { %734 = vmatpush.msra.mxu2 %v3222_v44  ;;  %754 = vmatpush.msra.mxu3 %v3158_v34 }
  0x7f   :  { %845 = vmatpush.msrb.mxu1 %v3488_v14  ;;  %964 = vmatpush.msra.mxu0 %v3283_v53 }
  0x80   :  { %735 = vmatpush.msra.mxu2 %v3234_v46  ;;  %755 = vmatpush.msra.mxu3 %v3179_v38 }
  0x81   :  { %846 = vmatpush.msrb.mxu1 %v3509_v6  ;;  %965 = vmatpush.msra.mxu0 %v3307_v57  ;;  %v3998_v6 = vld [vmem:[%s5925_s6] ss:$0 sm:$0xff] }
  0x82   :  { %736 = vmatpush.msra.mxu2 %v3283_v53  ;;  %756 = vmatpush.msra.mxu3 %v3197_v41 }
  0x83   :  { %847 = vmatpush.msrb.mxu1 %v3533_v59  ;;  %966 = vmatpush.msra.mxu0 %v3351_v63  ;;  %v6228_v59 = vld [vmem:[#allocation39_spill] sm:$0xff] }
  0x84   :  { %737 = vmatpush.msra.mxu2 %v3307_v57  ;;  %757 = vmatpush.msra.mxu3 %v3208_v42 }
  0x85   :  { %v3756_v32 = vpop.f32.mrf.mxu0  ;;  %848 = vmatpush.msrb.mxu1 %v6201_v55  ;;  %v6215_v55 = vld [vmem:[#allocation10_spill] sm:$0xff]  ;;  %967 = vmatpush.msra.mxu0 %v3380_v5 }
  0x86   :  { %738 = vmatpush.msra.mxu2 %v3351_v63  ;;  %758 = vmatpush.msra.mxu3 %v3217_v43  ;;  %v6222_v63 = vld [vmem:[#allocation15_spill] sm:$0xff] }
  0x87   :  { %968 = vmatpush.msra.mxu0 %v3425_v12 }
  0x88   :  { %v3764_v15 = vpop.f32.mrf.mxu2  ;;  %v3766_v17 = vpop.f32.mrf.mxu3  ;;  %739 = vmatpush.msra.mxu2 %v3380_v5  ;;  %759 = vmatpush.msra.mxu3 %v3240_v47 }
  0x89   :  { %6194 = vst [vmem:[#allocation47_spill] sm:$0xff] %v3764_v15  ;;  %v6210_v15 = vld [vmem:[#allocation17_spill] sm:$0xff]  ;;  %969 = vmatpush.msra.mxu0 %v3449_v26 }
  0x8a   :  { %6195 = vst [vmem:[#allocation48_spill] sm:$0xff] %v3766_v17  ;;  %740 = vmatpush.msra.mxu2 %v3425_v12  ;;  %760 = vmatpush.msra.mxu3 %v3253_v49  ;;  %v6203_v17 = vld [vmem:[#allocation6_spill] sm:$0xff]  ;;  %v6227_v12 = vld [vmem:[#allocation16_spill] sm:$0xff] }
  0x8c   :  { %741 = vmatpush.msra.mxu2 %v3449_v26  ;;  %761 = vmatpush.msra.mxu3 %v3264_v50  ;;  %v6231_v26 = vld [vmem:[#allocation40_spill] sm:$0xff] }
  0x8d   :  { %v3778_v21 = vpop.f32.mrf.mxu0 }
  0x8e   :  { %6196 = vst [vmem:[#allocation49_spill] sm:$0xff] %v3778_v21  ;;  %854 = vmatpush.msrb.mxu2 %v3133_v31  ;;  %874 = vmatpush.msrb.mxu3 %v3278_v52  ;;  %v6200_v31 = vld [vmem:[#allocation5_spill] sm:$0xff]  ;;  %v6211_v21 = vld [vmem:[#allocation8_spill] sm:$0xff] }
  0x90   :  { %855 = vmatpush.msrb.mxu2 %v3168_v36  ;;  %v3786_v23 = vpop.f32.mrf.mxu2  ;;  %v3788_v27 = vpop.f32.mrf.mxu3  ;;  %875 = vmatpush.msrb.mxu3 %v6199_v29  ;;  %v3801_v36 = vld [vmem:[%s5924_s2] sm:$0x3f] }
  0x91   :  { %6197 = vst [vmem:[#allocation50_spill] sm:$0xff] %v3786_v23  ;;  %v6207_v23 = vld [vmem:[#allocation7_spill] sm:$0xff]  ;;  %v3812_v44 = vperm.slane %v3801_v36, 0 }
  0x92   :  { %6198 = vst [vmem:[#allocation51_spill] sm:$0xff] %v3788_v27  ;;  %856 = vmatpush.msrb.mxu2 %v6200_v31  ;;  %876 = vmatpush.msrb.mxu3 %v6202_v35  ;;  %v6204_v27 = vld [vmem:[#allocation34_spill] sm:$0xff] }
  0x93   :  { %849 = vmatpush.msrb.mxu1 %v6204_v27  ;;  %v6206_v31 = vld [vmem:[#allocation14_spill] sm:$0xff]  ;;  %6208 = vst [vmem:[#allocation5_spill] sm:$0xff] %v3812_v44  ;;  %v6214_v27 = vld [vmem:[#allocation21_spill] sm:$0xff] }
  0x94   :  { %857 = vmatpush.msrb.mxu2 %v6203_v17  ;;  %877 = vmatpush.msrb.mxu3 %v6206_v31  ;;  %v3815_v17 = vperm.slane %v3801_v36, 1 }
  0x95   :  { %v3805_v39 = vpop.f32.mrf.mxu0  ;;  %974 = vmatpush.msra.mxu1 %v3021_v13 }
  0x96   :  { %6205 = vst [vmem:[#allocation9_spill] sm:$0xff] %v3805_v39  ;;  %858 = vmatpush.msrb.mxu2 %v6207_v23  ;;  %878 = vmatpush.msrb.mxu3 %v6210_v15  ;;  %v3827_v23 = vpop.f32.mrf.mxu1 }
  0x97   :  { %6209 = vst [vmem:[#allocation11_spill] sm:$0xff] %v3815_v17  ;;  %975 = vmatpush.msra.mxu1 %v3035_v16  ;;  %v6217_v16 = vld [vmem:[#allocation12_spill] sm:$0xff] }
  0x98   :  { %859 = vmatpush.msrb.mxu2 %v6211_v21  ;;  %v126_v46 = vpop.f32.mrf.mxu2  ;;  %v167_v39 = vpop.f32.mrf.mxu3  ;;  %879 = vmatpush.msrb.mxu3 %v6214_v27 }
  0x99   :  { %v3822_v13 = vadd.f32 %v126_v46, %v3812_v44  ;;  %v3825_v53 = vadd.f32 %v167_v39, %v3815_v17  ;;  %976 = vmatpush.msra.mxu1 %v3066_v20  ;;  %v6219_v39 = vld [vmem:[#allocation31_spill] sm:$0xff]  ;;  %v6220_v46 = vld [vmem:[#allocation13_spill] sm:$0xff]  ;;  %v6221_v20 = vld [vmem:[#allocation36_spill] sm:$0xff] }
  0x9a   :  { %860 = vmatpush.msrb.mxu2 %v6215_v55  ;;  %880 = vmatpush.msrb.mxu3 %v6216_v40 }
  0x9b   :  { %6212 = vst [vmem:[#allocation6_spill] sm:$0xff] %v3822_v13  ;;  %977 = vmatpush.msra.mxu1 %v3076_v22 }
  0x9c   :  { %6213 = vst [vmem:[#allocation14_spill] sm:$0xff] %v3825_v53  ;;  %861 = vmatpush.msrb.mxu2 %v6217_v16  ;;  %881 = vmatpush.msrb.mxu3 %v6219_v39 }
  0x9d   :  { %v3837_v57 = vpop.f32.mrf.mxu0  ;;  %978 = vmatpush.msra.mxu1 %v3103_v25  ;;  %v6226_v25 = vld [vmem:[#allocation37_spill] sm:$0xff] }
  0x9e   :  { %6218 = vst [vmem:[#allocation7_spill] sm:$0xff] %v3837_v57  ;;  %862 = vmatpush.msrb.mxu2 %v6220_v46  ;;  %882 = vmatpush.msrb.mxu3 %v6221_v20  ;;  %v3853_v57 = vpop.f32.mrf.mxu1 }
  0x9f   :  { %979 = vmatpush.msra.mxu1 %v3117_v28  ;;  %6225 = vst [vmem:[#allocation21_spill] sm:$0xff] %v3853_v57  ;;  %v6237_v57 = vld [vmem:[#allocation26_spill] sm:$0xff] }
  0xa0   :  { %863 = vmatpush.msrb.mxu2 %v6222_v63  ;;  %v129_v53 = vpop.f32.mrf.mxu2  ;;  %v170_v13 = vpop.f32.mrf.mxu3  ;;  %883 = vmatpush.msrb.mxu3 %v6226_v25 }
  0xa1   :  { %v3848_v22 = vadd.f32 %v129_v53, %v3812_v44  ;;  %v3851_v5 = vadd.f32 %v170_v13, %v3815_v17  ;;  %980 = vmatpush.msra.mxu1 %v3128_v30  ;;  %v6232_v13 = vld [vmem:[#allocation20_spill] sm:$0xff]  ;;  %v6233_v53 = vld [vmem:[#allocation23_spill] sm:$0xff] }
  0xa2   :  { %864 = vmatpush.msrb.mxu2 %v6227_v12  ;;  %884 = vmatpush.msrb.mxu3 %v6228_v59 }
  0xa3   :  { %6223 = vst [vmem:[#allocation17_spill] sm:$0xff] %v3848_v22  ;;  %981 = vmatpush.msra.mxu1 %v3149_v33 }
  0xa4   :  { %6224 = vst [vmem:[#allocation8_spill] sm:$0xff] %v3851_v5  ;;  %865 = vmatpush.msrb.mxu2 %v6229_v45  ;;  %885 = vmatpush.msrb.mxu3 %v6231_v26 }
  0xa5   :  { %v3861_v28 = vpop.f32.mrf.mxu0  ;;  %982 = vmatpush.msra.mxu1 %v3158_v34  ;;  %v6238_v34 = vld [vmem:[#allocation29_spill] sm:$0xff] }
  0xa6   :  { %6230 = vst [vmem:[#allocation10_spill] sm:$0xff] %v3861_v28  ;;  %866 = vmatpush.msrb.mxu2 %v6232_v13  ;;  %886 = vmatpush.msrb.mxu3 %v3650_v10  ;;  %v3875_v28 = vpop.f32.mrf.mxu1 }
  0xa7   :  { %983 = vmatpush.msra.mxu1 %v3179_v38  ;;  %6236 = vst [vmem:[#allocation31_spill] sm:$0xff] %v3875_v28  ;;  %v3884_v38 = vperm.slane %v3801_v36, 3  ;;  %v3907_v28 = vperm.slane %v3801_v36, 2 }
  0xa8   :  { %867 = vmatpush.msrb.mxu2 %v6233_v53  ;;  %v132_v5 = vpop.f32.mrf.mxu2  ;;  %v173_v30 = vpop.f32.mrf.mxu3  ;;  %887 = vmatpush.msrb.mxu3 %v3697_v24 }
  0xa9   :  { %v3870_v22 = vadd.f32 %v132_v5, %v3812_v44  ;;  %v3873_v33 = vadd.f32 %v173_v30, %v3815_v17  ;;  %984 = vmatpush.msra.mxu1 %v3197_v41 }
  0xaa   :  { %868 = vmatpush.msrb.mxu2 %v6237_v57  ;;  %888 = vmatpush.msrb.mxu3 %v3704_v3 }
  0xab   :  { %6234 = vst [vmem:[#allocation27_spill] sm:$0xff] %v3870_v22  ;;  %985 = vmatpush.msra.mxu1 %v3208_v42  ;;  %v3900_v42 = vperm.slane %v3801_v36, 4 }
  0xac   :  { %6235 = vst [vmem:[#allocation12_spill] sm:$0xff] %v3873_v33  ;;  %869 = vmatpush.msrb.mxu2 %v6238_v34  ;;  %889 = vmatpush.msrb.mxu3 %v3717_v62 }
  0xad   :  { %v3886_v5 = vpop.f32.mrf.mxu0  ;;  %986 = vmatpush.msra.mxu1 %v3217_v43  ;;  %6242 = vst [vmem:[#allocation16_spill] sm:$0xff] %v3900_v42 }
  0xae   :  { %6239 = vst [vmem:[#allocation13_spill] sm:$0xff] %v3886_v5  ;;  %v3896_v22 = vpop.f32.mrf.mxu1 }
  0xaf   :  { %987 = vmatpush.msra.mxu1 %v3240_v47  ;;  %6241 = vst [vmem:[#allocation15_spill] sm:$0xff] %v3896_v22 }
  0xb0   :  { %v3890_v30 = vpop.f32.mrf.mxu2  ;;  %v234_v33 = vpop.f32.mrf.mxu3 }
  0xb1   :  { %v3894_v41 = vadd.f32 %v234_v33, %v3884_v38  ;;  %988 = vmatpush.msra.mxu1 %v3253_v49 }
  0xb3   :  { %6240 = vst [vmem:[#allocation36_spill] sm:$0xff] %v3894_v41  ;;  %989 = vmatpush.msra.mxu1 %v3264_v50 }
  0xb5   :  { %v284_v5 = vpop.f32.mrf.mxu0 }
  0xb6   :  { %v3904_v43 = vadd.f32 %v284_v5, %v3900_v42  ;;  %v3915_v49 = vpop.f32.mrf.mxu1 }
  0xb7   :  { %6246 = vst [vmem:[#allocation54_spill] sm:$0xff] %v3915_v49 }
  0xb8   :  { %6243 = vst [vmem:[#allocation18_spill] sm:$0xff] %v3904_v43  ;;  %v196_v47 = vpop.f32.mrf.mxu2  ;;  %v237_v62 = vpop.f32.mrf.mxu3 }
  0xb9   :  { %v3910_v33 = vadd.f32 %v196_v47, %v3907_v28  ;;  %v3913_v22 = vadd.f32 %v237_v62, %v3884_v38 }
  0xbb   :  { %6244 = vst [vmem:[#allocation52_spill] sm:$0xff] %v3910_v33  ;;  %v3932_v33 = vperm.slane %v3801_v36, 5 }
  0xbc   :  { %6245 = vst [vmem:[#allocation53_spill] sm:$0xff] %v3913_v22 }
  0xbd   :  { %v287_v41 = vpop.f32.mrf.mxu0  ;;  %6252 = vst [vmem:[#allocation60_spill] sm:$0xff] %v3932_v33 }
  0xbe   :  { %v3918_v50 = vadd.f32 %v287_v41, %v3900_v42  ;;  %v3926_v34 = vpop.f32.mrf.mxu1 }
  0xbf   :  { %6250 = vst [vmem:[#allocation58_spill] sm:$0xff] %v3926_v34 }
  0xc0   :  { %6247 = vst [vmem:[#allocation55_spill] sm:$0xff] %v3918_v50  ;;  %v199_v3 = vpop.f32.mrf.mxu2  ;;  %v240_v5 = vpop.f32.mrf.mxu3 }
  0xc1   :  { %v3921_v43 = vadd.f32 %v199_v3, %v3907_v28  ;;  %v3924_v24 = vadd.f32 %v240_v5, %v3884_v38 }
  0xc3   :  { %6248 = vst [vmem:[#allocation56_spill] sm:$0xff] %v3921_v43 }
  0xc4   :  { %6249 = vst [vmem:[#allocation57_spill] sm:$0xff] %v3924_v24 }
  0xc5   :  { %v290_v47 = vpop.f32.mrf.mxu0 }
  0xc6   :  { %v3929_v62 = vadd.f32 %v290_v47, %v3900_v42  ;;  %v325_v50 = vpop.f32.mrf.mxu1 }
  0xc7   :  { %v3941_v5 = vadd.f32 %v325_v50, %v3932_v33 }
  0xc8   :  { %6251 = vst [vmem:[#allocation59_spill] sm:$0xff] %v3929_v62  ;;  %v202_v22 = vpop.f32.mrf.mxu2  ;;  %v243_v49 = vpop.f32.mrf.mxu3 }
  0xc9   :  { %v3935_v41 = vadd.f32 %v202_v22, %v3907_v28  ;;  %v3938_v3 = vadd.f32 %v243_v49, %v3884_v38  ;;  %6255 = vst [vmem:[#allocation63_spill] sm:$0xff] %v3941_v5 }
  0xcb   :  { %6253 = vst [vmem:[#allocation61_spill] sm:$0xff] %v3935_v41 }
  0xcc   :  { %6254 = vst [vmem:[#allocation62_spill] sm:$0xff] %v3938_v3 }
  0xcd   :  { %v293_v34 = vpop.f32.mrf.mxu0 }
  0xce   :  { %v3944_v24 = vadd.f32 %v293_v34, %v3900_v42  ;;  %v328_v22 = vpop.f32.mrf.mxu1 }
  0xcf   :  { %v3953_v49 = vadd.f32 %v328_v22, %v3932_v33 }
  0xd0   :  { %6256 = vst [vmem:[#allocation64_spill] sm:$0xff] %v3944_v24  ;;  %v205_v47 = vpop.f32.mrf.mxu2  ;;  %v246_v43 = vpop.f32.mrf.mxu3 }
  0xd1   :  { %v3947_v62 = vadd.f32 %v205_v47, %v3907_v28  ;;  %v3950_v36 = vadd.f32 %v246_v43, %v3884_v38  ;;  %6259 = vst [vmem:[#allocation67_spill] sm:$0xff] %v3953_v49 }
  0xd3   :  { %6257 = vst [vmem:[#allocation65_spill] sm:$0xff] %v3947_v62 }
  0xd4   :  { %6258 = vst [vmem:[#allocation66_spill] sm:$0xff] %v3950_v36 }
  0xd5   :  { %v296_v47 = vpop.f32.mrf.mxu0 }
  0xd6   :  { %v331_v5 = vpop.f32.mrf.mxu1 }
  0xd7   :  { %v3962_v24 = vadd.f32 %v331_v5, %v3932_v33 }
  0xd8   :  { %v208_v3 = vpop.f32.mrf.mxu2  ;;  %v249_v41 = vpop.f32.mrf.mxu3 }
  0xd9   :  { %v3956_v50 = vadd.f32 %v208_v3, %v3907_v28  ;;  %v3959_v34 = vadd.f32 %v249_v41, %v3884_v38  ;;  %6262 = vst [vmem:[#allocation70_spill] sm:$0xff] %v3962_v24  ;;  %v297_v41 = vadd.f32 %v296_v47, %v3900_v42 }
  0xdb   :  { %6260 = vst [vmem:[#allocation68_spill] sm:$0xff] %v3956_v50 }
  0xdc   :  { %6261 = vst [vmem:[#allocation69_spill] sm:$0xff] %v3959_v34 }
  0xdd   :  { %v641_v24 = vpop.f32.mrf.mxu0 }
  0xde   :  { %v334_v49 = vpop.f32.mrf.mxu1  ;;  %v684_v10 = vadd.f32 %v641_v24, %v297_v41 }
  0xdf   :  { %v3971_v3 = vadd.f32 %v334_v49, %v3932_v33 }
  0xe0   :  { %v211_v62 = vpop.f32.mrf.mxu2  ;;  %v252_v43 = vpop.f32.mrf.mxu3 }
  0xe1   :  { %v3965_v36 = vadd.f32 %v211_v62, %v3907_v28  ;;  %v3968_v22 = vadd.f32 %v252_v43, %v3884_v38  ;;  %6265 = vst [vmem:[#allocation73_spill] sm:$0xff] %v3971_v3  ;;  %v112_v62 = vadd.f32 %v3756_v32, %v3812_v44  ;;  %v153_v43 = vadd.f32 %v3827_v23, %v3815_v17 }
  0xe3   :  { %6263 = vst [vmem:[#allocation71_spill] sm:$0xff] %v3965_v36  ;;  %v2510_v36 = vmul.f32 -1.442695, %v684_v10 }
  0xe4   :  { %6264 = vst [vmem:[#allocation72_spill] sm:$0xff] %v3968_v22 }
  0xe5   :  { %2547 = vpow2.f32 %v2510_v36 }
  0xe8   :  { %v214_v50 = vpop.f32.mrf.mxu2  ;;  %v255_v34 = vpop.f32.mrf.mxu3 }
  0xe9   :  { %v3975_v5 = vadd.f32 %v214_v50, %v3907_v28  ;;  %v256_v50 = vadd.f32 %v255_v34, %v3884_v38  ;;  %v337_v38 = vpop.f32.mrf.mxu1 }
  0xeb   :  { %6266 = vst [vmem:[#allocation74_spill] sm:$0xff] %v3975_v5  ;;  %v2548_v41 = vpop.eup %2547 }
  0xec   :  { %v3982_v23 = vadd.f32 1.0, %v2548_v41 }
  0xee   :  { %vm694_vm10 = vweird.f32 %v3982_v23 }
  0xf0   :  { %v510_v22 = vpop.f32.mrf.mxu2  ;;  %v530_v57 = vpop.f32.mrf.mxu3 }
  0xf1   :  { %v553_v49 = vadd.f32 %v510_v22, %v112_v62  ;;  %v573_v3 = vadd.f32 %v530_v57, %v153_v43 }
  0xf3   :  { %v2507_v26 = vmul.f32 -1.442695, %v553_v49  ;;  %v2508_v47 = vmul.f32 -1.442695, %v573_v3 }
  0xf5   :  { %2549 = vpow2.f32 %v2507_v26 }
  0xf6   :  { %2551 = vpow2.f32 %v2508_v47 }
  0xf8   :  { %v621_v5 = vpop.f32.mrf.mxu3  ;;  %v550_v43 = vpop.f32.mrf.mxu2 }
  0xf9   :  { %v664_v24 = vadd.f32 %v621_v5, %v256_v50 }
  0xfb   :  { %v2550_v42 = vpop.eup %2549  ;;  %v2509_v32 = vmul.f32 -1.442695, %v664_v24 }
  0xfc   :  { %v2552_v44 = vpop.eup %2551  ;;  %v557_v53 = vadd.f32 1.0, %v2550_v42 }
  0xfd   :  { %v577_v10 = vadd.f32 1.0, %v2552_v44  ;;  %2553 = vpow2.f32 %v2509_v32  ;;  %v3990_v44 = vld [vmem:[%s5923_s5] ss:$0 sm:$0xff] }
  0xfe   :  { %2555 = vrcp.f32 %v557_v53  ;;  %6267 = vst [vmem:[#allocation75_spill] sm:$0xff] %v3990_v44  ;;  %v569_v49 = vand.u32 2147483648, %v557_v53  ;;  %v567_v50 = vand.u32 2147483647, %v557_v53  ;;  %vm563_vm2 = vweird.f32 %v557_v53 }
  0xff   :  { %2557 = vrcp.f32 %v577_v10  ;;  %vm583_vm6 = vweird.f32 %v577_v10 }
 0x100   :  { %2559 = vrcp.f32 %v3982_v23  ;;  %v570_v17 = vor.u32 1.1754944e-38, %v569_v49  ;;  %vm568_vm4 = vcmp.eq.f32.partialorder %v567_v50, 8.507059e+37 }
 0x103   :  { %v2554_v57 = vpop.eup %2553 }
 0x104   :  { %v2556_v26 = vpop.eup %2555  ;;  %v668_v36 = vadd.f32 1.0, %v2554_v57  ;;  %v596_v57 = vadd.f32 %v3990_v44, %v550_v43 }
 0x105   :  { %v2558_v22 = vpop.eup %2557  ;;  %v559_v34 = vmul.f32 %v2556_v26, %v557_v53  ;;  %vm564_vm1 = vweird.f32 %v2556_v26  ;;  %v194_v53 = vadd.f32 %v3890_v30, %v3907_v28 }
 0x106   :  { %v579_v3 = vmul.f32 %v2558_v22, %v577_v10  ;;  %2561 = vrcp.f32 %v668_v36  ;;  %v3985_v5 = vpop.eup %2559  ;;  %vm565_vm3 = vmor %vm563_vm2, %vm564_vm1  ;;  %vm584_vm5 = vweird.f32 %v2558_v22  ;;  %v680_v49 = vand.u32 2147483648, %v668_v36 }
 0x107   :  { %v560_v62 = vsub.f32 1.0, %v559_v34  ;;  %v690_v24 = vmul.f32 %v3985_v5, %v3982_v23  ;;  %vm4002_vm7 = vmor %vm583_vm6, %vm584_vm5  ;;  %vm674_vm9 = vweird.f32 %v668_v36  ;;  %vm695_vm11 = vweird.f32 %v3985_v5 }
 0x108   :  { %v580_v42 = vsub.f32 1.0, %v579_v3  ;;  %vm696_vm15 = vmor %vm694_vm10, %vm695_vm11 }
 0x109   :  { %v561_v47 = vmul.f32 %v2556_v26, %v560_v62  ;;  %v691_v3 = vsub.f32 1.0, %v690_v24  ;;  %v678_v24 = vand.u32 2147483647, %v668_v36 }
 0x10a   :  { %v581_v41 = vmul.f32 %v2558_v22, %v580_v42  ;;  %v589_v42 = vand.u32 2147483648, %v577_v10 }
 0x10b   :  { %v562_v32 = vadd.f32 %v2556_v26, %v561_v47  ;;  %v661_v47 = vpop.f32.mrf.mxu1  ;;  %vm679_vm14 = vcmp.eq.f32.partialorder %v678_v24, 8.507059e+37 }
 0x10c   :  { %v2562_v34 = vpop.eup %2561  ;;  %v582_v25 = vadd.f32 %v2558_v22, %v581_v41  ;;  %v692_v41 = vmul.f32 %v3985_v5, %v691_v3  ;;  %v707_v30 = vadd.f32 %v3998_v6, %v661_v47 }
 0x10d   :  { %v566_v59 = vsel %vm565_vm3, %v2556_v26, %v562_v32  ;;  %v670_v13 = vmul.f32 %v2562_v34, %v668_v36  ;;  %v587_v26 = vand.u32 2147483647, %v577_v10  ;;  %vm675_vm8 = vweird.f32 %v2562_v34 }
 0x10e   :  { %v571_v62 = vsel %vm568_vm4, %v570_v17, %v566_v59  ;;  %v586_v28 = vsel %vm4002_vm7, %v2558_v22, %v582_v25  ;;  %v590_v32 = vor.u32 1.1754944e-38, %v589_v42  ;;  %vm676_vm13 = vmor %vm674_vm9, %vm675_vm8  ;;  %v681_v10 = vor.u32 1.1754944e-38, %v680_v49 }
 0x10f   :  { %v597_v43 = vmul.f32 %v596_v57, %v571_v62  ;;  %v671_v44 = vsub.f32 1.0, %v670_v13  ;;  %vm588_vm12 = vcmp.eq.f32.partialorder %v587_v26, 8.507059e+37  ;;  %v693_v25 = vadd.f32 %v3985_v5, %v692_v41  ;;  %v6272_v41 = vld [vmem:[#allocation22_spill] sm:$0xff] }
 0x110   :  { %v591_v57 = vsel %vm588_vm12, %v590_v32, %v586_v28  ;;  %v698_v22 = vand.u32 2147483647, %v3982_v23  ;;  %v338_v36 = vadd.f32 %v337_v38, %v3932_v33  ;;  %v4035_v32 = vld [vmem:[%s5922_s4 + $0x158] sm:$0xff] }
 0x111   :  { %v598_v59 = vadd.f32 %v597_v43, %v194_v53  ;;  %v672_v17 = vmul.f32 %v2562_v34, %v671_v44  ;;  %v700_v44 = vand.u32 2147483648, %v3982_v23  ;;  %v600_v42 = vsub.f32 1.0, %v591_v57  ;;  %v6271_v23 = vld [vmem:[#allocation19_spill] sm:$0xff] }
 0x112   :  { %vm699_vm0 = vcmp.eq.f32.partialorder %v698_v22, 8.507059e+37  ;;  %v697_v50 = vsel %vm696_vm15, %v3985_v5, %v693_v25  ;;  %v4027_v5 = vld [vmem:[%s5922_s4 + $0x170] sm:$0xff]  ;;  %v4203_v25 = vld [vmem:[%s5921_s3 + $0xc0] sm:$0xff]  ;;  %v4209_v22 = vld [vmem:[%s5921_s3 + $0xc8] sm:$0xff] }
 0x113   :  { %2563 = vtanh.f32 %v598_v59  ;;  %v673_v13 = vadd.f32 %v2562_v34, %v672_v17  ;;  %v701_v47 = vor.u32 1.1754944e-38, %v700_v44  ;;  %v602_v59 = vmul.f32 0.0, %v591_v57  ;;  %v4059_v44 = vld [vmem:[%s5922_s4 + $0x128] sm:$0xff]  ;;  %v4191_v57 = vld [vmem:[%s5921_s3 + $0xd8] sm:$0xff] }
 0x115   :  { %v677_v3 = vsel %vm676_vm13, %v2562_v34, %v673_v13  ;;  %v702_v17 = vsel %vm699_vm0, %v701_v47, %v697_v50  ;;  %v4245_v47 = vld [vmem:[%s5921_s3 + $0x80] sm:$0xff]  ;;  %v4263_v50 = vld [vmem:[%s5921_s3 + $0x48] sm:$0xff] }
 0x116   :  { %v682_v62 = vsel %vm679_vm14, %v681_v10, %v677_v3  ;;  %v711_v38 = vsub.f32 1.0, %v702_v17  ;;  %v4045_v10 = vld [vmem:[%s5922_s4 + $0x140] sm:$0xff] }
 0x117   :  { %v708_v53 = vmul.f32 %v707_v30, %v682_v62  ;;  %v713_v30 = vmul.f32 0.0, %v702_v17  ;;  %v4197_v3 = vld [vmem:[%s5921_s3 + $0xe0] sm:$0xff]  ;;  %v4215_v62 = vld [vmem:[%s5921_s3 + $0xa8] sm:$0xff]  ;;  %v4275_v17 = vld [vmem:[%s5921_s3 + $0x30] sm:$0xff] }
 0x118   :  { %6319 = vst [vmem:[#allocation77_spill] sm:$0xff] %v4275_v17 }
 0x119   :  { %v2564_v43 = vpop.eup %2563  ;;  %v709_v26 = vadd.f32 %v708_v53, %v338_v36  ;;  %v4221_v36 = vld [vmem:[%s5921_s3 + $0xb0] sm:$0xff] }
 0x11a   :  { %v601_v49 = vmul.f32 %v2564_v43, %v600_v42  ;;  %v4227_v53 = vld [vmem:[%s5921_s3 + $0x90] sm:$0xff]  ;;  %v4233_v42 = vld [vmem:[%s5921_s3 + $0x98] sm:$0xff] }
 0x11b   :  { %2565 = vtanh.f32 %v709_v26  ;;  %v4239_v43 = vld [vmem:[%s5921_s3 + $0x78] sm:$0xff]  ;;  %v4251_v26 = vld [vmem:[%s5921_s3 + $0x60] sm:$0xff] }
 0x11c   :  { %v4017_v34 = vadd.f32 %v602_v59, %v601_v49  ;;  %v4257_v49 = vld [vmem:[%s5921_s3 + $0x68] sm:$0xff]  ;;  %v4269_v59 = vld [vmem:[%s5921_s3 + $0x50] sm:$0xff] }
 0x11e   :  { %6270 = vst [vmem:[#allocation76_spill] sm:$0xff] %v4017_v34  ;;  %742 = vmatmul.f32.vlgmr.msra.gmra.mxu2 %v4017_v34  ;;  %762 = vmatmul.f32.vlgmr.msra.gmra.mxu3 %v4017_v34 }
 0x11f   :  { %782 = vmatmul.f32.vlgmr.msrb.gmra.mxu0 %v4017_v34  ;;  %994 = vmatpush.msra.mxu2 %v6271_v23  ;;  %v4281_v23 = vld [vmem:[%s5921_s3 + $0x38] sm:$0xff] }
 0x120   :  { %1062 = vmatpush.msra.mxu3 %v3273_v51  ;;  %1082 = vmatpush.msrb.mxu0 %v4027_v5  ;;  %v6273_v51 = vld [vmem:[#allocation24_spill] sm:$0xff]  ;;  %6320 = vst [vmem:[#allocation78_spill] sm:$0xff] %v4281_v23 }
 0x121   :  { %v2566_v24 = vpop.eup %2565  ;;  %995 = vmatpush.msra.mxu2 %v6272_v41  ;;  %v4299_v41 = vld [vmem:[%s5921_s3] sm:$0xff] }
 0x122   :  { %v712_v28 = vmul.f32 %v2566_v24, %v711_v38  ;;  %1063 = vmatpush.msra.mxu3 %v3290_v54  ;;  %1083 = vmatpush.msrb.mxu0 %v4035_v32  ;;  %v6275_v54 = vld [vmem:[#allocation30_spill] sm:$0xff]  ;;  %v4287_v38 = vld [vmem:[%s5921_s3 + $0x18] sm:$0xff]  ;;  %v4293_v24 = vld [vmem:[%s5921_s3 + $0x20] sm:$0xff]  ;;  %6323 = vst [vmem:[#allocation81_spill] sm:$0xff] %v4299_v41 }
 0x123   :  { %996 = vmatpush.msra.mxu2 %v6273_v51  ;;  %6321 = vst [vmem:[#allocation79_spill] sm:$0xff] %v4287_v38  ;;  %v6326_v51 = vld [vmem:[#allocation49_spill] sm:$0xff] }
 0x124   :  { %v4039_v13 = vadd.f32 %v713_v30, %v712_v28  ;;  %1064 = vmatpush.msra.mxu3 %v3314_v58  ;;  %1084 = vmatpush.msrb.mxu0 %v4045_v10  ;;  %v6276_v58 = vld [vmem:[#allocation33_spill] sm:$0xff]  ;;  %6322 = vst [vmem:[#allocation80_spill] sm:$0xff] %v4293_v24  ;;  %v4305_v28 = vld [vmem:[%s5921_s3 + $0x8] sm:$0xff] }
 0x125   :  { %997 = vmatpush.msra.mxu2 %v3526_v48  ;;  %v6277_v48 = vld [vmem:[#allocation35_spill] sm:$0xff]  ;;  %6324 = vst [vmem:[#allocation82_spill] sm:$0xff] %v4305_v28  ;;  %v6325_v30 = vld [vmem:[#allocation5_spill] sm:$0xff] }
 0x126   :  { %6274 = vst [vmem:[#allocation19_spill] sm:$0xff] %v4039_v13  ;;  %850 = vmatmul.f32.vlgmr.msrb.gmra.mxu1 %v4039_v13  ;;  %870 = vmatmul.f32.vlgmr.msrb.gmra.mxu2 %v4039_v13 }
 0x127   :  { %890 = vmatmul.f32.vlgmr.msrb.gmra.mxu3 %v4039_v13  ;;  %998 = vmatpush.msra.mxu2 %v6275_v54  ;;  %v115_v54 = vadd.f32 %v6326_v51, %v6325_v30 }
 0x128   :  { %1065 = vmatpush.msra.mxu3 %v3331_v60  ;;  %1102 = vmatpush.msrb.mxu1 %v3278_v52  ;;  %v4068_v60 = vld [vmem:[%s5922_s4 + $0x110] sm:$0xff]  ;;  %v6278_v52 = vld [vmem:[#allocation38_spill] sm:$0xff] }
 0x129   :  { %999 = vmatpush.msra.mxu2 %v6276_v58  ;;  %1085 = vmatpush.msrb.mxu0 %v4059_v44  ;;  %v6327_v58 = vld [vmem:[#allocation11_spill] sm:$0xff] }
 0x12a   :  { %1066 = vmatpush.msra.mxu3 %v3341_v61  ;;  %1103 = vmatpush.msrb.mxu1 %v6199_v29  ;;  %v6280_v61 = vld [vmem:[#allocation37_spill] sm:$0xff] }
 0x12b   :  { %1000 = vmatpush.msra.mxu2 %v6277_v48  ;;  %1086 = vmatpush.msrb.mxu0 %v4068_v60  ;;  %v6295_v29 = vld [vmem:[#allocation45_spill] sm:$0xff] }
 0x12c   :  { %1067 = vmatpush.msra.mxu3 %v3358_v0  ;;  %1104 = vmatpush.msrb.mxu1 %v6202_v35  ;;  %v6281_v0 = vld [vmem:[#allocation42_spill] sm:$0xff]  ;;  %v4148_v35 = vld [vmem:[%s5921_s3 + $0x140] sm:$0xff]  ;;  %6317 = vst [vmem:[#allocation45_spill] sm:$0xff] %v4263_v50 }
 0x12d   :  { %1001 = vmatpush.msra.mxu2 %v6278_v52  ;;  %1087 = vmatpush.msrb.mxu0 %v6211_v21  ;;  %v4129_v21 = vld [vmem:[%s5921_s3 + $0x150] sm:$0xff]  ;;  %6297 = vst [vmem:[#allocation30_spill] sm:$0xff] %v4148_v35  ;;  %v6328_v48 = vld [vmem:[#allocation21_spill] sm:$0xff] }
 0x12e   :  { %1068 = vmatpush.msra.mxu3 %v3393_v7  ;;  %1105 = vmatpush.msrb.mxu1 %v6206_v31  ;;  %v6285_v7 = vld [vmem:[#allocation43_spill] sm:$0xff]  ;;  %v6298_v31 = vld [vmem:[#allocation46_spill] sm:$0xff]  ;;  %v156_v52 = vadd.f32 %v6328_v48, %v6327_v58 }
 0x12f   :  { %1002 = vmatpush.msra.mxu2 %v3616_v4  ;;  %1088 = vmatpush.msrb.mxu0 %v6215_v55  ;;  %v6288_v4 = vld [vmem:[#allocation40_spill] sm:$0xff]  ;;  %6308 = vst [vmem:[#allocation43_spill] sm:$0xff] %v4209_v22 }
 0x130   :  { %1069 = vmatpush.msra.mxu3 %v3402_v8  ;;  %1106 = vmatpush.msrb.mxu1 %v6210_v15  ;;  %v6286_v8 = vld [vmem:[#allocation23_spill] sm:$0xff]  ;;  %v6293_v15 = vld [vmem:[#allocation44_spill] sm:$0xff]  ;;  %6311 = vst [vmem:[#allocation40_spill] sm:$0xff] %v4227_v53 }
 0x131   :  { %1003 = vmatpush.msra.mxu2 %v3624_v37  ;;  %1089 = vmatpush.msrb.mxu0 %v6217_v16  ;;  %v6291_v37 = vld [vmem:[#allocation41_spill] sm:$0xff]  ;;  %v4142_v55 = vld [vmem:[%s5921_s3 + $0x138] sm:$0xff]  ;;  %6309 = vst [vmem:[#allocation23_spill] sm:$0xff] %v4215_v62 }
 0x132   :  { %1070 = vmatpush.msra.mxu3 %v3415_v9  ;;  %1107 = vmatpush.msrb.mxu1 %v6214_v27  ;;  %v6287_v9 = vld [vmem:[#allocation32_spill] sm:$0xff]  ;;  %6296 = vst [vmem:[#allocation24_spill] sm:$0xff] %v4142_v55  ;;  %v4155_v16 = vld [vmem:[%s5921_s3 + $0x120] sm:$0xff] }
 0x133   :  { %1004 = vmatpush.msra.mxu2 %v3643_v1  ;;  %1090 = vmatpush.msrb.mxu0 %v6220_v46  ;;  %v6282_v1 = vld [vmem:[#allocation20_spill] sm:$0xff]  ;;  %6299 = vst [vmem:[#allocation33_spill] sm:$0xff] %v4155_v16  ;;  %v4167_v46 = vld [vmem:[%s5921_s3 + $0x108] sm:$0xff] }
 0x134   :  { %1071 = vmatpush.msra.mxu3 %v3444_v19  ;;  %1108 = vmatpush.msrb.mxu1 %v6216_v40  ;;  %v6279_v40 = vld [vmem:[#allocation25_spill] sm:$0xff]  ;;  %v6290_v19 = vld [vmem:[#allocation34_spill] sm:$0xff]  ;;  %v4135_v27 = vld [vmem:[%s5921_s3 + $0x158] sm:$0xff]  ;;  %6301 = vst [vmem:[#allocation38_spill] sm:$0xff] %v4167_v46 }
 0x135   :  { %1005 = vmatpush.msra.mxu2 %v3655_v18  ;;  %1091 = vmatpush.msrb.mxu0 %v6222_v63  ;;  %v4122_v18 = vld [vmem:[%s5921_s3 + $0x170] sm:$0xff]  ;;  %6294 = vst [vmem:[#allocation22_spill] sm:$0xff] %v4135_v27 }
 0x136   :  { %1072 = vmatpush.msra.mxu3 %v3474_v2  ;;  %1109 = vmatpush.msrb.mxu1 %v6219_v39  ;;  %v6283_v2 = vld [vmem:[#allocation28_spill] sm:$0xff]  ;;  %v4161_v39 = vld [vmem:[%s5921_s3 + $0x128] sm:$0xff]  ;;  %v4179_v63 = vld [vmem:[%s5921_s3 + $0xf0] sm:$0xff]  ;;  %6305 = vst [vmem:[#allocation20_spill] sm:$0xff] %v4191_v57 }
 0x137   :  { %1006 = vmatpush.msra.mxu2 %v3662_v56  ;;  %1092 = vmatpush.msrb.mxu0 %v6227_v12  ;;  %v6284_v56 = vld [vmem:[#allocation39_spill] sm:$0xff]  ;;  %6300 = vst [vmem:[#allocation35_spill] sm:$0xff] %v4161_v39  ;;  %v4185_v12 = vld [vmem:[%s5921_s3 + $0xf8] sm:$0xff] }
 0x138   :  { %1073 = vmatpush.msra.mxu3 %v3488_v14  ;;  %1110 = vmatpush.msrb.mxu1 %v6221_v20  ;;  %v4113_v14 = vld [vmem:[%s5921_s3 + $0x168] sm:$0xff]  ;;  %v4173_v20 = vld [vmem:[%s5921_s3 + $0x110] sm:$0xff]  ;;  %6303 = vst [vmem:[#allocation37_spill] sm:$0xff] %v4179_v63 }
 0x139   :  { %1007 = vmatpush.msra.mxu2 %v3670_v11  ;;  %1093 = vmatpush.msrb.mxu0 %v6229_v45  ;;  %v6289_v45 = vld [vmem:[#allocation26_spill] sm:$0xff]  ;;  %v6292_v11 = vld [vmem:[#allocation29_spill] sm:$0xff]  ;;  %6302 = vst [vmem:[#allocation25_spill] sm:$0xff] %v4173_v20 }
 0x13a   :  { %1074 = vmatpush.msra.mxu3 %v6279_v40  ;;  %1111 = vmatpush.msrb.mxu1 %v6280_v61  ;;  %6304 = vst [vmem:[#allocation42_spill] sm:$0xff] %v4185_v12 }
 0x13b   :  { %1008 = vmatpush.msra.mxu2 %v6281_v0  ;;  %1094 = vmatpush.msrb.mxu0 %v6282_v1  ;;  %6306 = vst [vmem:[#allocation28_spill] sm:$0xff] %v4197_v3 }
 0x13c   :  { %1075 = vmatpush.msra.mxu3 %v6283_v2  ;;  %1112 = vmatpush.msrb.mxu1 %v6284_v56  ;;  %6307 = vst [vmem:[#allocation39_spill] sm:$0xff] %v4203_v25 }
 0x13d   :  { %1009 = vmatpush.msra.mxu2 %v6285_v7  ;;  %1095 = vmatpush.msrb.mxu0 %v6286_v8  ;;  %6310 = vst [vmem:[#allocation32_spill] sm:$0xff] %v4221_v36  ;;  %v6329_v8 = vld [vmem:[#allocation72_spill] sm:$0xff] }
 0x13e   :  { %1076 = vmatpush.msra.mxu3 %v6287_v9  ;;  %1113 = vmatpush.msrb.mxu1 %v6288_v4  ;;  %6312 = vst [vmem:[#allocation26_spill] sm:$0xff] %v4233_v42 }
 0x13f   :  { %1096 = vmatpush.msrb.mxu0 %v6289_v45  ;;  %1182 = vmatpush.msrb.mxu2 %v4113_v14  ;;  %6313 = vst [vmem:[#allocation34_spill] sm:$0xff] %v4239_v43 }
 0x140   :  { %1077 = vmatpush.msra.mxu3 %v6290_v19  ;;  %1114 = vmatpush.msrb.mxu1 %v6291_v37  ;;  %6314 = vst [vmem:[#allocation41_spill] sm:$0xff] %v4245_v47  ;;  %v6330_v19 = vld [vmem:[#allocation64_spill] sm:$0xff] }
 0x141   :  { %1097 = vmatpush.msrb.mxu0 %v6292_v11  ;;  %1183 = vmatpush.msrb.mxu2 %v4129_v21  ;;  %6315 = vst [vmem:[#allocation29_spill] sm:$0xff] %v4251_v26 }
 0x142   :  { %1202 = vmatpush.msrb.mxu3 %v4122_v18  ;;  %1115 = vmatpush.msrb.mxu1 %v6293_v15  ;;  %6316 = vst [vmem:[#allocation44_spill] sm:$0xff] %v4257_v49 }
 0x143   :  { %1184 = vmatpush.msrb.mxu2 %v4142_v55  ;;  %6318 = vst [vmem:[#allocation46_spill] sm:$0xff] %v4269_v59 }
 0x144   :  { %1203 = vmatpush.msrb.mxu3 %v4135_v27  ;;  %1116 = vmatpush.msrb.mxu1 %v6295_v29 }
 0x145   :  { %1185 = vmatpush.msrb.mxu2 %v4155_v16 }
 0x146   :  { %1204 = vmatpush.msrb.mxu3 %v4148_v35  ;;  %1117 = vmatpush.msrb.mxu1 %v6298_v31 }
 0x147   :  { %1186 = vmatpush.msrb.mxu2 %v4167_v46 }
 0x148   :  { %1205 = vmatpush.msrb.mxu3 %v4161_v39 }
 0x149   :  { %1187 = vmatpush.msrb.mxu2 %v4179_v63 }
 0x14a   :  { %1206 = vmatpush.msrb.mxu3 %v4173_v20 }
 0x14b   :  { %1188 = vmatpush.msrb.mxu2 %v4191_v57 }
 0x14c   :  { %1207 = vmatpush.msrb.mxu3 %v4185_v12 }
 0x14d   :  { %1189 = vmatpush.msrb.mxu2 %v4203_v25 }
 0x14e   :  { %1208 = vmatpush.msrb.mxu3 %v4197_v3 }
 0x14f   :  { %1190 = vmatpush.msrb.mxu2 %v4215_v62 }
 0x150   :  { %1209 = vmatpush.msrb.mxu3 %v4209_v22 }
 0x151   :  { %1191 = vmatpush.msrb.mxu2 %v4227_v53 }
 0x152   :  { %1210 = vmatpush.msrb.mxu3 %v4221_v36 }
 0x153   :  { %1192 = vmatpush.msrb.mxu2 %v4239_v43 }
 0x154   :  { %1211 = vmatpush.msrb.mxu3 %v4233_v42 }
 0x155   :  { %1193 = vmatpush.msrb.mxu2 %v4251_v26 }
 0x156   :  { %1212 = vmatpush.msrb.mxu3 %v4245_v47 }
 0x157   :  { %1194 = vmatpush.msrb.mxu2 %v4263_v50 }
 0x158   :  { %1213 = vmatpush.msrb.mxu3 %v4257_v49 }
 0x159   :  { %1195 = vmatpush.msrb.mxu2 %v4275_v17 }
 0x15a   :  { %1214 = vmatpush.msrb.mxu3 %v4269_v59 }
 0x15b   :  { %1196 = vmatpush.msrb.mxu2 %v4287_v38 }
 0x15c   :  { %1215 = vmatpush.msrb.mxu3 %v4281_v23 }
 0x15d   :  { %1197 = vmatpush.msrb.mxu2 %v4299_v41 }
 0x15e   :  { %1216 = vmatpush.msrb.mxu3 %v4293_v24 }
 0x160   :  { %1217 = vmatpush.msrb.mxu3 %v4305_v28 }
 0x1a1   :  { %v743_v40 = vpop.f32.mrf.mxu2  ;;  %v763_v61 = vpop.f32.mrf.mxu3 }
 0x1a2   :  { %v786_v0 = vadd.f32 %v743_v40, %v115_v54  ;;  %v806_v1 = vadd.f32 %v763_v61, %v156_v52 }
 0x1a3   :  { %v851_v2 = vpop.f32.mrf.mxu1 }
 0x1a4   :  { %v2511_v56 = vmul.f32 -1.442695, %v786_v0  ;;  %v2512_v7 = vmul.f32 -1.442695, %v806_v1  ;;  %v894_v9 = vadd.f32 %v851_v2, %v6329_v8  ;;  %v783_v8 = vpop.f32.mrf.mxu0 }
 0x1a6   :  { %2567 = vpow2.f32 %v2511_v56  ;;  %v2513_v4 = vmul.f32 -1.442695, %v894_v9 }
 0x1a7   :  { %2569 = vpow2.f32 %v2512_v7 }
 0x1a8   :  { %2571 = vpow2.f32 %v2513_v4 }
 0x1a9   :  { %v871_v45 = vpop.f32.mrf.mxu2 }
 0x1aa   :  { %v914_v37 = vadd.f32 %v871_v45, %v6330_v19  ;;  %v891_v24 = vpop.f32.mrf.mxu3 }
 0x1ac   :  { %v2568_v11 = vpop.eup %2567  ;;  %v2514_v15 = vmul.f32 -1.442695, %v914_v37 }
 0x1ad   :  { %v2570_v29 = vpop.eup %2569  ;;  %v790_v31 = vadd.f32 1.0, %v2568_v11 }
 0x1ae   :  { %v2572_v51 = vpop.eup %2571  ;;  %v4314_v48 = vadd.f32 1.0, %v2570_v29  ;;  %2573 = vpow2.f32 %v2514_v15  ;;  %v6331_v15 = vld [vmem:[#allocation75_spill] sm:$0xff] }
 0x1af   :  { %2575 = vrcp.f32 %v790_v31  ;;  %v898_v54 = vadd.f32 1.0, %v2572_v51  ;;  %v800_v9 = vand.u32 2147483647, %v790_v31  ;;  %v802_v4 = vand.u32 2147483648, %v790_v31 }
 0x1b0   :  { %2577 = vrcp.f32 %v4314_v48  ;;  %v826_v29 = vadd.f32 %v6331_v15, %v783_v8  ;;  %vm796_vm2 = vweird.f32 %v790_v31  ;;  %v822_v8 = vand.u32 2147483648, %v4314_v48 }
 0x1b1   :  { %2579 = vrcp.f32 %v898_v54  ;;  %vm801_vm4 = vcmp.eq.f32.partialorder %v800_v9, 8.507059e+37  ;;  %v803_v58 = vor.u32 1.1754944e-38, %v802_v4  ;;  %v908_v30 = vand.u32 2147483647, %v898_v54 }
 0x1b2   :  { %vm904_vm7 = vweird.f32 %v898_v54  ;;  %vm816_vm8 = vweird.f32 %v4314_v48  ;;  %v820_v9 = vand.u32 2147483647, %v4314_v48  ;;  %v934_v4 = vadd.f32 %v3998_v6, %v891_v24 }
 0x1b3   :  { %vm909_vm11 = vcmp.eq.f32.partialorder %v908_v30, 8.507059e+37  ;;  %v6335_v30 = vld [vmem:[#allocation73_spill] sm:$0xff] }
 0x1b4   :  { %v2574_v52 = vpop.eup %2573  ;;  %vm821_vm13 = vcmp.eq.f32.partialorder %v820_v9, 8.507059e+37 }
 0x1b5   :  { %v2576_v40 = vpop.eup %2575  ;;  %v4317_v61 = vadd.f32 1.0, %v2574_v52 }
 0x1b6   :  { %v2578_v0 = vpop.eup %2577  ;;  %v792_v1 = vmul.f32 %v2576_v40, %v790_v31  ;;  %vm797_vm1 = vweird.f32 %v2576_v40 }
 0x1b7   :  { %v812_v2 = vmul.f32 %v2578_v0, %v4314_v48  ;;  %2581 = vrcp.f32 %v4317_v61  ;;  %v2580_v7 = vpop.eup %2579  ;;  %vm798_vm3 = vmor %vm796_vm2, %vm797_vm1  ;;  %vm817_vm6 = vweird.f32 %v2578_v0  ;;  %vm924_vm14 = vweird.f32 %v4317_v61 }
 0x1b8   :  { %v793_v56 = vsub.f32 1.0, %v792_v1  ;;  %v900_v37 = vmul.f32 %v2580_v7, %v898_v54  ;;  %v910_v1 = vand.u32 2147483648, %v898_v54  ;;  %vm905_vm5 = vweird.f32 %v2580_v7  ;;  %vm4327_vm10 = vmor %vm816_vm8, %vm817_vm6 }
 0x1b9   :  { %v813_v45 = vsub.f32 1.0, %v812_v2  ;;  %vm906_vm9 = vmor %vm904_vm7, %vm905_vm5  ;;  %v928_v24 = vand.u32 2147483647, %v4317_v61 }
 0x1ba   :  { %v794_v19 = vmul.f32 %v2576_v40, %v793_v56  ;;  %v901_v52 = vsub.f32 1.0, %v900_v37 }
 0x1bb   :  { %v814_v11 = vmul.f32 %v2578_v0, %v813_v45  ;;  %vm929_vm0 = vcmp.eq.f32.partialorder %v928_v24, 8.507059e+37  ;;  %v4416_v24 = vld [vmem:[%s5922_s4 + $0x148] sm:$0xff] }
 0x1bc   :  { %v795_v51 = vadd.f32 %v2576_v40, %v794_v19  ;;  %v902_v2 = vmul.f32 %v2580_v7, %v901_v52  ;;  %v930_v52 = vand.u32 2147483648, %v4317_v61 }
 0x1bd   :  { %v2582_v33 = vpop.eup %2581  ;;  %v815_v38 = vadd.f32 %v2578_v0, %v814_v11  ;;  %v6334_v11 = vld [vmem:[#allocation52_spill] sm:$0xff] }
 0x1be   :  { %v799_v28 = vsel %vm798_vm3, %v2576_v40, %v795_v51  ;;  %v920_v41 = vmul.f32 %v2582_v33, %v4317_v61  ;;  %v903_v19 = vadd.f32 %v2580_v7, %v902_v2  ;;  %v911_v40 = vor.u32 1.1754944e-38, %v910_v1  ;;  %v4348_v61 = vld [vmem:[%s5921_s3 + $0x178] sm:$0xff] }
 0x1bf   :  { %v804_v56 = vsel %vm801_vm4, %v803_v58, %v799_v28  ;;  %vm925_vm12 = vweird.f32 %v2582_v33  ;;  %v819_v51 = vsel %vm4327_vm10, %v2578_v0, %v815_v38 }
 0x1c0   :  { %v827_v45 = vmul.f32 %v826_v29, %v804_v56  ;;  %v921_v31 = vsub.f32 1.0, %v920_v41  ;;  %v907_v58 = vsel %vm906_vm9, %v2580_v7, %v903_v19  ;;  %v823_v41 = vor.u32 1.1754944e-38, %v822_v8  ;;  %vm926_vm15 = vmor %vm924_vm14, %vm925_vm12 }
 0x1c1   :  { %v912_v54 = vsel %vm909_vm11, %v911_v40, %v907_v58  ;;  %v931_v8 = vor.u32 1.1754944e-38, %v930_v52  ;;  %v4356_v58 = vld [vmem:[%s5922_s4 + $0x168] sm:$0xff]  ;;  %v4401_v52 = vld [vmem:[%s5922_s4 + $0x160] sm:$0xff] }
 0x1c2   :  { %v922_v28 = vmul.f32 %v2582_v33, %v921_v31  ;;  %v828_v29 = vadd.f32 %v827_v45, %v6334_v11  ;;  %v935_v1 = vmul.f32 %v934_v4, %v912_v54  ;;  %v824_v2 = vsel %vm821_vm13, %v823_v41, %v819_v51  ;;  %v4363_v11 = vld [vmem:[%s5921_s3 + $0x160] sm:$0xff]  ;;  %v4376_v41 = vld [vmem:[%s5921_s3 + $0x148] sm:$0xff]  ;;  %v4382_v54 = vld [vmem:[%s5922_s4 + $0x178] sm:$0xff] }
 0x1c3   :  { %v830_v45 = vsub.f32 1.0, %v824_v2  ;;  %v832_v19 = vmul.f32 %v824_v2, %v4017_v34  ;;  %v4389_v51 = vld [vmem:[%s5922_s4 + $0x138] sm:$0xff]  ;;  %v4435_v2 = vld [vmem:[%s5922_s4 + $0x130] sm:$0xff]  ;;  %v4514_v34 = vld [vmem:[%s5921_s3 + $0xa0] sm:$0xff] }
 0x1c4   :  { %v923_v48 = vadd.f32 %v2582_v33, %v922_v28  ;;  %2583 = vtanh.f32 %v828_v29  ;;  %v936_v7 = vadd.f32 %v935_v1, %v6335_v30  ;;  %v4370_v29 = vld [vmem:[%s5922_s4 + $0x150] sm:$0xff]  ;;  %v4409_v1 = vld [vmem:[%s5921_s3 + $0x118] sm:$0xff]  ;;  %v4422_v30 = vld [vmem:[%s5922_s4 + $0x120] sm:$0xff]  ;;  %6342 = vst [vmem:[#allocation73_spill] sm:$0xff] %v4514_v34 }
 0x1c6   :  { %v927_v56 = vsel %vm926_vm15, %v2582_v33, %v923_v48  ;;  %2585 = vtanh.f32 %v936_v7  ;;  %v4395_v48 = vld [vmem:[%s5921_s3 + $0x130] sm:$0xff]  ;;  %v4428_v7 = vld [vmem:[%s5921_s3 + $0x100] sm:$0xff] }
 0x1c7   :  { %v932_v0 = vsel %vm929_vm0, %v931_v8, %v927_v56  ;;  %v4441_v56 = vld [vmem:[%s5922_s4 + $0x108] sm:$0xff] }
 0x1c8   :  { %v938_v40 = vsub.f32 1.0, %v932_v0  ;;  %v940_v33 = vmul.f32 %v932_v0, %v4039_v13  ;;  %v4447_v8 = vld [vmem:[%s5921_s3 + $0xe8] sm:$0xff]  ;;  %v4466_v0 = vld [vmem:[%s5921_s3 + $0xd0] sm:$0xff]  ;;  %v4508_v13 = vld [vmem:[%s5922_s4 + $0xc0] sm:$0xff] }
 0x1ca   :  { %v2584_v38 = vpop.eup %2583 }
 0x1cb   :  { %v831_v31 = vmul.f32 %v2584_v38, %v830_v45  ;;  %v4454_v45 = vld [vmem:[%s5922_s4 + $0x118] sm:$0xff]  ;;  %v4460_v38 = vld [vmem:[%s5922_s4 + $0xf0] sm:$0xff] }
 0x1cc   :  { %v2586_v4 = vpop.eup %2585  ;;  %6338 = vst [vmem:[#allocation72_spill] sm:$0xff] %v4454_v45 }
 0x1cd   :  { %v4339_v9 = vadd.f32 %v832_v19, %v831_v31  ;;  %v939_v37 = vmul.f32 %v2586_v4, %v938_v40  ;;  %v4472_v31 = vld [vmem:[%s5922_s4 + $0xf8] sm:$0xff]  ;;  %v4478_v19 = vld [vmem:[%s5922_s4 + $0x100] sm:$0xff] }
 0x1ce   :  { %6339 = vst [vmem:[#allocation64_spill] sm:$0xff] %v4478_v19  ;;  %v4484_v40 = vld [vmem:[%s5922_s4 + $0xd8] sm:$0xff] }
 0x1cf   :  { %6336 = vst [vmem:[#allocation49_spill] sm:$0xff] %v4339_v9  ;;  %970 = vmatmul.f32.vlgmr.msra.gmra.mxu0 %v4339_v9  ;;  %990 = vmatmul.f32.vlgmr.msra.gmra.mxu1 %v4339_v9  ;;  %v4351_v28 = vadd.f32 %v940_v33, %v939_v37  ;;  %v4490_v4 = vld [vmem:[%s5921_s3 + $0xb8] sm:$0xff]  ;;  %v4496_v37 = vld [vmem:[%s5922_s4 + $0xe0] sm:$0xff]  ;;  %v4502_v33 = vld [vmem:[%s5922_s4 + $0xe8] sm:$0xff] }
 0x1d0   :  { %1010 = vmatmul.f32.vlgmr.msra.gmra.mxu2 %v4339_v9  ;;  %1222 = vmatpush.msra.mxu0 %v4348_v61  ;;  %6340 = vst [vmem:[#allocation75_spill] sm:$0xff] %v4490_v4 }
 0x1d1   :  { %6337 = vst [vmem:[#allocation21_spill] sm:$0xff] %v4351_v28  ;;  %1290 = vmatpush.msra.mxu1 %v4356_v58  ;;  %1310 = vmatpush.msra.mxu2 %v4027_v5 }
 0x1d2   :  { %1223 = vmatpush.msra.mxu0 %v4363_v11  ;;  %1078 = vmatmul.f32.vlgmr.msra.gmra.mxu3 %v4351_v28  ;;  %6341 = vst [vmem:[#allocation52_spill] sm:$0xff] %v4502_v33 }
 0x1d3   :  { %1291 = vmatpush.msra.mxu1 %v4370_v29  ;;  %1330 = vmatpush.msra.mxu3 %v4382_v54 }
 0x1d4   :  { %1224 = vmatpush.msra.mxu0 %v4376_v41  ;;  %1311 = vmatpush.msra.mxu2 %v4035_v32 }
 0x1d5   :  { %1292 = vmatpush.msra.mxu1 %v4389_v51  ;;  %1331 = vmatpush.msra.mxu3 %v4401_v52 }
 0x1d6   :  { %1225 = vmatpush.msra.mxu0 %v4395_v48  ;;  %1312 = vmatpush.msra.mxu2 %v4045_v10 }
 0x1d7   :  { %1098 = vmatmul.f32.vlgmr.msrb.gmra.mxu0 %v4351_v28  ;;  %1118 = vmatmul.f32.vlgmr.msrb.gmra.mxu1 %v4351_v28 }
 0x1d8   :  { %1226 = vmatpush.msra.mxu0 %v4409_v1  ;;  %1332 = vmatpush.msra.mxu3 %v4416_v24 }
 0x1d9   :  { %1293 = vmatpush.msra.mxu1 %v4422_v30  ;;  %1313 = vmatpush.msra.mxu2 %v4059_v44 }
 0x1da   :  { %1227 = vmatpush.msra.mxu0 %v4428_v7  ;;  %1333 = vmatpush.msra.mxu3 %v4435_v2 }
 0x1db   :  { %1294 = vmatpush.msra.mxu1 %v4441_v56  ;;  %1314 = vmatpush.msra.mxu2 %v4068_v60 }
 0x1dc   :  { %1228 = vmatpush.msra.mxu0 %v4447_v8  ;;  %1334 = vmatpush.msra.mxu3 %v4454_v45  ;;  %v4532_v45 = vld [vmem:[%s5922_s4 + $0xa8] sm:$0xff] }
 0x1dd   :  { %1295 = vmatpush.msra.mxu1 %v4460_v38  ;;  %1315 = vmatpush.msra.mxu2 %v4472_v31  ;;  %6344 = vst [vmem:[#allocation84_spill] sm:$0xff] %v4532_v45 }
 0x1de   :  { %1229 = vmatpush.msra.mxu0 %v4466_v0  ;;  %1335 = vmatpush.msra.mxu3 %v4478_v19  ;;  %v4520_v19 = vld [vmem:[%s5922_s4 + $0xc8] sm:$0xff] }
 0x1df   :  { %1296 = vmatpush.msra.mxu1 %v4484_v40  ;;  %1316 = vmatpush.msra.mxu2 %v4496_v37 }
 0x1e0   :  { %1230 = vmatpush.msra.mxu0 %v4490_v4  ;;  %1336 = vmatpush.msra.mxu3 %v4502_v33  ;;  %v4526_v33 = vld [vmem:[%s5922_s4 + $0xd0] sm:$0xff] }
 0x1e1   :  { %1297 = vmatpush.msra.mxu1 %v4508_v13  ;;  %1317 = vmatpush.msra.mxu2 %v4520_v19  ;;  %6343 = vst [vmem:[#allocation83_spill] sm:$0xff] %v4526_v33  ;;  %v4544_v4 = vld [vmem:[%s5922_s4 + $0xb0] sm:$0xff] }
 0x1e2   :  { %1231 = vmatpush.msra.mxu0 %v4514_v34  ;;  %1337 = vmatpush.msra.mxu3 %v4526_v33  ;;  %v4538_v34 = vld [vmem:[%s5921_s3 + $0x88] sm:$0xff]  ;;  %6346 = vst [vmem:[#allocation86_spill] sm:$0xff] %v4544_v4  ;;  %v4550_v33 = vld [vmem:[%s5922_s4 + $0xb8] sm:$0xff] }
 0x1e3   :  { %1298 = vmatpush.msra.mxu1 %v4532_v45  ;;  %6345 = vst [vmem:[#allocation85_spill] sm:$0xff] %v4538_v34  ;;  %1318 = vmatpush.msra.mxu2 %v4544_v4  ;;  %v4556_v45 = vld [vmem:[%s5922_s4 + $0x90] sm:$0xff]  ;;  %v4568_v4 = vld [vmem:[%s5922_s4 + $0x98] sm:$0xff] }
 0x1e4   :  { %1232 = vmatpush.msra.mxu0 %v4538_v34  ;;  %6347 = vst [vmem:[#allocation87_spill] sm:$0xff] %v4550_v33  ;;  %1338 = vmatpush.msra.mxu3 %v4550_v33  ;;  %v4562_v34 = vld [vmem:[%s5921_s3 + $0x70] sm:$0xff]  ;;  %v4574_v33 = vld [vmem:[%s5922_s4 + $0xa0] sm:$0xff] }
 0x1e5   :  { %6348 = vst [vmem:[#allocation88_spill] sm:$0xff] %v4556_v45  ;;  %1299 = vmatpush.msra.mxu1 %v4556_v45  ;;  %1319 = vmatpush.msra.mxu2 %v4568_v4  ;;  %v4580_v45 = vld [vmem:[%s5922_s4 + $0x78] sm:$0xff] }
 0x1e6   :  { %6349 = vst [vmem:[#allocation89_spill] sm:$0xff] %v4562_v34  ;;  %1233 = vmatpush.msra.mxu0 %v4562_v34  ;;  %1339 = vmatpush.msra.mxu3 %v4574_v33  ;;  %v4586_v34 = vld [vmem:[%s5921_s3 + $0x58] sm:$0xff] }
 0x1e7   :  { %6350 = vst [vmem:[#allocation90_spill] sm:$0xff] %v4568_v4  ;;  %1300 = vmatpush.msra.mxu1 %v4580_v45  ;;  %v4592_v4 = vld [vmem:[%s5922_s4 + $0x80] sm:$0xff] }
 0x1e8   :  { %6351 = vst [vmem:[#allocation91_spill] sm:$0xff] %v4574_v33  ;;  %1234 = vmatpush.msra.mxu0 %v4586_v34  ;;  %1320 = vmatpush.msra.mxu2 %v4592_v4  ;;  %v4598_v33 = vld [vmem:[%s5922_s4 + $0x88] sm:$0xff] }
 0x1e9   :  { %6352 = vst [vmem:[#allocation92_spill] sm:$0xff] %v4580_v45  ;;  %1340 = vmatpush.msra.mxu3 %v4598_v33  ;;  %v4604_v45 = vld [vmem:[%s5922_s4 + $0x60] sm:$0xff] }
 0x1ea   :  { %6353 = vst [vmem:[#allocation93_spill] sm:$0xff] %v4586_v34  ;;  %1301 = vmatpush.msra.mxu1 %v4604_v45  ;;  %v4610_v34 = vld [vmem:[%s5921_s3 + $0x40] sm:$0xff] }
 0x1eb   :  { %6354 = vst [vmem:[#allocation94_spill] sm:$0xff] %v4592_v4  ;;  %1235 = vmatpush.msra.mxu0 %v4610_v34  ;;  %v4616_v4 = vld [vmem:[%s5922_s4 + $0x68] sm:$0xff] }
 0x1ec   :  { %6355 = vst [vmem:[#allocation95_spill] sm:$0xff] %v4598_v33  ;;  %1321 = vmatpush.msra.mxu2 %v4616_v4  ;;  %v4622_v33 = vld [vmem:[%s5922_s4 + $0x70] sm:$0xff] }
 0x1ed   :  { %6356 = vst [vmem:[#allocation96_spill] sm:$0xff] %v4604_v45  ;;  %1341 = vmatpush.msra.mxu3 %v4622_v33  ;;  %v4628_v45 = vld [vmem:[%s5922_s4 + $0x48] sm:$0xff] }
 0x1ee   :  { %6357 = vst [vmem:[#allocation97_spill] sm:$0xff] %v4610_v34  ;;  %1302 = vmatpush.msra.mxu1 %v4628_v45  ;;  %v4634_v34 = vld [vmem:[%s5921_s3 + $0x28] sm:$0xff] }
 0x1ef   :  { %6358 = vst [vmem:[#allocation98_spill] sm:$0xff] %v4616_v4  ;;  %1236 = vmatpush.msra.mxu0 %v4634_v34  ;;  %v4640_v4 = vld [vmem:[%s5922_s4 + $0x50] sm:$0xff] }
 0x1f0   :  { %6359 = vst [vmem:[#allocation99_spill] sm:$0xff] %v4622_v33  ;;  %1322 = vmatpush.msra.mxu2 %v4640_v4  ;;  %v4646_v33 = vld [vmem:[%s5922_s4 + $0x58] sm:$0xff] }
 0x1f1   :  { %6360 = vst [vmem:[#allocation100_spill] sm:$0xff] %v4628_v45  ;;  %1342 = vmatpush.msra.mxu3 %v4646_v33  ;;  %v4652_v45 = vld [vmem:[%s5922_s4 + $0x30] sm:$0xff] }
 0x1f2   :  { %6361 = vst [vmem:[#allocation101_spill] sm:$0xff] %v4634_v34  ;;  %1303 = vmatpush.msra.mxu1 %v4652_v45  ;;  %v4658_v34 = vld [vmem:[%s5921_s3 + $0x10] sm:$0xff] }
 0x1f3   :  { %6362 = vst [vmem:[#allocation102_spill] sm:$0xff] %v4640_v4  ;;  %1237 = vmatpush.msra.mxu0 %v4658_v34  ;;  %v4664_v4 = vld [vmem:[%s5922_s4 + $0x38] sm:$0xff] }
 0x1f4   :  { %6363 = vst [vmem:[#allocation103_spill] sm:$0xff] %v4646_v33  ;;  %1323 = vmatpush.msra.mxu2 %v4664_v4  ;;  %v4670_v33 = vld [vmem:[%s5922_s4 + $0x40] sm:$0xff] }
 0x1f5   :  { %6364 = vst [vmem:[#allocation104_spill] sm:$0xff] %v4652_v45  ;;  %1343 = vmatpush.msra.mxu3 %v4670_v33  ;;  %v4676_v45 = vld [vmem:[%s5922_s4 + $0x18] sm:$0xff]  ;;  %1408 = vmatpush.msrb.mxu0 %v4113_v14 }
 0x1f6   :  { %6365 = vst [vmem:[#allocation105_spill] sm:$0xff] %v4658_v34  ;;  %1304 = vmatpush.msra.mxu1 %v4676_v45  ;;  %v4682_v34 = vld [vmem:[%s5922_s4 + $0x20] sm:$0xff] }
 0x1f7   :  { %6366 = vst [vmem:[#allocation106_spill] sm:$0xff] %v4664_v4  ;;  %1324 = vmatpush.msra.mxu2 %v4682_v34  ;;  %1409 = vmatpush.msrb.mxu0 %v4129_v21 }
 0x1f8   :  { %6367 = vst [vmem:[#allocation107_spill] sm:$0xff] %v4670_v33  ;;  %v4689_v33 = vld [vmem:[%s5922_s4 + $0x28] sm:$0xff] }
 0x1f9   :  { %6368 = vst [vmem:[#allocation108_spill] sm:$0xff] %v4676_v45  ;;  %1344 = vmatpush.msra.mxu3 %v4689_v33  ;;  %v4695_v45 = vld [vmem:[%s5922_s4] sm:$0xff]  ;;  %1410 = vmatpush.msrb.mxu0 %v4142_v55 }
 0x1fa   :  { %6369 = vst [vmem:[#allocation109_spill] sm:$0xff] %v4682_v34  ;;  %1305 = vmatpush.msra.mxu1 %v4695_v45  ;;  %v4701_v34 = vld [vmem:[%s5922_s4 + $0x8] sm:$0xff] }
 0x1fb   :  { %6370 = vst [vmem:[#allocation110_spill] sm:$0xff] %v4689_v33  ;;  %1325 = vmatpush.msra.mxu2 %v4701_v34  ;;  %v4708_v33 = vld [vmem:[%s5922_s4 + $0x10] sm:$0xff]  ;;  %1411 = vmatpush.msrb.mxu0 %v4155_v16 }
 0x1fc   :  { %6371 = vst [vmem:[#allocation111_spill] sm:$0xff] %v4695_v45  ;;  %1428 = vmatpush.msrb.mxu1 %v4122_v18  ;;  %1345 = vmatpush.msra.mxu3 %v4708_v33 }
 0x1fd   :  { %6372 = vst [vmem:[#allocation112_spill] sm:$0xff] %v4701_v34  ;;  %1412 = vmatpush.msrb.mxu0 %v4167_v46 }
 0x1fe   :  { %6373 = vst [vmem:[#allocation113_spill] sm:$0xff] %v4708_v33  ;;  %1429 = vmatpush.msrb.mxu1 %v4135_v27 }
 0x1ff   :  { %1413 = vmatpush.msrb.mxu0 %v4179_v63 }
 0x200   :  { %1430 = vmatpush.msrb.mxu1 %v4148_v35 }
 0x201   :  { %1414 = vmatpush.msrb.mxu0 %v4191_v57 }
 0x202   :  { %1431 = vmatpush.msrb.mxu1 %v4161_v39 }
 0x203   :  { %1415 = vmatpush.msrb.mxu0 %v4203_v25 }
 0x204   :  { %1432 = vmatpush.msrb.mxu1 %v4173_v20 }
 0x205   :  { %1416 = vmatpush.msrb.mxu0 %v4215_v62 }
 0x206   :  { %1433 = vmatpush.msrb.mxu1 %v4185_v12 }
 0x207   :  { %1417 = vmatpush.msrb.mxu0 %v4227_v53  ;;  %v6375_v53 = vld [vmem:[#allocation80_spill] sm:$0xff] }
 0x208   :  { %1434 = vmatpush.msrb.mxu1 %v4197_v3 }
 0x209   :  { %1418 = vmatpush.msrb.mxu0 %v4239_v43  ;;  %v6377_v43 = vld [vmem:[#allocation82_spill] sm:$0xff] }
 0x20a   :  { %1435 = vmatpush.msrb.mxu1 %v4209_v22  ;;  %v6381_v22 = vld [vmem:[#allocation31_spill] sm:$0xff] }
 0x20b   :  { %1419 = vmatpush.msrb.mxu0 %v4251_v26  ;;  %v6379_v26 = vld [vmem:[#allocation9_spill] sm:$0xff] }
 0x20c   :  { %1436 = vmatpush.msrb.mxu1 %v4221_v36  ;;  %v6374_v36 = vld [vmem:[#allocation79_spill] sm:$0xff] }
 0x20d   :  { %1420 = vmatpush.msrb.mxu0 %v4263_v50 }
 0x20e   :  { %1437 = vmatpush.msrb.mxu1 %v4233_v42  ;;  %v6376_v42 = vld [vmem:[#allocation81_spill] sm:$0xff] }
 0x20f   :  { %1421 = vmatpush.msrb.mxu0 %v4275_v17 }
 0x210   :  { %1438 = vmatpush.msrb.mxu1 %v4245_v47  ;;  %v6378_v47 = vld [vmem:[#allocation5_spill] sm:$0xff] }
 0x211   :  { %1422 = vmatpush.msrb.mxu0 %v6374_v36  ;;  %v118_v62 = vadd.f32 %v6379_v26, %v6378_v47 }
 0x212   :  { %1439 = vmatpush.msrb.mxu1 %v4257_v49  ;;  %v6380_v49 = vld [vmem:[#allocation11_spill] sm:$0xff] }
 0x213   :  { %1423 = vmatpush.msrb.mxu0 %v6376_v42  ;;  %v159_v50 = vadd.f32 %v6381_v22, %v6380_v49 }
 0x214   :  { %1440 = vmatpush.msrb.mxu1 %v4269_v59 }
 0x216   :  { %1441 = vmatpush.msrb.mxu1 %v4281_v23 }
 0x218   :  { %1442 = vmatpush.msrb.mxu1 %v6375_v53  ;;  %v6382_v53 = vld [vmem:[#allocation59_spill] sm:$0xff] }
 0x21a   :  { %1443 = vmatpush.msrb.mxu1 %v6377_v43  ;;  %v6383_v43 = vld [vmem:[#allocation69_spill] sm:$0xff] }
 0x24c   :  { %v971_v25 = vpop.f32.mrf.mxu0  ;;  %v991_v59 = vpop.f32.mrf.mxu1 }
 0x24d   :  { %v1014_v3 = vadd.f32 %v971_v25, %v118_v62  ;;  %v1034_v17 = vadd.f32 %v991_v59, %v159_v50 }
 0x24f   :  { %v2515_v57 = vmul.f32 -1.442695, %v1014_v3  ;;  %v2516_v23 = vmul.f32 -1.442695, %v1034_v17 }
 0x251   :  { %2587 = vpow2.f32 %v2515_v57 }
 0x252   :  { %2589 = vpow2.f32 %v2516_v23 }
 0x253   :  { %v1011_v17 = vpop.f32.mrf.mxu2 }
 0x254   :  { %v1099_v36 = vpop.f32.mrf.mxu0  ;;  %v1054_v49 = vadd.f32 %v6331_v15, %v1011_v17 }
 0x255   :  { %v1142_v12 = vadd.f32 %v1099_v36, %v6382_v53  ;;  %v1079_v42 = vpop.f32.mrf.mxu3 }
 0x256   :  { %v1122_v20 = vadd.f32 %v1079_v42, %v6383_v43 }
 0x257   :  { %v2588_v63 = vpop.eup %2587  ;;  %v2518_v46 = vmul.f32 -1.442695, %v1142_v12 }
 0x258   :  { %v2590_v26 = vpop.eup %2589  ;;  %v1018_v47 = vadd.f32 1.0, %v2588_v63  ;;  %v2517_v22 = vmul.f32 -1.442695, %v1122_v20 }
 0x259   :  { %v1038_v33 = vadd.f32 1.0, %v2590_v26  ;;  %2591 = vpow2.f32 %v2518_v46 }
 0x25a   :  { %2593 = vrcp.f32 %v1018_v47  ;;  %v1030_v63 = vand.u32 2147483648, %v1018_v47  ;;  %v1028_v46 = vand.u32 2147483647, %v1018_v47  ;;  %vm1024_vm2 = vweird.f32 %v1018_v47 }
 0x25b   :  { %2595 = vrcp.f32 %v1038_v33  ;;  %v1050_v39 = vand.u32 2147483648, %v1038_v33  ;;  %vm1044_vm6 = vweird.f32 %v1038_v33 }
 0x25c   :  { %2597 = vpow2.f32 %v2517_v22  ;;  %v1031_v22 = vor.u32 1.1754944e-38, %v1030_v63  ;;  %vm1029_vm4 = vcmp.eq.f32.partialorder %v1028_v46, 8.507059e+37 }
 0x25d   :  { %v1051_v46 = vor.u32 1.1754944e-38, %v1050_v39 }
 0x25f   :  { %v2592_v3 = vpop.eup %2591 }
 0x260   :  { %v2594_v25 = vpop.eup %2593  ;;  %v4747_v57 = vadd.f32 1.0, %v2592_v3 }
 0x261   :  { %v2596_v62 = vpop.eup %2595  ;;  %v1020_v50 = vmul.f32 %v2594_v25, %v1018_v47  ;;  %vm1025_vm1 = vweird.f32 %v2594_v25  ;;  %v6384_v47 = vld [vmem:[#allocation56_spill] sm:$0xff] }
 0x262   :  { %v2598_v36 = vpop.eup %2597  ;;  %v1040_v53 = vmul.f32 %v2596_v62, %v1038_v33  ;;  %2599 = vrcp.f32 %v4747_v57  ;;  %vm1026_vm3 = vmor %vm1024_vm2, %vm1025_vm1  ;;  %vm1045_vm5 = vweird.f32 %v2596_v62  ;;  %vm1152_vm14 = vweird.f32 %v4747_v57 }
 0x263   :  { %v1021_v42 = vsub.f32 1.0, %v1020_v50  ;;  %v1126_v12 = vadd.f32 1.0, %v2598_v36  ;;  %vm1046_vm7 = vmor %vm1044_vm6, %vm1045_vm5 }
 0x264   :  { %v1041_v43 = vsub.f32 1.0, %v1040_v53 }
 0x265   :  { %v1022_v59 = vmul.f32 %v2594_v25, %v1021_v42  ;;  %2601 = vrcp.f32 %v1126_v12  ;;  %v1138_v15 = vand.u32 2147483648, %v1126_v12  ;;  %vm1132_vm10 = vweird.f32 %v1126_v12 }
 0x266   :  { %v1042_v20 = vmul.f32 %v2596_v62, %v1041_v43  ;;  %v1048_v43 = vand.u32 2147483647, %v1038_v33 }
 0x267   :  { %v1023_v23 = vadd.f32 %v2594_v25, %v1022_v59  ;;  %v1139_v33 = vor.u32 1.1754944e-38, %v1138_v15  ;;  %v6392_v15 = vld [vmem:[#allocation73_spill] sm:$0xff] }
 0x268   :  { %v2600_v26 = vpop.eup %2599  ;;  %v1043_v36 = vadd.f32 %v2596_v62, %v1042_v20  ;;  %vm1049_vm8 = vcmp.eq.f32.partialorder %v1048_v43, 8.507059e+37  ;;  %v1136_v20 = vand.u32 2147483647, %v1126_v12 }
 0x269   :  { %v1027_v3 = vsel %vm1026_vm3, %v2594_v25, %v1023_v23  ;;  %v1148_v50 = vmul.f32 %v2600_v26, %v4747_v57  ;;  %vm1153_vm13 = vweird.f32 %v2600_v26 }
 0x26a   :  { %v1032_v53 = vsel %vm1029_vm4, %v1031_v22, %v1027_v3  ;;  %v1047_v63 = vsel %vm1046_vm7, %v2596_v62, %v1043_v36  ;;  %v1119_v3 = vpop.f32.mrf.mxu1  ;;  %vm1137_vm12 = vcmp.eq.f32.partialorder %v1136_v20, 8.507059e+37  ;;  %v1158_v36 = vand.u32 2147483648, %v4747_v57  ;;  %vm1154_vm15 = vmor %vm1152_vm14, %vm1153_vm13  ;;  %v6394_v20 = vld [vmem:[#allocation64_spill] sm:$0xff] }
 0x26b   :  { %v2602_v42 = vpop.eup %2601  ;;  %v1055_v16 = vmul.f32 %v1054_v49, %v1032_v53  ;;  %v1149_v55 = vsub.f32 1.0, %v1148_v50  ;;  %v1052_v23 = vsel %vm1049_vm8, %v1051_v46, %v1047_v63 }
 0x26c   :  { %v1128_v35 = vmul.f32 %v2602_v42, %v1126_v12  ;;  %vm1133_vm9 = vweird.f32 %v2602_v42  ;;  %v1058_v53 = vsub.f32 1.0, %v1052_v23  ;;  %v1156_v12 = vand.u32 2147483647, %v4747_v57 }
 0x26d   :  { %v1056_v59 = vadd.f32 %v1055_v16, %v6384_v47  ;;  %v1150_v22 = vmul.f32 %v2600_v26, %v1149_v55  ;;  %vm1134_vm11 = vmor %vm1132_vm10, %vm1133_vm9  ;;  %v1162_v16 = vadd.f32 %v3998_v6, %v1119_v3  ;;  %v1060_v55 = vmul.f32 %v1052_v23, %v4339_v9  ;;  %v6385_v47 = vld [vmem:[#allocation70_spill] sm:$0xff]  ;;  %v6397_v3 = vld [vmem:[#allocation92_spill] sm:$0xff] }
 0x26e   :  { %v1129_v25 = vsub.f32 1.0, %v1128_v35  ;;  %v1159_v63 = vor.u32 1.1754944e-38, %v1158_v36  ;;  %vm1157_vm0 = vcmp.eq.f32.partialorder %v1156_v12, 8.507059e+37  ;;  %v6395_v23 = vld [vmem:[#allocation90_spill] sm:$0xff]  ;;  %v6406_v36 = vld [vmem:[#allocation87_spill] sm:$0xff]  ;;  %v6409_v12 = vld [vmem:[#allocation104_spill] sm:$0xff] }
 0x26f   :  { %2603 = vtanh.f32 %v1056_v59  ;;  %v1151_v39 = vadd.f32 %v2600_v26, %v1150_v22  ;;  %v6396_v22 = vld [vmem:[#allocation85_spill] sm:$0xff]  ;;  %v6420_v9 = vld [vmem:[#allocation24_spill] sm:$0xff] }
 0x270   :  { %v1130_v17 = vmul.f32 %v2602_v42, %v1129_v25 }
 0x271   :  { %v1155_v6 = vsel %vm1154_vm15, %v2600_v26, %v1151_v39  ;;  %v6403_v39 = vld [vmem:[#allocation98_spill] sm:$0xff] }
 0x272   :  { %v1131_v49 = vadd.f32 %v2602_v42, %v1130_v17  ;;  %v6393_v17 = vld [vmem:[#allocation88_spill] sm:$0xff] }
 0x274   :  { %v1135_v27 = vsel %vm1134_vm11, %v2602_v42, %v1131_v49  ;;  %v6398_v49 = vld [vmem:[#allocation52_spill] sm:$0xff] }
 0x275   :  { %v2604_v35 = vpop.eup %2603  ;;  %v1140_v62 = vsel %vm1137_vm12, %v1139_v33, %v1135_v27  ;;  %v1160_v27 = vsel %vm1157_vm0, %v1159_v63, %v1155_v6  ;;  %v6399_v33 = vld [vmem:[#allocation94_spill] sm:$0xff]  ;;  %v6412_v6 = vld [vmem:[#allocation108_spill] sm:$0xff]  ;;  %v6413_v63 = vld [vmem:[#allocation95_spill] sm:$0xff] }
 0x276   :  { %v1059_v50 = vmul.f32 %v2604_v35, %v1058_v53  ;;  %v1163_v43 = vmul.f32 %v1162_v16, %v1140_v62  ;;  %v1166_v57 = vsub.f32 1.0, %v1160_v27  ;;  %v1168_v46 = vmul.f32 %v1160_v27, %v4351_v28  ;;  %v6400_v53 = vld [vmem:[#allocation89_spill] sm:$0xff]  ;;  %v6401_v16 = vld [vmem:[#allocation96_spill] sm:$0xff]  ;;  %v6402_v35 = vld [vmem:[#allocation83_spill] sm:$0xff] }
 0x277   :  { %v6404_v62 = vld [vmem:[#allocation93_spill] sm:$0xff]  ;;  %v6419_v28 = vld [vmem:[#allocation107_spill] sm:$0xff] }
 0x278   :  { %v1164_v42 = vadd.f32 %v1163_v43, %v6385_v47  ;;  %v4759_v59 = vadd.f32 %v1060_v55, %v1059_v50  ;;  %v6405_v50 = vld [vmem:[#allocation100_spill] sm:$0xff]  ;;  %v6407_v43 = vld [vmem:[#allocation102_spill] sm:$0xff]  ;;  %v6408_v55 = vld [vmem:[#allocation97_spill] sm:$0xff] }
 0x279   :  { %v6410_v47 = vld [vmem:[#allocation91_spill] sm:$0xff]  ;;  %v6414_v27 = vld [vmem:[#allocation109_spill] sm:$0xff] }
 0x27a   :  { %6386 = vst [vmem:[#allocation9_spill] sm:$0xff] %v4759_v59  ;;  %2605 = vtanh.f32 %v1164_v42  ;;  %1198 = vmatmul.f32.vlgmr.msrb.gmra.mxu2 %v4759_v59  ;;  %1218 = vmatmul.f32.vlgmr.msrb.gmra.mxu3 %v4759_v59  ;;  %v6411_v42 = vld [vmem:[#allocation101_spill] sm:$0xff] }
 0x27b   :  { %1238 = vmatmul.f32.vlgmr.msra.gmra.mxu0 %v4759_v59  ;;  %1448 = vmatpush.msrb.mxu2 %v4348_v61 }
 0x27c   :  { %1516 = vmatpush.msrb.mxu3 %v4356_v58  ;;  %1536 = vmatpush.msra.mxu0 %v4027_v5 }
 0x27d   :  { %1449 = vmatpush.msrb.mxu2 %v4363_v11 }
 0x27e   :  { %1517 = vmatpush.msrb.mxu3 %v4370_v29  ;;  %1537 = vmatpush.msra.mxu0 %v4035_v32  ;;  %v6388_v32 = vld [vmem:[#allocation75_spill] sm:$0xff] }
 0x27f   :  { %1450 = vmatpush.msrb.mxu2 %v4376_v41 }
 0x280   :  { %v2606_v26 = vpop.eup %2605  ;;  %1518 = vmatpush.msrb.mxu3 %v4389_v51  ;;  %1538 = vmatpush.msra.mxu0 %v4045_v10  ;;  %v6389_v10 = vld [vmem:[#allocation84_spill] sm:$0xff] }
 0x281   :  { %v1167_v25 = vmul.f32 %v2606_v26, %v1166_v57  ;;  %1451 = vmatpush.msrb.mxu2 %v4395_v48  ;;  %v6415_v57 = vld [vmem:[#allocation105_spill] sm:$0xff]  ;;  %v6416_v26 = vld [vmem:[#allocation99_spill] sm:$0xff] }
 0x282   :  { %1519 = vmatpush.msrb.mxu3 %v4422_v30  ;;  %1539 = vmatpush.msra.mxu0 %v4059_v44  ;;  %v6390_v44 = vld [vmem:[#allocation72_spill] sm:$0xff] }
 0x283   :  { %v4777_v5 = vadd.f32 %v1168_v46, %v1167_v25  ;;  %1452 = vmatpush.msrb.mxu2 %v4409_v1  ;;  %v6417_v25 = vld [vmem:[#allocation103_spill] sm:$0xff]  ;;  %v6418_v46 = vld [vmem:[#allocation22_spill] sm:$0xff] }
 0x284   :  { %1520 = vmatpush.msrb.mxu3 %v4441_v56  ;;  %1540 = vmatpush.msra.mxu0 %v4068_v60  ;;  %v6391_v60 = vld [vmem:[#allocation86_spill] sm:$0xff] }
 0x285   :  { %6387 = vst [vmem:[#allocation31_spill] sm:$0xff] %v4777_v5  ;;  %1306 = vmatmul.f32.vlgmr.msra.gmra.mxu1 %v4777_v5  ;;  %1326 = vmatmul.f32.vlgmr.msra.gmra.mxu2 %v4777_v5 }
 0x286   :  { %1346 = vmatmul.f32.vlgmr.msra.gmra.mxu3 %v4777_v5  ;;  %1556 = vmatpush.msra.mxu1 %v4382_v54 }
 0x287   :  { %1453 = vmatpush.msrb.mxu2 %v4428_v7  ;;  %1521 = vmatpush.msrb.mxu3 %v4460_v38 }
 0x288   :  { %1557 = vmatpush.msra.mxu1 %v4401_v52  ;;  %1541 = vmatpush.msra.mxu0 %v4472_v31 }
 0x289   :  { %1454 = vmatpush.msrb.mxu2 %v4447_v8  ;;  %1522 = vmatpush.msrb.mxu3 %v4484_v40 }
 0x28a   :  { %1558 = vmatpush.msra.mxu1 %v4416_v24  ;;  %1542 = vmatpush.msra.mxu0 %v4496_v37 }
 0x28b   :  { %1455 = vmatpush.msrb.mxu2 %v4466_v0  ;;  %1523 = vmatpush.msrb.mxu3 %v4508_v13 }
 0x28c   :  { %1559 = vmatpush.msra.mxu1 %v4435_v2  ;;  %1543 = vmatpush.msra.mxu0 %v4520_v19 }
 0x28d   :  { %1456 = vmatpush.msrb.mxu2 %v6388_v32  ;;  %1524 = vmatpush.msrb.mxu3 %v6389_v10 }
 0x28e   :  { %1560 = vmatpush.msra.mxu1 %v6390_v44  ;;  %1544 = vmatpush.msra.mxu0 %v6391_v60 }
 0x28f   :  { %1457 = vmatpush.msrb.mxu2 %v6392_v15  ;;  %1525 = vmatpush.msrb.mxu3 %v6393_v17 }
 0x290   :  { %1561 = vmatpush.msra.mxu1 %v6394_v20  ;;  %1545 = vmatpush.msra.mxu0 %v6395_v23 }
 0x291   :  { %1458 = vmatpush.msrb.mxu2 %v6396_v22  ;;  %1526 = vmatpush.msrb.mxu3 %v6397_v3 }
 0x292   :  { %1562 = vmatpush.msra.mxu1 %v6398_v49  ;;  %1546 = vmatpush.msra.mxu0 %v6399_v33 }
 0x293   :  { %1459 = vmatpush.msrb.mxu2 %v6400_v53  ;;  %1527 = vmatpush.msrb.mxu3 %v6401_v16 }
 0x294   :  { %1563 = vmatpush.msra.mxu1 %v6402_v35  ;;  %1547 = vmatpush.msra.mxu0 %v6403_v39 }
 0x295   :  { %1460 = vmatpush.msrb.mxu2 %v6404_v62  ;;  %1528 = vmatpush.msrb.mxu3 %v6405_v50 }
 0x296   :  { %1564 = vmatpush.msra.mxu1 %v6406_v36  ;;  %1548 = vmatpush.msra.mxu0 %v6407_v43 }
 0x297   :  { %1461 = vmatpush.msrb.mxu2 %v6408_v55  ;;  %1529 = vmatpush.msrb.mxu3 %v6409_v12 }
 0x298   :  { %1565 = vmatpush.msra.mxu1 %v6410_v47  ;;  %1549 = vmatpush.msra.mxu0 %v4664_v4  ;;  %v6453_v4 = vld [vmem:[#allocation48_spill] sm:$0xff] }
 0x299   :  { %1462 = vmatpush.msrb.mxu2 %v6411_v42  ;;  %1530 = vmatpush.msrb.mxu3 %v6412_v6  ;;  %v6423_v6 = vld [vmem:[#allocation33_spill] sm:$0xff] }
 0x29a   :  { %1566 = vmatpush.msra.mxu1 %v6413_v63  ;;  %1550 = vmatpush.msra.mxu0 %v6414_v27  ;;  %v6421_v27 = vld [vmem:[#allocation30_spill] sm:$0xff] }
 0x29b   :  { %1463 = vmatpush.msrb.mxu2 %v6415_v57  ;;  %1531 = vmatpush.msrb.mxu3 %v4695_v45  ;;  %v6422_v45 = vld [vmem:[#allocation110_spill] sm:$0xff] }
 0x29c   :  { %1567 = vmatpush.msra.mxu1 %v6416_v26  ;;  %1551 = vmatpush.msra.mxu0 %v4701_v34  ;;  %v6424_v34 = vld [vmem:[#allocation35_spill] sm:$0xff] }
 0x29d   :  { %1634 = vmatpush.msra.mxu2 %v4113_v14  ;;  %1654 = vmatpush.msra.mxu3 %v4122_v18  ;;  %v6425_v14 = vld [vmem:[#allocation113_spill] sm:$0xff]  ;;  %v6426_v18 = vld [vmem:[#allocation38_spill] sm:$0xff] }
 0x29e   :  { %1568 = vmatpush.msra.mxu1 %v6417_v25  ;;  %v6427_v25 = vld [vmem:[#allocation25_spill] sm:$0xff] }
 0x29f   :  { %1635 = vmatpush.msra.mxu2 %v4129_v21  ;;  %1655 = vmatpush.msra.mxu3 %v6418_v46  ;;  %v6428_v21 = vld [vmem:[#allocation37_spill] sm:$0xff]  ;;  %v6429_v46 = vld [vmem:[#allocation42_spill] sm:$0xff] }
 0x2a0   :  { %1569 = vmatpush.msra.mxu1 %v6419_v28  ;;  %v6430_v28 = vld [vmem:[#allocation20_spill] sm:$0xff] }
 0x2a1   :  { %1636 = vmatpush.msra.mxu2 %v6420_v9  ;;  %1656 = vmatpush.msra.mxu3 %v6421_v27  ;;  %v6431_v9 = vld [vmem:[#allocation28_spill] sm:$0xff]  ;;  %v6432_v27 = vld [vmem:[#allocation39_spill] sm:$0xff] }
 0x2a2   :  { %1570 = vmatpush.msra.mxu1 %v6422_v45  ;;  %v6433_v45 = vld [vmem:[#allocation43_spill] sm:$0xff] }
 0x2a3   :  { %1637 = vmatpush.msra.mxu2 %v6423_v6  ;;  %1657 = vmatpush.msra.mxu3 %v6424_v34  ;;  %v6434_v6 = vld [vmem:[#allocation23_spill] sm:$0xff]  ;;  %v6435_v34 = vld [vmem:[#allocation32_spill] sm:$0xff] }
 0x2a4   :  { %1571 = vmatpush.msra.mxu1 %v6425_v14  ;;  %v6436_v14 = vld [vmem:[#allocation40_spill] sm:$0xff] }
 0x2a5   :  { %1638 = vmatpush.msra.mxu2 %v6426_v18  ;;  %1658 = vmatpush.msra.mxu3 %v6427_v25  ;;  %v6437_v18 = vld [vmem:[#allocation26_spill] sm:$0xff] }
 0x2a6   :  { %v6438_v25 = vld [vmem:[#allocation34_spill] sm:$0xff] }
 0x2a7   :  { %1639 = vmatpush.msra.mxu2 %v6428_v21  ;;  %1659 = vmatpush.msra.mxu3 %v6429_v46  ;;  %v6439_v21 = vld [vmem:[#allocation41_spill] sm:$0xff] }
 0x2a8   :  { %v6440_v46 = vld [vmem:[#allocation29_spill] sm:$0xff] }
 0x2a9   :  { %1640 = vmatpush.msra.mxu2 %v6430_v28  ;;  %1660 = vmatpush.msra.mxu3 %v6431_v9  ;;  %v6441_v28 = vld [vmem:[#allocation44_spill] sm:$0xff]  ;;  %v6442_v9 = vld [vmem:[#allocation45_spill] sm:$0xff] }
 0x2ab   :  { %1641 = vmatpush.msra.mxu2 %v6432_v27  ;;  %1661 = vmatpush.msra.mxu3 %v6433_v45  ;;  %v6443_v27 = vld [vmem:[#allocation46_spill] sm:$0xff]  ;;  %v6444_v45 = vld [vmem:[#allocation77_spill] sm:$0xff] }
 0x2ad   :  { %1642 = vmatpush.msra.mxu2 %v6434_v6  ;;  %1662 = vmatpush.msra.mxu3 %v6435_v34  ;;  %v6445_v6 = vld [vmem:[#allocation78_spill] sm:$0xff]  ;;  %v6446_v34 = vld [vmem:[#allocation79_spill] sm:$0xff] }
 0x2af   :  { %1643 = vmatpush.msra.mxu2 %v6436_v14  ;;  %1663 = vmatpush.msra.mxu3 %v6437_v18  ;;  %v6447_v14 = vld [vmem:[#allocation80_spill] sm:$0xff]  ;;  %v6448_v18 = vld [vmem:[#allocation81_spill] sm:$0xff] }
 0x2b1   :  { %1644 = vmatpush.msra.mxu2 %v6438_v25  ;;  %1664 = vmatpush.msra.mxu3 %v6439_v21  ;;  %v6449_v25 = vld [vmem:[#allocation82_spill] sm:$0xff]  ;;  %v6450_v21 = vld [vmem:[#allocation5_spill] sm:$0xff] }
 0x2b3   :  { %1645 = vmatpush.msra.mxu2 %v6440_v46  ;;  %1665 = vmatpush.msra.mxu3 %v6441_v28  ;;  %v6451_v46 = vld [vmem:[#allocation47_spill] sm:$0xff] }
 0x2b4   :  { %v121_v57 = vadd.f32 %v6451_v46, %v6450_v21  ;;  %v6452_v28 = vld [vmem:[#allocation11_spill] sm:$0xff] }
 0x2b5   :  { %1646 = vmatpush.msra.mxu2 %v6442_v9  ;;  %1666 = vmatpush.msra.mxu3 %v6443_v27  ;;  %v162_v9 = vadd.f32 %v6453_v4, %v6452_v28  ;;  %v6455_v21 = vld [vmem:[#allocation55_spill] sm:$0xff] }
 0x2b7   :  { %1647 = vmatpush.msra.mxu2 %v6444_v45  ;;  %1667 = vmatpush.msra.mxu3 %v6445_v6 }
 0x2b9   :  { %1648 = vmatpush.msra.mxu2 %v6446_v34  ;;  %1668 = vmatpush.msra.mxu3 %v6447_v14  ;;  %v6454_v14 = vld [vmem:[#allocation66_spill] sm:$0xff] }
 0x2bb   :  { %1649 = vmatpush.msra.mxu2 %v6448_v18  ;;  %1669 = vmatpush.msra.mxu3 %v6449_v25 }
 0x2f8   :  { %v1239_v28 = vpop.f32.mrf.mxu0 }
 0x2fd   :  { %v1199_v12 = vpop.f32.mrf.mxu2  ;;  %v1219_v27 = vpop.f32.mrf.mxu3 }
 0x2fe   :  { %v1242_v26 = vadd.f32 %v1199_v12, %v121_v57  ;;  %v1262_v45 = vadd.f32 %v1219_v27, %v162_v9 }
 0x300   :  { %v2519_v42 = vmul.f32 -1.442695, %v1242_v26  ;;  %v2520_v6 = vmul.f32 -1.442695, %v1262_v45 }
 0x302   :  { %2607 = vpow2.f32 %v2519_v42  ;;  %v1307_v34 = vpop.f32.mrf.mxu1 }
 0x303   :  { %2609 = vpow2.f32 %v2520_v6  ;;  %v1350_v43 = vadd.f32 %v1307_v34, %v6454_v14 }
 0x305   :  { %v2521_v18 = vmul.f32 -1.442695, %v1350_v43 }
 0x307   :  { %2611 = vpow2.f32 %v2521_v18 }
 0x308   :  { %v2608_v25 = vpop.eup %2607  ;;  %v1327_v50 = vpop.f32.mrf.mxu2 }
 0x309   :  { %v2610_v63 = vpop.eup %2609  ;;  %v1246_v46 = vadd.f32 1.0, %v2608_v25  ;;  %v1370_v55 = vadd.f32 %v1327_v50, %v6455_v21 }
 0x30a   :  { %v1266_v4 = vadd.f32 1.0, %v2610_v63 }
 0x30b   :  { %2613 = vrcp.f32 %v1246_v46  ;;  %v2522_v57 = vmul.f32 -1.442695, %v1370_v55  ;;  %v1256_v34 = vand.u32 2147483647, %v1246_v46  ;;  %v1258_v14 = vand.u32 2147483648, %v1246_v46 }
 0x30c   :  { %2615 = vrcp.f32 %v1266_v4  ;;  %vm1252_vm2 = vweird.f32 %v1246_v46  ;;  %vm1272_vm7 = vweird.f32 %v1266_v4  ;;  %v1278_v33 = vand.u32 2147483648, %v1266_v4 }
 0x30d   :  { %v2612_v12 = vpop.eup %2611  ;;  %2617 = vpow2.f32 %v2522_v57  ;;  %vm1257_vm4 = vcmp.eq.f32.partialorder %v1256_v34, 8.507059e+37 }
 0x30e   :  { %v1354_v26 = vadd.f32 1.0, %v2612_v12  ;;  %v4875_v12 = vld [vmem:[%s5923_s5] ss:$0 sm:$0xff] }
 0x30f   :  { %6456 = vst [vmem:[#allocation59_spill] sm:$0xff] %v4875_v12  ;;  %v1282_v57 = vadd.f32 %v4875_v12, %v1239_v28  ;;  %v1276_v28 = vand.u32 2147483647, %v1266_v4 }
 0x310   :  { %2619 = vrcp.f32 %v1354_v26  ;;  %vm1360_vm9 = vweird.f32 %v1354_v26 }
 0x311   :  { %v2614_v42 = vpop.eup %2613  ;;  %vm1277_vm12 = vcmp.eq.f32.partialorder %v1276_v28, 8.507059e+37 }
 0x312   :  { %v2616_v9 = vpop.eup %2615  ;;  %v1248_v27 = vmul.f32 %v2614_v42, %v1246_v46  ;;  %vm1253_vm1 = vweird.f32 %v2614_v42 }
 0x313   :  { %v1268_v45 = vmul.f32 %v2616_v9, %v1266_v4  ;;  %v2618_v6 = vpop.eup %2617  ;;  %vm1254_vm3 = vmor %vm1252_vm2, %vm1253_vm1  ;;  %vm1273_vm5 = vweird.f32 %v2616_v9 }
 0x314   :  { %v1249_v43 = vsub.f32 1.0, %v1248_v27  ;;  %v1374_v63 = vadd.f32 1.0, %v2618_v6  ;;  %v1259_v27 = vor.u32 1.1754944e-38, %v1258_v14  ;;  %v1366_v6 = vand.u32 2147483648, %v1354_v26  ;;  %vm4878_vm8 = vmor %vm1272_vm7, %vm1273_vm5 }
 0x315   :  { %v1269_v18 = vsub.f32 1.0, %v1268_v45 }
 0x316   :  { %v2620_v25 = vpop.eup %2619  ;;  %v1250_v50 = vmul.f32 %v2614_v42, %v1249_v43  ;;  %2621 = vrcp.f32 %v1374_v63  ;;  %v1364_v43 = vand.u32 2147483647, %v1354_v26  ;;  %v1384_v53 = vand.u32 2147483647, %v1374_v63 }
 0x317   :  { %v1270_v21 = vmul.f32 %v2616_v9, %v1269_v18  ;;  %v1356_v39 = vmul.f32 %v2620_v25, %v1354_v26  ;;  %vm1361_vm6 = vweird.f32 %v2620_v25  ;;  %vm1380_vm14 = vweird.f32 %v1374_v63 }
 0x318   :  { %v1251_v55 = vadd.f32 %v2614_v42, %v1250_v50  ;;  %v1347_v50 = vpop.f32.mrf.mxu3  ;;  %vm1362_vm10 = vmor %vm1360_vm9, %vm1361_vm6  ;;  %vm1365_vm11 = vcmp.eq.f32.partialorder %v1364_v43, 8.507059e+37  ;;  %vm1385_vm0 = vcmp.eq.f32.partialorder %v1384_v53, 8.507059e+37  ;;  %v4904_v53 = vld [vmem:[%s5922_s4 + $0x170] sm:$0xff] }
 0x319   :  { %v1357_v45 = vsub.f32 1.0, %v1356_v39  ;;  %v1271_v47 = vadd.f32 %v2616_v9, %v1270_v21  ;;  %v6460_v21 = vld [vmem:[#allocation61_spill] sm:$0xff] }
 0x31a   :  { %v1255_v16 = vsel %vm1254_vm3, %v2614_v42, %v1251_v55  ;;  %v1367_v42 = vor.u32 1.1754944e-38, %v1366_v6 }
 0x31b   :  { %v1260_v18 = vsel %vm1257_vm4, %v1259_v27, %v1255_v16  ;;  %v1358_v46 = vmul.f32 %v2620_v25, %v1357_v45  ;;  %v4885_v16 = vld [vmem:[%s5925_s6] ss:$0 sm:$0xff]  ;;  %v1275_v4 = vsel %vm4878_vm8, %v2616_v9, %v1271_v47  ;;  %v1279_v45 = vor.u32 1.1754944e-38, %v1278_v33 }
 0x31c   :  { %v1283_v62 = vmul.f32 %v1282_v57, %v1260_v18  ;;  %v2622_v39 = vpop.eup %2621  ;;  %6459 = vst [vmem:[#allocation69_spill] sm:$0xff] %v4885_v16  ;;  %v1390_v14 = vadd.f32 %v4885_v16, %v1347_v50  ;;  %v6461_v50 = vld [vmem:[#allocation67_spill] sm:$0xff] }
 0x31d   :  { %v1359_v34 = vadd.f32 %v2620_v25, %v1358_v46  ;;  %v1376_v57 = vmul.f32 %v2622_v39, %v1374_v63  ;;  %v1386_v46 = vand.u32 2147483648, %v1374_v63  ;;  %v1280_v12 = vsel %vm1277_vm12, %v1279_v45, %v1275_v4  ;;  %v5062_v4 = vld [vmem:[%s5921_s3 + $0xf8] sm:$0xff] }
 0x31e   :  { %v1284_v55 = vadd.f32 %v1283_v62, %v6460_v21  ;;  %vm1381_vm13 = vweird.f32 %v2622_v39  ;;  %v1288_v9 = vmul.f32 %v1280_v12, %v4759_v59  ;;  %v5038_v21 = vld [vmem:[%s5921_s3 + $0x128] sm:$0xff]  ;;  %v5068_v45 = vld [vmem:[%s5921_s3 + $0xd8] sm:$0xff] }
 0x31f   :  { %v1363_v27 = vsel %vm1362_vm10, %v2620_v25, %v1359_v34  ;;  %v1377_v6 = vsub.f32 1.0, %v1376_v57  ;;  %v1286_v25 = vsub.f32 1.0, %v1280_v12  ;;  %vm1382_vm15 = vmor %vm1380_vm14, %vm1381_vm13  ;;  %v1387_v3 = vor.u32 1.1754944e-38, %v1386_v46  ;;  %v5050_v57 = vld [vmem:[%s5921_s3 + $0x110] sm:$0xff]  ;;  %v5092_v46 = vld [vmem:[%s5921_s3 + $0xa8] sm:$0xff] }
 0x320   :  { %v1368_v26 = vsel %vm1365_vm11, %v1367_v42, %v1363_v27  ;;  %2623 = vtanh.f32 %v1284_v55  ;;  %v5044_v55 = vld [vmem:[%s5921_s3 + $0x108] sm:$0xff]  ;;  %v5056_v27 = vld [vmem:[%s5921_s3 + $0xf0] sm:$0xff] }
 0x321   :  { %v1391_v18 = vmul.f32 %v1390_v14, %v1368_v26  ;;  %v1378_v36 = vmul.f32 %v2622_v39, %v1377_v6  ;;  %v5074_v26 = vld [vmem:[%s5921_s3 + $0xe0] sm:$0xff] }
 0x322   :  { %v5080_v6 = vld [vmem:[%s5921_s3 + $0xc0] sm:$0xff] }
 0x323   :  { %v1392_v16 = vadd.f32 %v1391_v18, %v6461_v50  ;;  %v1379_v62 = vadd.f32 %v2622_v39, %v1378_v36  ;;  %v5086_v18 = vld [vmem:[%s5921_s3 + $0xc8] sm:$0xff]  ;;  %v5098_v50 = vld [vmem:[%s5921_s3 + $0xb0] sm:$0xff] }
 0x325   :  { %2625 = vtanh.f32 %v1392_v16  ;;  %v1383_v33 = vsel %vm1382_vm15, %v2622_v39, %v1379_v62  ;;  %v4914_v39 = vld [vmem:[%s5922_s4 + $0x158] sm:$0xff]  ;;  %v5032_v16 = vld [vmem:[%s5921_s3 + $0x120] sm:$0xff]  ;;  %v5104_v62 = vld [vmem:[%s5921_s3 + $0x90] sm:$0xff] }
 0x326   :  { %v2624_v43 = vpop.eup %2623  ;;  %v1388_v28 = vsel %vm1385_vm0, %v1387_v3, %v1383_v33  ;;  %v5122_v3 = vld [vmem:[%s5921_s3 + $0x80] sm:$0xff] }
 0x327   :  { %v1287_v47 = vmul.f32 %v2624_v43, %v1286_v25  ;;  %v1394_v42 = vsub.f32 1.0, %v1388_v28  ;;  %v1396_v63 = vmul.f32 %v1388_v28, %v4777_v5  ;;  %v5110_v25 = vld [vmem:[%s5921_s3 + $0x98] sm:$0xff]  ;;  %v5128_v33 = vld [vmem:[%s5921_s3 + $0x60] sm:$0xff]  ;;  %v5146_v28 = vld [vmem:[%s5921_s3 + $0x50] sm:$0xff] }
 0x328   :  { %v5116_v43 = vld [vmem:[%s5921_s3 + $0x78] sm:$0xff] }
 0x329   :  { %v4893_v34 = vadd.f32 %v1288_v9, %v1287_v47  ;;  %v5134_v47 = vld [vmem:[%s5921_s3 + $0x68] sm:$0xff] }
 0x32a   :  { %v5140_v9 = vld [vmem:[%s5921_s3 + $0x48] sm:$0xff] }
 0x32b   :  { %6462 = vst [vmem:[#allocation56_spill] sm:$0xff] %v4893_v34  ;;  %v2626_v14 = vpop.eup %2625  ;;  %1424 = vmatmul.f32.vlgmr.msrb.gmra.mxu0 %v4893_v34  ;;  %1444 = vmatmul.f32.vlgmr.msrb.gmra.mxu1 %v4893_v34 }
 0x32c   :  { %v1395_v36 = vmul.f32 %v2626_v14, %v1394_v42  ;;  %1464 = vmatmul.f32.vlgmr.msrb.gmra.mxu2 %v4893_v34  ;;  %1674 = vmatpush.msrb.mxu0 %v4348_v61  ;;  %v4925_v61 = vld [vmem:[%s5922_s4 + $0x140] sm:$0xff]  ;;  %v5152_v42 = vld [vmem:[%s5921_s3 + $0x30] sm:$0xff]  ;;  %v5158_v14 = vld [vmem:[%s5921_s3 + $0x38] sm:$0xff] }
 0x32d   :  { %1742 = vmatpush.msrb.mxu1 %v4356_v58  ;;  %1762 = vmatpush.msrb.mxu2 %v4904_v53  ;;  %v4936_v58 = vld [vmem:[%s5922_s4 + $0x128] sm:$0xff] }
 0x32e   :  { %v4907_v12 = vadd.f32 %v1396_v63, %v1395_v36  ;;  %1675 = vmatpush.msrb.mxu0 %v4363_v11  ;;  %v4945_v11 = vld [vmem:[%s5922_s4 + $0x110] sm:$0xff]  ;;  %v5164_v36 = vld [vmem:[%s5921_s3 + $0x18] sm:$0xff]  ;;  %v5170_v63 = vld [vmem:[%s5921_s3 + $0x20] sm:$0xff] }
 0x32f   :  { %1743 = vmatpush.msrb.mxu1 %v4370_v29  ;;  %1763 = vmatpush.msrb.mxu2 %v4914_v39  ;;  %v6464_v29 = vld [vmem:[#allocation89_spill] sm:$0xff] }
 0x330   :  { %6463 = vst [vmem:[#allocation70_spill] sm:$0xff] %v4907_v12  ;;  %1532 = vmatmul.f32.vlgmr.msrb.gmra.mxu3 %v4907_v12  ;;  %1676 = vmatpush.msrb.mxu0 %v4376_v41  ;;  %v6466_v41 = vld [vmem:[#allocation92_spill] sm:$0xff] }
 0x331   :  { %1782 = vmatpush.msrb.mxu3 %v4382_v54  ;;  %1744 = vmatpush.msrb.mxu1 %v4389_v51  ;;  %v6467_v54 = vld [vmem:[#allocation94_spill] sm:$0xff]  ;;  %v6468_v51 = vld [vmem:[#allocation93_spill] sm:$0xff] }
 0x332   :  { %1677 = vmatpush.msrb.mxu0 %v4395_v48  ;;  %1764 = vmatpush.msrb.mxu2 %v4925_v61  ;;  %v6469_v48 = vld [vmem:[#allocation91_spill] sm:$0xff] }
 0x333   :  { %1552 = vmatmul.f32.vlgmr.msra.gmra.mxu0 %v4907_v12  ;;  %1572 = vmatmul.f32.vlgmr.msra.gmra.mxu1 %v4907_v12 }
 0x334   :  { %1678 = vmatpush.msrb.mxu0 %v4409_v1  ;;  %1783 = vmatpush.msrb.mxu3 %v4401_v52  ;;  %v6470_v52 = vld [vmem:[#allocation96_spill] sm:$0xff]  ;;  %v6471_v1 = vld [vmem:[#allocation98_spill] sm:$0xff] }
 0x335   :  { %1745 = vmatpush.msrb.mxu1 %v4422_v30  ;;  %1765 = vmatpush.msrb.mxu2 %v4936_v58  ;;  %v6473_v30 = vld [vmem:[#allocation95_spill] sm:$0xff] }
 0x336   :  { %1679 = vmatpush.msrb.mxu0 %v4428_v7  ;;  %1784 = vmatpush.msrb.mxu3 %v4416_v24  ;;  %v6472_v24 = vld [vmem:[#allocation97_spill] sm:$0xff]  ;;  %v6474_v7 = vld [vmem:[#allocation100_spill] sm:$0xff] }
 0x337   :  { %1746 = vmatpush.msrb.mxu1 %v4441_v56  ;;  %1766 = vmatpush.msrb.mxu2 %v4945_v11  ;;  %v6476_v56 = vld [vmem:[#allocation101_spill] sm:$0xff] }
 0x338   :  { %1680 = vmatpush.msrb.mxu0 %v4447_v8  ;;  %1785 = vmatpush.msrb.mxu3 %v4435_v2  ;;  %v6475_v2 = vld [vmem:[#allocation102_spill] sm:$0xff]  ;;  %v6477_v8 = vld [vmem:[#allocation99_spill] sm:$0xff] }
 0x339   :  { %1747 = vmatpush.msrb.mxu1 %v4460_v38  ;;  %1767 = vmatpush.msrb.mxu2 %v4472_v31  ;;  %v6478_v38 = vld [vmem:[#allocation104_spill] sm:$0xff]  ;;  %v6480_v31 = vld [vmem:[#allocation105_spill] sm:$0xff] }
 0x33a   :  { %1681 = vmatpush.msrb.mxu0 %v4466_v0  ;;  %1786 = vmatpush.msrb.mxu3 %v6390_v44  ;;  %v6479_v0 = vld [vmem:[#allocation106_spill] sm:$0xff]  ;;  %v6485_v44 = vld [vmem:[#allocation111_spill] sm:$0xff] }
 0x33b   :  { %1748 = vmatpush.msrb.mxu1 %v4484_v40  ;;  %1768 = vmatpush.msrb.mxu2 %v4496_v37  ;;  %v6482_v40 = vld [vmem:[#allocation108_spill] sm:$0xff]  ;;  %v6483_v37 = vld [vmem:[#allocation109_spill] sm:$0xff] }
 0x33c   :  { %1682 = vmatpush.msrb.mxu0 %v6388_v32  ;;  %1787 = vmatpush.msrb.mxu3 %v6394_v20  ;;  %v6484_v32 = vld [vmem:[#allocation107_spill] sm:$0xff] }
 0x33d   :  { %1749 = vmatpush.msrb.mxu1 %v4508_v13  ;;  %1769 = vmatpush.msrb.mxu2 %v4520_v19  ;;  %v6465_v13 = vld [vmem:[#allocation87_spill] sm:$0xff] }
 0x33e   :  { %1683 = vmatpush.msrb.mxu0 %v6392_v15  ;;  %1788 = vmatpush.msrb.mxu3 %v6398_v49  ;;  %v6481_v19 = vld [vmem:[#allocation103_spill] sm:$0xff]  ;;  %v6487_v15 = vld [vmem:[#allocation110_spill] sm:$0xff]  ;;  %v5020_v49 = vld [vmem:[%s5921_s3 + $0x138] sm:$0xff] }
 0x33f   :  { %1750 = vmatpush.msrb.mxu1 %v6389_v10  ;;  %1770 = vmatpush.msrb.mxu2 %v6391_v60  ;;  %v4992_v10 = vld [vmem:[%s5921_s3 + $0x168] sm:$0xff]  ;;  %v6486_v60 = vld [vmem:[#allocation112_spill] sm:$0xff]  ;;  %v5007_v20 = vld [vmem:[%s5921_s3 + $0x150] sm:$0xff] }
 0x340   :  { %1684 = vmatpush.msrb.mxu0 %v6396_v22  ;;  %1789 = vmatpush.msrb.mxu3 %v6402_v35  ;;  %v5014_v22 = vld [vmem:[%s5921_s3 + $0x158] sm:$0xff]  ;;  %v5026_v35 = vld [vmem:[%s5921_s3 + $0x140] sm:$0xff] }
 0x341   :  { %1751 = vmatpush.msrb.mxu1 %v6393_v17  ;;  %1771 = vmatpush.msrb.mxu2 %v6395_v23  ;;  %v5001_v17 = vld [vmem:[%s5921_s3 + $0x170] sm:$0xff]  ;;  %v6488_v23 = vld [vmem:[#allocation113_spill] sm:$0xff] }
 0x342   :  { %1685 = vmatpush.msrb.mxu0 %v6464_v29  ;;  %1790 = vmatpush.msrb.mxu3 %v6465_v13  ;;  %v5176_v29 = vld [vmem:[%s5921_s3] sm:$0xff]  ;;  %v5182_v13 = vld [vmem:[%s5921_s3 + $0x8] sm:$0xff] }
 0x343   :  { %1752 = vmatpush.msrb.mxu1 %v6466_v41  ;;  %1772 = vmatpush.msrb.mxu2 %v6467_v54  ;;  %6489 = vst [vmem:[#allocation75_spill] sm:$0xff] %v5182_v13  ;;  %v6490_v41 = vld [vmem:[#allocation5_spill] sm:$0xff]  ;;  %v6491_v54 = vld [vmem:[#allocation50_spill] sm:$0xff] }
 0x344   :  { %1686 = vmatpush.msrb.mxu0 %v6468_v51  ;;  %1791 = vmatpush.msrb.mxu3 %v6469_v48  ;;  %v124_v51 = vadd.f32 %v6491_v54, %v6490_v41  ;;  %v6492_v48 = vld [vmem:[#allocation11_spill] sm:$0xff] }
 0x345   :  { %1753 = vmatpush.msrb.mxu1 %v6470_v52  ;;  %1773 = vmatpush.msrb.mxu2 %v6471_v1  ;;  %v6493_v52 = vld [vmem:[#allocation51_spill] sm:$0xff] }
 0x346   :  { %1687 = vmatpush.msrb.mxu0 %v6472_v24  ;;  %1792 = vmatpush.msrb.mxu3 %v6473_v30  ;;  %v165_v1 = vadd.f32 %v6493_v52, %v6492_v48 }
 0x347   :  { %1754 = vmatpush.msrb.mxu1 %v6474_v7  ;;  %1774 = vmatpush.msrb.mxu2 %v6475_v2 }
 0x348   :  { %1688 = vmatpush.msrb.mxu0 %v6476_v56  ;;  %1793 = vmatpush.msrb.mxu3 %v6477_v8 }
 0x349   :  { %1755 = vmatpush.msrb.mxu1 %v6478_v38  ;;  %1775 = vmatpush.msrb.mxu2 %v6479_v0  ;;  %v6494_v0 = vld [vmem:[#allocation18_spill] sm:$0xff] }
 0x34a   :  { %1689 = vmatpush.msrb.mxu0 %v6480_v31  ;;  %1794 = vmatpush.msrb.mxu3 %v6481_v19 }
 0x34b   :  { %1756 = vmatpush.msrb.mxu1 %v6482_v40  ;;  %1776 = vmatpush.msrb.mxu2 %v6483_v37 }
 0x34c   :  { %1795 = vmatpush.msrb.mxu3 %v6484_v32  ;;  %1860 = vmatpush.msra.mxu0 %v4992_v10 }
 0x34d   :  { %1757 = vmatpush.msrb.mxu1 %v6485_v44  ;;  %1777 = vmatpush.msrb.mxu2 %v6486_v60  ;;  %v6495_v60 = vld [vmem:[#allocation62_spill] sm:$0xff] }
 0x34e   :  { %1796 = vmatpush.msrb.mxu3 %v6487_v15  ;;  %1861 = vmatpush.msra.mxu0 %v5007_v20 }
 0x34f   :  { %1880 = vmatpush.msra.mxu1 %v5001_v17 }
 0x350   :  { %1797 = vmatpush.msrb.mxu3 %v6488_v23  ;;  %1862 = vmatpush.msra.mxu0 %v5020_v49 }
 0x351   :  { %1881 = vmatpush.msra.mxu1 %v5014_v22 }
 0x352   :  { %1863 = vmatpush.msra.mxu0 %v5032_v16 }
 0x353   :  { %1882 = vmatpush.msra.mxu1 %v5026_v35 }
 0x354   :  { %1864 = vmatpush.msra.mxu0 %v5044_v55 }
 0x355   :  { %1883 = vmatpush.msra.mxu1 %v5038_v21 }
 0x356   :  { %1865 = vmatpush.msra.mxu0 %v5056_v27 }
 0x357   :  { %1884 = vmatpush.msra.mxu1 %v5050_v57 }
 0x358   :  { %1866 = vmatpush.msra.mxu0 %v5068_v45 }
 0x359   :  { %1885 = vmatpush.msra.mxu1 %v5062_v4 }
 0x35a   :  { %1867 = vmatpush.msra.mxu0 %v5080_v6 }
 0x35b   :  { %1886 = vmatpush.msra.mxu1 %v5074_v26 }
 0x35c   :  { %1868 = vmatpush.msra.mxu0 %v5092_v46 }
 0x35d   :  { %1887 = vmatpush.msra.mxu1 %v5086_v18 }
 0x35e   :  { %1869 = vmatpush.msra.mxu0 %v5104_v62 }
 0x35f   :  { %1888 = vmatpush.msra.mxu1 %v5098_v50 }
 0x360   :  { %1870 = vmatpush.msra.mxu0 %v5116_v43 }
 0x361   :  { %1889 = vmatpush.msra.mxu1 %v5110_v25 }
 0x362   :  { %1871 = vmatpush.msra.mxu0 %v5128_v33 }
 0x363   :  { %1890 = vmatpush.msra.mxu1 %v5122_v3 }
 0x364   :  { %1872 = vmatpush.msra.mxu0 %v5140_v9 }
 0x365   :  { %1891 = vmatpush.msra.mxu1 %v5134_v47 }
 0x366   :  { %1873 = vmatpush.msra.mxu0 %v5152_v42 }
 0x367   :  { %1892 = vmatpush.msra.mxu1 %v5146_v28 }
 0x368   :  { %1874 = vmatpush.msra.mxu0 %v5164_v36 }
 0x369   :  { %1893 = vmatpush.msra.mxu1 %v5158_v14 }
 0x36a   :  { %1875 = vmatpush.msra.mxu0 %v5176_v29 }
 0x36b   :  { %1894 = vmatpush.msra.mxu1 %v5170_v63 }
 0x36d   :  { %1895 = vmatpush.msra.mxu1 %v5182_v13 }
 0x3a8   :  { %v1425_v24 = vpop.f32.mrf.mxu0  ;;  %v1445_v30 = vpop.f32.mrf.mxu1 }
 0x3a9   :  { %v1468_v7 = vadd.f32 %v1425_v24, %v124_v51  ;;  %v1488_v2 = vadd.f32 %v1445_v30, %v165_v1 }
 0x3ab   :  { %v2523_v56 = vmul.f32 -1.442695, %v1468_v7  ;;  %v2524_v8 = vmul.f32 -1.442695, %v1488_v2 }
 0x3ad   :  { %2627 = vpow2.f32 %v2523_v56 }
 0x3ae   :  { %2629 = vpow2.f32 %v2524_v8 }
 0x3b0   :  { %v1553_v38 = vpop.f32.mrf.mxu0 }
 0x3b1   :  { %v1596_v31 = vadd.f32 %v1553_v38, %v6494_v0 }
 0x3b3   :  { %v2628_v19 = vpop.eup %2627  ;;  %v1533_v40 = vpop.f32.mrf.mxu3  ;;  %v2526_v37 = vmul.f32 -1.442695, %v1596_v31 }
 0x3b4   :  { %v2630_v32 = vpop.eup %2629  ;;  %v1472_v44 = vadd.f32 1.0, %v2628_v19  ;;  %v1576_v15 = vadd.f32 %v1533_v40, %v6495_v60  ;;  %v1465_v19 = vpop.f32.mrf.mxu2 }
 0x3b5   :  { %v1492_v23 = vadd.f32 1.0, %v2630_v32  ;;  %2631 = vpow2.f32 %v2526_v37 }
 0x3b6   :  { %2633 = vrcp.f32 %v1472_v44  ;;  %v2525_v41 = vmul.f32 -1.442695, %v1576_v15  ;;  %v1484_v56 = vand.u32 2147483648, %v1472_v44  ;;  %v1482_v38 = vand.u32 2147483647, %v1472_v44  ;;  %v6496_v15 = vld [vmem:[#allocation59_spill] sm:$0xff] }
 0x3b7   :  { %2635 = vrcp.f32 %v1492_v23  ;;  %vm1478_vm2 = vweird.f32 %v1472_v44  ;;  %vm1498_vm6 = vweird.f32 %v1492_v23 }
 0x3b8   :  { %2637 = vpow2.f32 %v2525_v41  ;;  %v1485_v32 = vor.u32 1.1754944e-38, %v1484_v56  ;;  %vm1483_vm4 = vcmp.eq.f32.partialorder %v1482_v38, 8.507059e+37  ;;  %v1508_v41 = vadd.f32 %v6496_v15, %v1465_v19 }
 0x3bb   :  { %v2632_v54 = vpop.eup %2631 }
 0x3bc   :  { %v2634_v51 = vpop.eup %2633  ;;  %v5191_v48 = vadd.f32 1.0, %v2632_v54 }
 0x3bd   :  { %v2636_v52 = vpop.eup %2635  ;;  %v1474_v1 = vmul.f32 %v2634_v51, %v1472_v44  ;;  %vm1479_vm1 = vweird.f32 %v2634_v51 }
 0x3be   :  { %v1494_v24 = vmul.f32 %v2636_v52, %v1492_v23  ;;  %2639 = vrcp.f32 %v5191_v48  ;;  %v2638_v7 = vpop.eup %2637  ;;  %vm1480_vm3 = vmor %vm1478_vm2, %vm1479_vm1  ;;  %vm1499_vm5 = vweird.f32 %v2636_v52  ;;  %vm1606_vm14 = vweird.f32 %v5191_v48 }
 0x3bf   :  { %v1475_v30 = vsub.f32 1.0, %v1474_v1  ;;  %v1580_v0 = vadd.f32 1.0, %v2638_v7  ;;  %vm1500_vm7 = vmor %vm1498_vm6, %vm1499_vm5 }
 0x3c0   :  { %v1495_v2 = vsub.f32 1.0, %v1494_v24  ;;  %v1504_v24 = vand.u32 2147483648, %v1492_v23 }
 0x3c1   :  { %v1476_v8 = vmul.f32 %v2634_v51, %v1475_v30  ;;  %2641 = vrcp.f32 %v1580_v0  ;;  %vm1586_vm10 = vweird.f32 %v1580_v0 }
 0x3c2   :  { %v1496_v31 = vmul.f32 %v2636_v52, %v1495_v2  ;;  %v1502_v2 = vand.u32 2147483647, %v1492_v23 }
 0x3c3   :  { %v1477_v40 = vadd.f32 %v2634_v51, %v1476_v8  ;;  %v6497_v8 = vld [vmem:[#allocation65_spill] sm:$0xff] }
 0x3c4   :  { %v5194_v37 = vpop.eup %2639  ;;  %v1497_v54 = vadd.f32 %v2636_v52, %v1496_v31  ;;  %vm1503_vm8 = vcmp.eq.f32.partialorder %v1502_v2, 8.507059e+37 }
 0x3c5   :  { %v1481_v60 = vsel %vm1480_vm3, %v2634_v51, %v1477_v40  ;;  %v1602_v7 = vmul.f32 %v5194_v37, %v5191_v48  ;;  %v1505_v51 = vor.u32 1.1754944e-38, %v1504_v24  ;;  %v1592_v40 = vand.u32 2147483648, %v1580_v0 }
 0x3c6   :  { %v1486_v1 = vsel %vm1483_vm4, %v1485_v32, %v1481_v60  ;;  %v1501_v59 = vsel %vm1500_vm7, %v2636_v52, %v1497_v54  ;;  %v1573_v32 = vpop.f32.mrf.mxu1  ;;  %v6498_v54 = vld [vmem:[#allocation69_spill] sm:$0xff]  ;;  %vm1607_vm13 = vweird.f32 %v5194_v37 }
 0x3c7   :  { %v1509_v30 = vmul.f32 %v1508_v41, %v1486_v1  ;;  %v2642_v44 = vpop.eup %2641  ;;  %v1603_v38 = vsub.f32 1.0, %v1602_v7  ;;  %v1506_v19 = vsel %vm1503_vm8, %v1505_v51, %v1501_v59  ;;  %v1590_v41 = vand.u32 2147483647, %v1580_v0  ;;  %vm5210_vm15 = vmor %vm1606_vm14, %vm1607_vm13 }
 0x3c8   :  { %v1582_v56 = vmul.f32 %v2642_v44, %v1580_v0  ;;  %vm1587_vm9 = vweird.f32 %v2642_v44  ;;  %v1512_v23 = vsub.f32 1.0, %v1506_v19  ;;  %v1593_v52 = vor.u32 1.1754944e-38, %v1592_v40 }
 0x3c9   :  { %v1510_v5 = vadd.f32 %v1509_v30, %v6497_v8  ;;  %v1604_v1 = vmul.f32 %v5194_v37, %v1603_v38  ;;  %vm1588_vm11 = vmor %vm1586_vm10, %vm1587_vm9  ;;  %v1616_v24 = vadd.f32 %v6498_v54, %v1573_v32  ;;  %vm1591_vm12 = vcmp.eq.f32.partialorder %v1590_v41, 8.507059e+37  ;;  %v5243_v32 = vld [vmem:[%s5922_s4 + $0x150] sm:$0xff]  ;;  %v5256_v41 = vld [vmem:[%s5922_s4 + $0x138] sm:$0xff] }
 0x3ca   :  { %v1583_v31 = vsub.f32 1.0, %v1582_v56  ;;  %v1514_v59 = vmul.f32 %v1506_v19, %v4893_v34  ;;  %v1612_v8 = vand.u32 2147483648, %v5191_v48  ;;  %v1610_v0 = vand.u32 2147483647, %v5191_v48  ;;  %v5224_v48 = vld [vmem:[%s5921_s3 + $0x178] sm:$0xff]  ;;  %v5230_v19 = vld [vmem:[%s5922_s4 + $0x168] sm:$0xff] }
 0x3cb   :  { %2643 = vtanh.f32 %v1510_v5  ;;  %v1605_v7 = vadd.f32 %v5194_v37, %v1604_v1  ;;  %v5379_v34 = vld [vmem:[%s5922_s4 + $0x130] sm:$0xff] }
 0x3cc   :  { %v1584_v60 = vmul.f32 %v2642_v44, %v1583_v31  ;;  %v1613_v31 = vor.u32 1.1754944e-38, %v1612_v8  ;;  %vm1611_vm0 = vcmp.eq.f32.partialorder %v1610_v0, 8.507059e+37  ;;  %v5292_v8 = vld [vmem:[%s5921_s3 + $0x100] sm:$0xff]  ;;  %v5304_v0 = vld [vmem:[%s5922_s4 + $0xf8] sm:$0xff] }
 0x3cd   :  { %v1609_v38 = vsel %vm5210_vm15, %v5194_v37, %v1605_v7  ;;  %v5237_v37 = vld [vmem:[%s5921_s3 + $0x160] sm:$0xff]  ;;  %v5283_v7 = vld [vmem:[%s5922_s4 + $0x108] sm:$0xff] }
 0x3ce   :  { %v1585_v15 = vadd.f32 %v2642_v44, %v1584_v60  ;;  %v1614_v40 = vsel %vm1611_vm0, %v1613_v31, %v1609_v38  ;;  %v5250_v60 = vld [vmem:[%s5921_s3 + $0x148] sm:$0xff]  ;;  %v5331_v38 = vld [vmem:[%s5922_s4 + $0x160] sm:$0xff] }
 0x3cf   :  { %v1620_v1 = vsub.f32 1.0, %v1614_v40  ;;  %v5337_v31 = vld [vmem:[%s5922_s4 + $0xe0] sm:$0xff] }
 0x3d0   :  { %v1589_v30 = vsel %vm1588_vm11, %v2642_v44, %v1585_v15  ;;  %v6501_v15 = vld [vmem:[#allocation63_spill] sm:$0xff] }
 0x3d1   :  { %v2644_v13 = vpop.eup %2643  ;;  %v1594_v2 = vsel %vm1591_vm12, %v1593_v52, %v1589_v30  ;;  %v1622_v30 = vmul.f32 %v1614_v40, %v4907_v12  ;;  %v5343_v40 = vld [vmem:[%s5921_s3 + $0xd0] sm:$0xff]  ;;  %v5373_v12 = vld [vmem:[%s5922_s4 + $0xa8] sm:$0xff] }
 0x3d2   :  { %v1513_v5 = vmul.f32 %v2644_v13, %v1512_v23  ;;  %v1617_v56 = vmul.f32 %v1616_v24, %v1594_v2  ;;  %v5263_v23 = vld [vmem:[%s5921_s3 + $0x130] sm:$0xff]  ;;  %v5269_v24 = vld [vmem:[%s5922_s4 + $0x120] sm:$0xff]  ;;  %v5313_v13 = vld [vmem:[%s5922_s4 + $0x178] sm:$0xff]  ;;  %6502 = vst [vmem:[#allocation84_spill] sm:$0xff] %v5343_v40 }
 0x3d3   :  { %6505 = vst [vmem:[#allocation73_spill] sm:$0xff] %v5373_v12 }
 0x3d4   :  { %v5206_v51 = vadd.f32 %v1514_v59, %v1513_v5  ;;  %v1618_v44 = vadd.f32 %v1617_v56, %v6501_v15  ;;  %v5277_v59 = vld [vmem:[%s5921_s3 + $0x118] sm:$0xff]  ;;  %v5298_v56 = vld [vmem:[%s5922_s4 + $0xf0] sm:$0xff]  ;;  %v5319_v15 = vld [vmem:[%s5921_s3 + $0xe8] sm:$0xff] }
 0x3d6   :  { %1650 = vmatmul.f32.vlgmr.msra.gmra.mxu2 %v5206_v51  ;;  %1670 = vmatmul.f32.vlgmr.msra.gmra.mxu3 %v5206_v51  ;;  %2645 = vtanh.f32 %v1618_v44  ;;  %v5325_v44 = vld [vmem:[%s5922_s4 + $0xd8] sm:$0xff] }
 0x3d7   :  { %1690 = vmatmul.f32.vlgmr.msrb.gmra.mxu0 %v5206_v51  ;;  %1900 = vmatpush.msra.mxu2 %v5224_v48 }
 0x3d8   :  { %1968 = vmatpush.msra.mxu3 %v5230_v19  ;;  %1988 = vmatpush.msrb.mxu0 %v4904_v53 }
 0x3d9   :  { %1901 = vmatpush.msra.mxu2 %v5237_v37 }
 0x3da   :  { %1969 = vmatpush.msra.mxu3 %v5243_v32  ;;  %1989 = vmatpush.msrb.mxu0 %v4914_v39 }
 0x3db   :  { %1902 = vmatpush.msra.mxu2 %v5250_v60 }
 0x3dc   :  { %1970 = vmatpush.msra.mxu3 %v5256_v41  ;;  %1990 = vmatpush.msrb.mxu0 %v4925_v61  ;;  %v2646_v52 = vpop.eup %2645 }
 0x3dd   :  { %1903 = vmatpush.msra.mxu2 %v5263_v23  ;;  %v1621_v5 = vmul.f32 %v2646_v52, %v1620_v1  ;;  %v5349_v1 = vld [vmem:[%s5922_s4 + $0xc0] sm:$0xff]  ;;  %v5355_v52 = vld [vmem:[%s5922_s4 + $0x148] sm:$0xff] }
 0x3de   :  { %1971 = vmatpush.msra.mxu3 %v5269_v24  ;;  %1991 = vmatpush.msrb.mxu0 %v4936_v58 }
 0x3df   :  { %1904 = vmatpush.msra.mxu2 %v5277_v59  ;;  %v5287_v2 = vadd.f32 %v1622_v30, %v1621_v5  ;;  %v5361_v5 = vld [vmem:[%s5922_s4 + $0xc8] sm:$0xff]  ;;  %v5367_v30 = vld [vmem:[%s5921_s3 + $0xb8] sm:$0xff] }
 0x3e0   :  { %1972 = vmatpush.msra.mxu3 %v5283_v7  ;;  %1992 = vmatpush.msrb.mxu0 %v4945_v11  ;;  %6503 = vst [vmem:[#allocation72_spill] sm:$0xff] %v5361_v5 }
 0x3e1   :  { %1905 = vmatpush.msra.mxu2 %v5292_v8  ;;  %1758 = vmatmul.f32.vlgmr.msrb.gmra.mxu1 %v5287_v2  ;;  %6504 = vst [vmem:[#allocation86_spill] sm:$0xff] %v5367_v30 }
 0x3e2   :  { %1973 = vmatpush.msra.mxu3 %v5298_v56  ;;  %1993 = vmatpush.msrb.mxu0 %v5304_v0 }
 0x3e3   :  { %1778 = vmatmul.f32.vlgmr.msrb.gmra.mxu2 %v5287_v2  ;;  %1798 = vmatmul.f32.vlgmr.msrb.gmra.mxu3 %v5287_v2 }
 0x3e4   :  { %2008 = vmatpush.msrb.mxu1 %v5313_v13  ;;  %1906 = vmatpush.msra.mxu2 %v5319_v15 }
 0x3e5   :  { %1974 = vmatpush.msra.mxu3 %v5325_v44  ;;  %1994 = vmatpush.msrb.mxu0 %v5337_v31 }
 0x3e6   :  { %2009 = vmatpush.msrb.mxu1 %v5331_v38  ;;  %1907 = vmatpush.msra.mxu2 %v5343_v40  ;;  %v5397_v40 = vld [vmem:[%s5922_s4 + $0x90] sm:$0xff] }
 0x3e7   :  { %1975 = vmatpush.msra.mxu3 %v5349_v1  ;;  %1995 = vmatpush.msrb.mxu0 %v5361_v5  ;;  %v5385_v5 = vld [vmem:[%s5922_s4 + $0xb0] sm:$0xff]  ;;  %6508 = vst [vmem:[#allocation90_spill] sm:$0xff] %v5397_v40 }
 0x3e8   :  { %2010 = vmatpush.msrb.mxu1 %v5355_v52  ;;  %1908 = vmatpush.msra.mxu2 %v5367_v30  ;;  %6506 = vst [vmem:[#allocation88_spill] sm:$0xff] %v5385_v5  ;;  %v5391_v30 = vld [vmem:[%s5921_s3 + $0xa0] sm:$0xff] }
 0x3e9   :  { %1976 = vmatpush.msra.mxu3 %v5373_v12  ;;  %1996 = vmatpush.msrb.mxu0 %v5385_v5  ;;  %6507 = vst [vmem:[#allocation64_spill] sm:$0xff] %v5391_v30  ;;  %v5403_v12 = vld [vmem:[%s5922_s4 + $0x118] sm:$0xff] }
 0x3ea   :  { %2011 = vmatpush.msrb.mxu1 %v5379_v34  ;;  %1909 = vmatpush.msra.mxu2 %v5391_v30  ;;  %6509 = vst [vmem:[#allocation85_spill] sm:$0xff] %v5403_v12  ;;  %v5409_v5 = vld [vmem:[%s5922_s4 + $0x98] sm:$0xff]  ;;  %v5415_v30 = vld [vmem:[%s5921_s3 + $0x88] sm:$0xff] }
 0x3eb   :  { %1977 = vmatpush.msra.mxu3 %v5397_v40  ;;  %6510 = vst [vmem:[#allocation52_spill] sm:$0xff] %v5409_v5  ;;  %1997 = vmatpush.msrb.mxu0 %v5409_v5  ;;  %v5421_v40 = vld [vmem:[%s5922_s4 + $0x78] sm:$0xff]  ;;  %v5433_v5 = vld [vmem:[%s5922_s4 + $0x80] sm:$0xff] }
 0x3ec   :  { %2012 = vmatpush.msrb.mxu1 %v5403_v12  ;;  %6511 = vst [vmem:[#allocation83_spill] sm:$0xff] %v5415_v30  ;;  %1910 = vmatpush.msra.mxu2 %v5415_v30  ;;  %v5427_v12 = vld [vmem:[%s5922_s4 + $0x100] sm:$0xff]  ;;  %v5439_v30 = vld [vmem:[%s5921_s3 + $0x70] sm:$0xff] }
 0x3ed   :  { %6512 = vst [vmem:[#allocation22_spill] sm:$0xff] %v5421_v40  ;;  %1978 = vmatpush.msra.mxu3 %v5421_v40  ;;  %1998 = vmatpush.msrb.mxu0 %v5433_v5  ;;  %v5445_v40 = vld [vmem:[%s5922_s4 + $0x60] sm:$0xff] }
 0x3ee   :  { %6513 = vst [vmem:[#allocation24_spill] sm:$0xff] %v5427_v12  ;;  %2013 = vmatpush.msrb.mxu1 %v5427_v12  ;;  %1911 = vmatpush.msra.mxu2 %v5439_v30  ;;  %v5451_v12 = vld [vmem:[%s5922_s4 + $0xe8] sm:$0xff] }
 0x3ef   :  { %6514 = vst [vmem:[#allocation30_spill] sm:$0xff] %v5433_v5  ;;  %1979 = vmatpush.msra.mxu3 %v5445_v40  ;;  %v5457_v5 = vld [vmem:[%s5922_s4 + $0x68] sm:$0xff] }
 0x3f0   :  { %6515 = vst [vmem:[#allocation33_spill] sm:$0xff] %v5439_v30  ;;  %2014 = vmatpush.msrb.mxu1 %v5451_v12  ;;  %1999 = vmatpush.msrb.mxu0 %v5457_v5  ;;  %v5463_v30 = vld [vmem:[%s5921_s3 + $0x58] sm:$0xff] }
 0x3f1   :  { %6516 = vst [vmem:[#allocation35_spill] sm:$0xff] %v5445_v40  ;;  %1912 = vmatpush.msra.mxu2 %v5463_v30  ;;  %v5469_v40 = vld [vmem:[%s5922_s4 + $0x48] sm:$0xff] }
 0x3f2   :  { %6517 = vst [vmem:[#allocation38_spill] sm:$0xff] %v5451_v12  ;;  %1980 = vmatpush.msra.mxu3 %v5469_v40  ;;  %v5475_v12 = vld [vmem:[%s5922_s4 + $0xd0] sm:$0xff] }
 0x3f3   :  { %6518 = vst [vmem:[#allocation25_spill] sm:$0xff] %v5457_v5  ;;  %2015 = vmatpush.msrb.mxu1 %v5475_v12  ;;  %v5481_v5 = vld [vmem:[%s5922_s4 + $0x50] sm:$0xff] }
 0x3f4   :  { %6519 = vst [vmem:[#allocation37_spill] sm:$0xff] %v5463_v30  ;;  %2000 = vmatpush.msrb.mxu0 %v5481_v5  ;;  %v5487_v30 = vld [vmem:[%s5921_s3 + $0x40] sm:$0xff] }
 0x3f5   :  { %6520 = vst [vmem:[#allocation42_spill] sm:$0xff] %v5469_v40  ;;  %1913 = vmatpush.msra.mxu2 %v5487_v30  ;;  %v5493_v40 = vld [vmem:[%s5922_s4 + $0x30] sm:$0xff] }
 0x3f6   :  { %6521 = vst [vmem:[#allocation20_spill] sm:$0xff] %v5475_v12  ;;  %1981 = vmatpush.msra.mxu3 %v5493_v40  ;;  %v5499_v12 = vld [vmem:[%s5922_s4 + $0xb8] sm:$0xff] }
 0x3f7   :  { %6522 = vst [vmem:[#allocation28_spill] sm:$0xff] %v5481_v5  ;;  %2016 = vmatpush.msrb.mxu1 %v5499_v12  ;;  %v5505_v5 = vld [vmem:[%s5922_s4 + $0x38] sm:$0xff] }
 0x3f8   :  { %6523 = vst [vmem:[#allocation39_spill] sm:$0xff] %v5487_v30  ;;  %2001 = vmatpush.msrb.mxu0 %v5505_v5  ;;  %v5511_v30 = vld [vmem:[%s5921_s3 + $0x28] sm:$0xff] }
 0x3f9   :  { %6524 = vst [vmem:[#allocation43_spill] sm:$0xff] %v5493_v40  ;;  %1914 = vmatpush.msra.mxu2 %v5511_v30  ;;  %v5517_v40 = vld [vmem:[%s5922_s4 + $0x18] sm:$0xff] }
 0x3fa   :  { %6525 = vst [vmem:[#allocation23_spill] sm:$0xff] %v5499_v12  ;;  %1982 = vmatpush.msra.mxu3 %v5517_v40  ;;  %v5523_v12 = vld [vmem:[%s5922_s4 + $0xa0] sm:$0xff] }
 0x3fb   :  { %6526 = vst [vmem:[#allocation32_spill] sm:$0xff] %v5505_v5  ;;  %2017 = vmatpush.msrb.mxu1 %v5523_v12  ;;  %v5529_v5 = vld [vmem:[%s5922_s4 + $0x20] sm:$0xff] }
 0x3fc   :  { %6527 = vst [vmem:[#allocation40_spill] sm:$0xff] %v5511_v30  ;;  %2002 = vmatpush.msrb.mxu0 %v5529_v5  ;;  %v5535_v30 = vld [vmem:[%s5921_s3 + $0x10] sm:$0xff] }
 0x3fd   :  { %6528 = vst [vmem:[#allocation26_spill] sm:$0xff] %v5517_v40  ;;  %1915 = vmatpush.msra.mxu2 %v5535_v30  ;;  %v5541_v40 = vld [vmem:[%s5922_s4] sm:$0xff] }
 0x3fe   :  { %6529 = vst [vmem:[#allocation34_spill] sm:$0xff] %v5523_v12  ;;  %1983 = vmatpush.msra.mxu3 %v5541_v40  ;;  %v5547_v12 = vld [vmem:[%s5922_s4 + $0x88] sm:$0xff] }
 0x3ff   :  { %6530 = vst [vmem:[#allocation41_spill] sm:$0xff] %v5529_v5  ;;  %2018 = vmatpush.msrb.mxu1 %v5547_v12  ;;  %v5553_v5 = vld [vmem:[%s5922_s4 + $0x8] sm:$0xff]  ;;  %2086 = vmatpush.msrb.mxu2 %v4992_v10  ;;  %v5577_v10 = vld [vmem:[%s5922_s4 + $0x40] sm:$0xff] }
 0x400   :  { %6531 = vst [vmem:[#allocation29_spill] sm:$0xff] %v5535_v30  ;;  %2003 = vmatpush.msrb.mxu0 %v5553_v5  ;;  %2106 = vmatpush.msrb.mxu3 %v5001_v17  ;;  %v5561_v30 = vld [vmem:[%s5922_s4 + $0x70] sm:$0xff]  ;;  %v5585_v17 = vld [vmem:[%s5922_s4 + $0x28] sm:$0xff] }
 0x401   :  { %6532 = vst [vmem:[#allocation44_spill] sm:$0xff] %v5541_v40  ;;  %2019 = vmatpush.msrb.mxu1 %v5561_v30  ;;  %2087 = vmatpush.msrb.mxu2 %v5007_v20  ;;  %v5569_v40 = vld [vmem:[%s5922_s4 + $0x58] sm:$0xff]  ;;  %v5593_v20 = vld [vmem:[%s5922_s4 + $0x10] sm:$0xff] }
 0x402   :  { %2107 = vmatpush.msrb.mxu3 %v5014_v22  ;;  %v6533_v22 = vld [vmem:[#allocation75_spill] sm:$0xff] }
 0x403   :  { %2020 = vmatpush.msrb.mxu1 %v5569_v40  ;;  %2088 = vmatpush.msrb.mxu2 %v5020_v49 }
 0x404   :  { %2108 = vmatpush.msrb.mxu3 %v5026_v35 }
 0x405   :  { %2021 = vmatpush.msrb.mxu1 %v5577_v10  ;;  %2089 = vmatpush.msrb.mxu2 %v5032_v16  ;;  %v6534_v16 = vld [vmem:[#allocation6_spill] sm:$0xff] }
 0x406   :  { %2109 = vmatpush.msrb.mxu3 %v5038_v21 }
 0x407   :  { %2022 = vmatpush.msrb.mxu1 %v5585_v17  ;;  %2090 = vmatpush.msrb.mxu2 %v5044_v55  ;;  %v6535_v55 = vld [vmem:[#allocation14_spill] sm:$0xff] }
 0x408   :  { %2110 = vmatpush.msrb.mxu3 %v5050_v57 }
 0x409   :  { %2023 = vmatpush.msrb.mxu1 %v5593_v20  ;;  %2091 = vmatpush.msrb.mxu2 %v5056_v27 }
 0x40a   :  { %2111 = vmatpush.msrb.mxu3 %v5062_v4 }
 0x40b   :  { %2092 = vmatpush.msrb.mxu2 %v5068_v45 }
 0x40c   :  { %2112 = vmatpush.msrb.mxu3 %v5074_v26  ;;  %v6536_v26 = vld [vmem:[#allocation57_spill] sm:$0xff] }
 0x40d   :  { %2093 = vmatpush.msrb.mxu2 %v5080_v6 }
 0x40e   :  { %2113 = vmatpush.msrb.mxu3 %v5086_v18 }
 0x40f   :  { %2094 = vmatpush.msrb.mxu2 %v5092_v46 }
 0x410   :  { %2114 = vmatpush.msrb.mxu3 %v5098_v50 }
 0x411   :  { %2095 = vmatpush.msrb.mxu2 %v5104_v62 }
 0x412   :  { %2115 = vmatpush.msrb.mxu3 %v5110_v25 }
 0x413   :  { %2096 = vmatpush.msrb.mxu2 %v5116_v43 }
 0x414   :  { %2116 = vmatpush.msrb.mxu3 %v5122_v3  ;;  %v6537_v3 = vld [vmem:[#allocation16_spill] sm:$0xff] }
 0x415   :  { %2097 = vmatpush.msrb.mxu2 %v5128_v33  ;;  %v6538_v33 = vld [vmem:[#allocation13_spill] sm:$0xff] }
 0x416   :  { %2117 = vmatpush.msrb.mxu3 %v5134_v47  ;;  %v282_v47 = vadd.f32 %v6538_v33, %v6537_v3 }
 0x417   :  { %2098 = vmatpush.msrb.mxu2 %v5140_v9 }
 0x418   :  { %2118 = vmatpush.msrb.mxu3 %v5146_v28 }
 0x419   :  { %2099 = vmatpush.msrb.mxu2 %v5152_v42 }
 0x41a   :  { %2119 = vmatpush.msrb.mxu3 %v5158_v14 }
 0x41b   :  { %2100 = vmatpush.msrb.mxu2 %v5164_v36 }
 0x41c   :  { %2120 = vmatpush.msrb.mxu3 %v5170_v63 }
 0x41d   :  { %2101 = vmatpush.msrb.mxu2 %v5176_v29 }
 0x41e   :  { %2121 = vmatpush.msrb.mxu3 %v6533_v22 }
 0x459   :  { %v1651_v49 = vpop.f32.mrf.mxu2  ;;  %v1671_v35 = vpop.f32.mrf.mxu3 }
 0x45a   :  { %v1694_v21 = vadd.f32 %v1651_v49, %v6534_v16  ;;  %v1714_v57 = vadd.f32 %v1671_v35, %v6535_v55 }
 0x45c   :  { %v2527_v27 = vmul.f32 -1.442695, %v1694_v21  ;;  %v2528_v4 = vmul.f32 -1.442695, %v1714_v57 }
 0x45e   :  { %2647 = vpow2.f32 %v2527_v27  ;;  %v1759_v45 = vpop.f32.mrf.mxu1  ;;  %v1691_v27 = vpop.f32.mrf.mxu0 }
 0x45f   :  { %2649 = vpow2.f32 %v2528_v4  ;;  %v1802_v6 = vadd.f32 %v1759_v45, %v6536_v26 }
 0x461   :  { %v2529_v18 = vmul.f32 -1.442695, %v1802_v6 }
 0x463   :  { %2651 = vpow2.f32 %v2529_v18 }
 0x464   :  { %v2648_v46 = vpop.eup %2647 }
 0x465   :  { %v2650_v50 = vpop.eup %2649  ;;  %v1698_v62 = vadd.f32 1.0, %v2648_v46 }
 0x466   :  { %v1718_v25 = vadd.f32 1.0, %v2650_v50  ;;  %v1779_v43 = vpop.f32.mrf.mxu2  ;;  %v6539_v50 = vld [vmem:[#allocation59_spill] sm:$0xff] }
 0x467   :  { %2653 = vrcp.f32 %v1698_v62  ;;  %v1822_v9 = vadd.f32 %v1779_v43, %v282_v47  ;;  %v1710_v35 = vand.u32 2147483648, %v1698_v62  ;;  %v1708_v55 = vand.u32 2147483647, %v1698_v62 }
 0x468   :  { %2655 = vrcp.f32 %v1718_v25  ;;  %vm1704_vm2 = vweird.f32 %v1698_v62  ;;  %v1734_v43 = vadd.f32 %v6539_v50, %v1691_v27  ;;  %vm1724_vm6 = vweird.f32 %v1718_v25 }
 0x469   :  { %v2652_v28 = vpop.eup %2651  ;;  %v2530_v42 = vmul.f32 -1.442695, %v1822_v9  ;;  %v1711_v18 = vor.u32 1.1754944e-38, %v1710_v35  ;;  %vm1709_vm4 = vcmp.eq.f32.partialorder %v1708_v55, 8.507059e+37 }
 0x46a   :  { %v1806_v14 = vadd.f32 1.0, %v2652_v28 }
 0x46b   :  { %2657 = vpow2.f32 %v2530_v42 }
 0x46c   :  { %2659 = vrcp.f32 %v1806_v14  ;;  %vm1812_vm9 = vweird.f32 %v1806_v14 }
 0x46d   :  { %v2654_v36 = vpop.eup %2653 }
 0x46e   :  { %v2656_v63 = vpop.eup %2655  ;;  %v1700_v29 = vmul.f32 %v2654_v36, %v1698_v62  ;;  %vm1705_vm1 = vweird.f32 %v2654_v36 }
 0x46f   :  { %v1720_v22 = vmul.f32 %v2656_v63, %v1718_v25  ;;  %vm1706_vm3 = vmor %vm1704_vm2, %vm1705_vm1  ;;  %vm1725_vm5 = vweird.f32 %v2656_v63 }
 0x470   :  { %v1701_v49 = vsub.f32 1.0, %v1700_v29  ;;  %v1730_v29 = vand.u32 2147483648, %v1718_v25  ;;  %vm5624_vm8 = vmor %vm1724_vm6, %vm1725_vm5 }
 0x471   :  { %v1721_v16 = vsub.f32 1.0, %v1720_v22  ;;  %v2658_v57 = vpop.eup %2657  ;;  %v1818_v22 = vand.u32 2147483648, %v1806_v14 }
 0x472   :  { %v1702_v21 = vmul.f32 %v2654_v36, %v1701_v49  ;;  %v2660_v45 = vpop.eup %2659  ;;  %v1826_v6 = vadd.f32 1.0, %v2658_v57  ;;  %v1728_v49 = vand.u32 2147483647, %v1718_v25 }
 0x473   :  { %v1722_v4 = vmul.f32 %v2656_v63, %v1721_v16  ;;  %v1808_v46 = vmul.f32 %v2660_v45, %v1806_v14  ;;  %v1799_v16 = vpop.f32.mrf.mxu3  ;;  %vm1813_vm7 = vweird.f32 %v2660_v45 }
 0x474   :  { %v1703_v26 = vadd.f32 %v2654_v36, %v1702_v21  ;;  %2661 = vrcp.f32 %v1826_v6  ;;  %v1816_v21 = vand.u32 2147483647, %v1806_v14  ;;  %vm1814_vm10 = vmor %vm1812_vm9, %vm1813_vm7  ;;  %v1842_v25 = vadd.f32 %v6498_v54, %v1799_v16 }
 0x475   :  { %v1723_v9 = vadd.f32 %v2656_v63, %v1722_v4  ;;  %v1809_v28 = vsub.f32 1.0, %v1808_v46  ;;  %vm1729_vm11 = vcmp.eq.f32.partialorder %v1728_v49, 8.507059e+37  ;;  %v1836_v35 = vand.u32 2147483647, %v1826_v6 }
 0x476   :  { %v1707_v33 = vsel %vm1706_vm3, %v2654_v36, %v1703_v26  ;;  %v6542_v36 = vld [vmem:[#allocation68_spill] sm:$0xff]  ;;  %v1731_v26 = vor.u32 1.1754944e-38, %v1730_v29  ;;  %vm1817_vm12 = vcmp.eq.f32.partialorder %v1816_v21, 8.507059e+37  ;;  %vm1832_vm14 = vweird.f32 %v1826_v6 }
 0x477   :  { %v1712_v47 = vsel %vm1709_vm4, %v1711_v18, %v1707_v33  ;;  %v1810_v62 = vmul.f32 %v2660_v45, %v1809_v28  ;;  %v1727_v27 = vsel %vm5624_vm8, %v2656_v63, %v1723_v9  ;;  %v1819_v18 = vor.u32 1.1754944e-38, %v1818_v22  ;;  %v6544_v28 = vld [vmem:[#allocation58_spill] sm:$0xff] }
 0x478   :  { %v1735_v42 = vmul.f32 %v1734_v43, %v1712_v47  ;;  %v1732_v33 = vsel %vm1729_vm11, %v1731_v26, %v1727_v27  ;;  %v6543_v47 = vld [vmem:[#allocation60_spill] sm:$0xff]  ;;  %v1838_v63 = vand.u32 2147483648, %v1826_v6  ;;  %vm1837_vm0 = vcmp.eq.f32.partialorder %v1836_v35, 8.507059e+37 }
 0x479   :  { %v1811_v57 = vadd.f32 %v2660_v45, %v1810_v62  ;;  %v1738_v22 = vsub.f32 1.0, %v1732_v33 }
 0x47a   :  { %v1736_v55 = vadd.f32 %v1735_v42, %v6542_v36  ;;  %v2662_v4 = vpop.eup %2661  ;;  %v323_v42 = vadd.f32 %v6544_v28, %v6543_v47  ;;  %v1839_v16 = vor.u32 1.1754944e-38, %v1838_v63 }
 0x47b   :  { %v1828_v46 = vmul.f32 %v2662_v4, %v1826_v6  ;;  %v1815_v50 = vsel %vm1814_vm10, %v2660_v45, %v1811_v57  ;;  %vm1833_vm13 = vweird.f32 %v2662_v4  ;;  %v1740_v45 = vmul.f32 %v1732_v33, %v5206_v51  ;;  %v6575_v33 = vld [vmem:[#allocation29_spill] sm:$0xff] }
 0x47c   :  { %2663 = vtanh.f32 %v1736_v55  ;;  %v1820_v43 = vsel %vm1817_vm12, %v1819_v18, %v1815_v50  ;;  %vm1834_vm15 = vmor %vm1832_vm14, %vm1833_vm13  ;;  %v6573_v50 = vld [vmem:[#allocation40_spill] sm:$0xff] }
 0x47d   :  { %v1829_v14 = vsub.f32 1.0, %v1828_v46  ;;  %v1843_v62 = vmul.f32 %v1842_v25, %v1820_v43  ;;  %v6571_v25 = vld [vmem:[#allocation32_spill] sm:$0xff]  ;;  %v6574_v43 = vld [vmem:[#allocation41_spill] sm:$0xff] }
 0x47e   :  { %v6572_v46 = vld [vmem:[#allocation44_spill] sm:$0xff] }
 0x47f   :  { %v1830_v9 = vmul.f32 %v2662_v4, %v1829_v14  ;;  %v1844_v29 = vadd.f32 %v1843_v62, %v323_v42  ;;  %v6576_v42 = vld [vmem:[#allocation17_spill] sm:$0xff]  ;;  %v6577_v62 = vld [vmem:[#allocation8_spill] sm:$0xff] }
 0x481   :  { %v1831_v54 = vadd.f32 %v2662_v4, %v1830_v9  ;;  %2665 = vtanh.f32 %v1844_v29 }
 0x482   :  { %v2664_v36 = vpop.eup %2663 }
 0x483   :  { %v1739_v49 = vmul.f32 %v2664_v36, %v1738_v22  ;;  %v1835_v21 = vsel %vm1834_vm15, %v2662_v4, %v1831_v54  ;;  %v2334_v36 = vld [vmem:[%s5926_s7 + $0x68] sm:$0xff] }
 0x484   :  { %v1840_v57 = vsel %vm1837_vm0, %v1839_v16, %v1835_v21  ;;  %v2333_v21 = vld [vmem:[%s5926_s7 + $0x60] sm:$0xff] }
 0x485   :  { %v5635_v55 = vadd.f32 %v1740_v45, %v1739_v49  ;;  %v1846_v27 = vsub.f32 1.0, %v1840_v57  ;;  %v1848_v4 = vmul.f32 %v1840_v57, %v5287_v2  ;;  %v2332_v57 = vld [vmem:[%s5926_s7 + $0x58] sm:$0xff] }
 0x487   :  { %1876 = vmatmul.f32.vlgmr.msra.gmra.mxu0 %v5635_v55  ;;  %1896 = vmatmul.f32.vlgmr.msra.gmra.mxu1 %v5635_v55  ;;  %v2666_v6 = vpop.eup %2665 }
 0x488   :  { %1916 = vmatmul.f32.vlgmr.msra.gmra.mxu2 %v5635_v55  ;;  %2194 = vmatpush.msra.mxu1 %v5230_v19  ;;  %v1847_v26 = vmul.f32 %v2666_v6, %v1846_v27  ;;  %v6551_v19 = vld [vmem:[#allocation24_spill] sm:$0xff]  ;;  %v6579_v27 = vld [vmem:[#allocation53_spill] sm:$0xff] }
 0x489   :  { %2126 = vmatpush.msra.mxu0 %v5224_v48  ;;  %2214 = vmatpush.msra.mxu2 %v4904_v53  ;;  %v6545_v53 = vld [vmem:[#allocation73_spill] sm:$0xff]  ;;  %v6550_v48 = vld [vmem:[#allocation86_spill] sm:$0xff] }
 0x48a   :  { %2195 = vmatpush.msra.mxu1 %v5243_v32  ;;  %v5647_v18 = vadd.f32 %v1848_v4, %v1847_v26  ;;  %v6553_v32 = vld [vmem:[#allocation22_spill] sm:$0xff]  ;;  %v2331_v26 = vld [vmem:[%s5926_s7 + $0x50] sm:$0xff] }
 0x48b   :  { %2127 = vmatpush.msra.mxu0 %v5237_v37  ;;  %2215 = vmatpush.msra.mxu2 %v4914_v39  ;;  %v6546_v39 = vld [vmem:[#allocation84_spill] sm:$0xff] }
 0x48c   :  { %2196 = vmatpush.msra.mxu1 %v5256_v41  ;;  %1984 = vmatmul.f32.vlgmr.msra.gmra.mxu3 %v5647_v18  ;;  %v6552_v37 = vld [vmem:[#allocation88_spill] sm:$0xff] }
 0x48d   :  { %2128 = vmatpush.msra.mxu0 %v5250_v60  ;;  %2216 = vmatpush.msra.mxu2 %v4925_v61  ;;  %v6547_v61 = vld [vmem:[#allocation85_spill] sm:$0xff]  ;;  %v6555_v60 = vld [vmem:[#allocation38_spill] sm:$0xff]  ;;  %v6556_v41 = vld [vmem:[#allocation52_spill] sm:$0xff] }
 0x48e   :  { %2197 = vmatpush.msra.mxu1 %v5269_v24  ;;  %2234 = vmatpush.msra.mxu3 %v5313_v13  ;;  %v6558_v24 = vld [vmem:[#allocation83_spill] sm:$0xff]  ;;  %v6564_v13 = vld [vmem:[#allocation25_spill] sm:$0xff] }
 0x48f   :  { %2004 = vmatmul.f32.vlgmr.msrb.gmra.mxu0 %v5647_v18  ;;  %2024 = vmatmul.f32.vlgmr.msrb.gmra.mxu1 %v5647_v18 }
 0x490   :  { %2198 = vmatpush.msra.mxu1 %v5283_v7  ;;  %2129 = vmatpush.msra.mxu0 %v5263_v23  ;;  %v6557_v23 = vld [vmem:[#allocation35_spill] sm:$0xff]  ;;  %v6560_v7 = vld [vmem:[#allocation30_spill] sm:$0xff] }
 0x491   :  { %2217 = vmatpush.msra.mxu2 %v4936_v58  ;;  %2235 = vmatpush.msra.mxu3 %v5331_v38  ;;  %v6548_v58 = vld [vmem:[#allocation72_spill] sm:$0xff]  ;;  %v6567_v38 = vld [vmem:[#allocation34_spill] sm:$0xff] }
 0x492   :  { %2199 = vmatpush.msra.mxu1 %v5298_v56  ;;  %2130 = vmatpush.msra.mxu0 %v5277_v59  ;;  %v6559_v59 = vld [vmem:[#allocation20_spill] sm:$0xff]  ;;  %v6562_v56 = vld [vmem:[#allocation33_spill] sm:$0xff] }
 0x493   :  { %2218 = vmatpush.msra.mxu2 %v4945_v11  ;;  %2236 = vmatpush.msra.mxu3 %v5355_v52  ;;  %v6549_v11 = vld [vmem:[#allocation90_spill] sm:$0xff]  ;;  %v6570_v52 = vld [vmem:[#allocation39_spill] sm:$0xff] }
 0x494   :  { %2200 = vmatpush.msra.mxu1 %v5325_v44  ;;  %2131 = vmatpush.msra.mxu0 %v5292_v8  ;;  %v6561_v8 = vld [vmem:[#allocation42_spill] sm:$0xff]  ;;  %v6566_v44 = vld [vmem:[#allocation37_spill] sm:$0xff] }
 0x495   :  { %2219 = vmatpush.msra.mxu2 %v5304_v0  ;;  %2237 = vmatpush.msra.mxu3 %v5379_v34  ;;  %v6554_v34 = vld [vmem:[#allocation64_spill] sm:$0xff]  ;;  %v6563_v0 = vld [vmem:[#allocation23_spill] sm:$0xff] }
 0x496   :  { %2201 = vmatpush.msra.mxu1 %v5349_v1  ;;  %2132 = vmatpush.msra.mxu0 %v5319_v15  ;;  %v6565_v15 = vld [vmem:[#allocation43_spill] sm:$0xff]  ;;  %v6569_v1 = vld [vmem:[#allocation26_spill] sm:$0xff] }
 0x497   :  { %2220 = vmatpush.msra.mxu2 %v5337_v31  ;;  %2238 = vmatpush.msra.mxu3 %v6547_v61  ;;  %v6568_v31 = vld [vmem:[#allocation28_spill] sm:$0xff] }
 0x498   :  { %2202 = vmatpush.msra.mxu1 %v6545_v53  ;;  %2133 = vmatpush.msra.mxu0 %v6546_v39  ;;  %v2330_v39 = vld [vmem:[%s5926_s7 + $0x48] sm:$0xff] }
 0x499   :  { %2221 = vmatpush.msra.mxu2 %v6548_v58  ;;  %2239 = vmatpush.msra.mxu3 %v6551_v19  ;;  %v2329_v19 = vld [vmem:[%s5926_s7 + $0x40] sm:$0xff] }
 0x49a   :  { %2203 = vmatpush.msra.mxu1 %v6549_v11  ;;  %2134 = vmatpush.msra.mxu0 %v6550_v48 }
 0x49b   :  { %2222 = vmatpush.msra.mxu2 %v6552_v37  ;;  %2240 = vmatpush.msra.mxu3 %v6555_v60 }
 0x49c   :  { %2204 = vmatpush.msra.mxu1 %v6553_v32  ;;  %2135 = vmatpush.msra.mxu0 %v6554_v34  ;;  %v2328_v34 = vld [vmem:[%s5926_s7 + $0x38] sm:$0xff] }
 0x49d   :  { %2223 = vmatpush.msra.mxu2 %v6556_v41  ;;  %2241 = vmatpush.msra.mxu3 %v6559_v59  ;;  %v2327_v59 = vld [vmem:[%s5926_s7 + $0x30] sm:$0xff] }
 0x49e   :  { %2205 = vmatpush.msra.mxu1 %v6557_v23  ;;  %2136 = vmatpush.msra.mxu0 %v6558_v24 }
 0x49f   :  { %2224 = vmatpush.msra.mxu2 %v6560_v7  ;;  %2242 = vmatpush.msra.mxu3 %v6563_v0  ;;  %v2326_v7 = vld [vmem:[%s5926_s7 + $0x28] sm:$0xff] }
 0x4a0   :  { %2206 = vmatpush.msra.mxu1 %v6561_v8  ;;  %2137 = vmatpush.msra.mxu0 %v6562_v56 }
 0x4a1   :  { %2225 = vmatpush.msra.mxu2 %v6564_v13  ;;  %2243 = vmatpush.msra.mxu3 %v6567_v38 }
 0x4a2   :  { %2207 = vmatpush.msra.mxu1 %v6565_v15  ;;  %2138 = vmatpush.msra.mxu0 %v6566_v44  ;;  %v2325_v44 = vld [vmem:[%s5926_s7 + $0x20] sm:$0xff] }
 0x4a3   :  { %2226 = vmatpush.msra.mxu2 %v6568_v31  ;;  %2244 = vmatpush.msra.mxu3 %v5547_v12 }
 0x4a4   :  { %2208 = vmatpush.msra.mxu1 %v6569_v1  ;;  %2139 = vmatpush.msra.mxu0 %v6570_v52  ;;  %v5761_v1 = vld [vmem:[%s5923_s5] ss:$0 sm:$0xff] }
 0x4a5   :  { %2227 = vmatpush.msra.mxu2 %v6571_v25  ;;  %2245 = vmatpush.msra.mxu3 %v5561_v30 }
 0x4a6   :  { %2209 = vmatpush.msra.mxu1 %v6572_v46  ;;  %2140 = vmatpush.msra.mxu0 %v6573_v50 }
 0x4a7   :  { %2228 = vmatpush.msra.mxu2 %v6574_v43  ;;  %2246 = vmatpush.msra.mxu3 %v5569_v40  ;;  %v6578_v40 = vld [vmem:[#allocation10_spill] sm:$0xff]  ;;  %v2324_v43 = vld [vmem:[%s5926_s7 + $0x18] sm:$0xff] }
 0x4a8   :  { %2141 = vmatpush.msra.mxu0 %v6575_v33  ;;  %v279_v9 = vadd.f32 %v6578_v40, %v6537_v3 }
 0x4a9   :  { %2229 = vmatpush.msra.mxu2 %v5553_v5  ;;  %2247 = vmatpush.msra.mxu3 %v5577_v10  ;;  %v2336_v5 = vld [vmem:[%s5926_s7 + $0x78] sm:$0xff] }
 0x4aa   :  { %2394 = vmatpush.msrb.mxu1 %v2336_v5  ;;  %v2321_v5 = vld [vmem:[%s5926_s7] sm:$0xff] }
 0x4ab   :  { %2248 = vmatpush.msra.mxu3 %v5585_v17 }
 0x4ad   :  { %2249 = vmatpush.msra.mxu3 %v5593_v20  ;;  %v2335_v20 = vld [vmem:[%s5926_s7 + $0x70] sm:$0xff] }
 0x4ae   :  { %2395 = vmatpush.msrb.mxu1 %v2335_v20 }
 0x4b0   :  { %2396 = vmatpush.msrb.mxu1 %v2334_v36 }
 0x4b2   :  { %2397 = vmatpush.msrb.mxu1 %v2333_v21 }
 0x4b4   :  { %2398 = vmatpush.msrb.mxu1 %v2332_v57 }
 0x4b6   :  { %2399 = vmatpush.msrb.mxu1 %v2331_v26 }
 0x4b8   :  { %2400 = vmatpush.msrb.mxu1 %v2330_v39 }
 0x4ba   :  { %2401 = vmatpush.msrb.mxu1 %v2329_v19  ;;  %v6581_v19 = vld [vmem:[#allocation54_spill] sm:$0xff] }
 0x4bc   :  { %2402 = vmatpush.msrb.mxu1 %v2328_v34 }
 0x4be   :  { %2403 = vmatpush.msrb.mxu1 %v2327_v59 }
 0x4c0   :  { %2404 = vmatpush.msrb.mxu1 %v2326_v7 }
 0x4c2   :  { %2405 = vmatpush.msrb.mxu1 %v2325_v44  ;;  %v6584_v44 = vld [vmem:[#allocation9_spill] sm:$0xff] }
 0x4c4   :  { %2406 = vmatpush.msrb.mxu1 %v2324_v43 }
 0x504   :  { %v1877_v12 = vpop.f32.mrf.mxu0  ;;  %v1897_v28 = vpop.f32.mrf.mxu1 }
 0x505   :  { %v1920_v14 = vadd.f32 %v1877_v12, %v6576_v42  ;;  %v1940_v30 = vadd.f32 %v1897_v28, %v6577_v62  ;;  %v2323_v28 = vld [vmem:[%s5926_s7 + $0x10] sm:$0xff] }
 0x506   :  { %2407 = vmatpush.msrb.mxu1 %v2323_v28  ;;  %v2348_v28 = vld [vmem:[%s5927_s8 + $0x58] sm:$0xff] }
 0x507   :  { %v2531_v35 = vmul.f32 -1.442695, %v1920_v14  ;;  %v2532_v63 = vmul.f32 -1.442695, %v1940_v30  ;;  %v6580_v14 = vld [vmem:[#allocation71_spill] sm:$0xff] }
 0x509   :  { %2667 = vpow2.f32 %v2531_v35  ;;  %v2322_v35 = vld [vmem:[%s5926_s7 + $0x8] sm:$0xff] }
 0x50a   :  { %2669 = vpow2.f32 %v2532_v63  ;;  %2408 = vmatpush.msrb.mxu1 %v2322_v35  ;;  %v2345_v35 = vld [vmem:[%s5927_s8 + $0x40] sm:$0xff] }
 0x50b   :  { %v1917_v0 = vpop.f32.mrf.mxu2 }
 0x50c   :  { %v2005_v10 = vpop.f32.mrf.mxu0  ;;  %v1960_v52 = vadd.f32 %v5761_v1, %v1917_v0  ;;  %2409 = vmatpush.msrb.mxu1 %v2321_v5  ;;  %v2025_v21 = vpop.f32.mrf.mxu1  ;;  %v2344_v5 = vld [vmem:[%s5927_s8 + $0x38] sm:$0xff] }
 0x50d   :  { %v2048_v17 = vadd.f32 %v2005_v10, %v279_v9 }
 0x50f   :  { %v2668_v29 = vpop.eup %2667  ;;  %v2534_v22 = vmul.f32 -1.442695, %v2048_v17  ;;  %v1985_v16 = vpop.f32.mrf.mxu3 }
 0x510   :  { %v2670_v54 = vpop.eup %2669  ;;  %v1924_v49 = vadd.f32 1.0, %v2668_v29  ;;  %v2028_v6 = vadd.f32 %v1985_v16, %v6579_v27 }
 0x511   :  { %v5723_v45 = vadd.f32 1.0, %v2670_v54  ;;  %2671 = vpow2.f32 %v2534_v22 }
 0x512   :  { %2673 = vrcp.f32 %v1924_v49  ;;  %v2533_v4 = vmul.f32 -1.442695, %v2028_v6  ;;  %v1936_v41 = vand.u32 2147483648, %v1924_v49  ;;  %v1934_v24 = vand.u32 2147483647, %v1924_v49 }
 0x513   :  { %2675 = vrcp.f32 %v5723_v45  ;;  %vm1930_vm2 = vweird.f32 %v1924_v49  ;;  %v1956_v33 = vand.u32 2147483648, %v5723_v45  ;;  %vm1950_vm6 = vweird.f32 %v5723_v45 }
 0x514   :  { %2677 = vpow2.f32 %v2533_v4  ;;  %v1937_v38 = vor.u32 1.1754944e-38, %v1936_v41  ;;  %vm1935_vm4 = vcmp.eq.f32.partialorder %v1934_v24, 8.507059e+37  ;;  %v1954_v42 = vand.u32 2147483647, %v5723_v45 }
 0x515   :  { %v1957_v9 = vor.u32 1.1754944e-38, %v1956_v33  ;;  %v6587_v33 = vld [vmem:[#allocation12_spill] sm:$0xff] }
 0x516   :  { %vm1955_vm8 = vcmp.eq.f32.partialorder %v1954_v42, 8.507059e+37 }
 0x517   :  { %v2672_v53 = vpop.eup %2671 }
 0x518   :  { %v2674_v61 = vpop.eup %2673  ;;  %v5739_v58 = vadd.f32 1.0, %v2672_v53  ;;  %v5789_v53 = vld [vmem:[%s5925_s6] ss:$0 sm:$0xff] }
 0x519   :  { %v2676_v11 = vpop.eup %2675  ;;  %v1926_v48 = vmul.f32 %v2674_v61, %v1924_v49  ;;  %vm1931_vm1 = vweird.f32 %v2674_v61  ;;  %v2068_v39 = vadd.f32 %v5789_v53, %v2025_v21 }
 0x51a   :  { %v1946_v37 = vmul.f32 %v2676_v11, %v5723_v45  ;;  %2679 = vrcp.f32 %v5739_v58  ;;  %v2678_v8 = vpop.eup %2677  ;;  %vm1932_vm3 = vmor %vm1930_vm2, %vm1931_vm1  ;;  %vm1951_vm5 = vweird.f32 %v2676_v11  ;;  %vm2058_vm14 = vweird.f32 %v5739_v58 }
 0x51b   :  { %v1927_v32 = vsub.f32 1.0, %v1926_v48  ;;  %v2032_v15 = vadd.f32 1.0, %v2678_v8  ;;  %vm1952_vm7 = vmor %vm1950_vm6, %vm1951_vm5 }
 0x51c   :  { %v1947_v60 = vsub.f32 1.0, %v1946_v37  ;;  %v320_v37 = vadd.f32 %v6581_v19, %v6543_v47 }
 0x51d   :  { %v1928_v23 = vmul.f32 %v2674_v61, %v1927_v32  ;;  %2681 = vrcp.f32 %v2032_v15  ;;  %v2044_v22 = vand.u32 2147483648, %v2032_v15  ;;  %v2042_v49 = vand.u32 2147483647, %v2032_v15 }
 0x51e   :  { %v1948_v56 = vmul.f32 %v2676_v11, %v1947_v60  ;;  %vm2038_vm10 = vweird.f32 %v2032_v15  ;;  %v2064_v32 = vand.u32 2147483648, %v5739_v58  ;;  %v2062_v60 = vand.u32 2147483647, %v5739_v58 }
 0x51f   :  { %v1929_v13 = vadd.f32 %v2674_v61, %v1928_v23  ;;  %v2045_v26 = vor.u32 1.1754944e-38, %v2044_v22  ;;  %vm2043_vm12 = vcmp.eq.f32.partialorder %v2042_v49, 8.507059e+37  ;;  %v2343_v22 = vld [vmem:[%s5927_s8 + $0x30] sm:$0xff] }
 0x520   :  { %v5764_v25 = vpop.eup %2679  ;;  %v1949_v46 = vadd.f32 %v2676_v11, %v1948_v56  ;;  %v2065_v24 = vor.u32 1.1754944e-38, %v2064_v32  ;;  %vm2063_vm0 = vcmp.eq.f32.partialorder %v2062_v60, 8.507059e+37 }
 0x521   :  { %v1933_v31 = vsel %vm1932_vm3, %v2674_v61, %v1929_v13  ;;  %v2054_v30 = vmul.f32 %v5764_v25, %v5739_v58  ;;  %vm2059_vm13 = vweird.f32 %v5764_v25  ;;  %v6582_v58 = vld [vmem:[#allocation76_spill] sm:$0xff] }
 0x522   :  { %v1938_v50 = vsel %vm1935_vm4, %v1937_v38, %v1933_v31  ;;  %v1953_v63 = vsel %vm1952_vm7, %v2676_v11, %v1949_v46  ;;  %vm2060_vm15 = vmor %vm2058_vm14, %vm2059_vm13  ;;  %v6585_v38 = vld [vmem:[#allocation56_spill] sm:$0xff] }
 0x523   :  { %v1961_v12 = vmul.f32 %v1960_v52, %v1938_v50  ;;  %v2682_v40 = vpop.eup %2681  ;;  %v1958_v17 = vsel %vm1955_vm8, %v1957_v9, %v1953_v63  ;;  %v2055_v20 = vsub.f32 1.0, %v2054_v30  ;;  %v2352_v31 = vld [vmem:[%s5927_s8 + $0x78] sm:$0xff]  ;;  %v2351_v52 = vld [vmem:[%s5927_s8 + $0x70] sm:$0xff]  ;;  %v2346_v30 = vld [vmem:[%s5927_s8 + $0x48] sm:$0xff] }
 0x524   :  { %v2034_v10 = vmul.f32 %v2682_v40, %v2032_v15  ;;  %v1964_v36 = vsub.f32 1.0, %v1958_v17  ;;  %vm2039_vm9 = vweird.f32 %v2682_v40  ;;  %v1966_v6 = vmul.f32 %v1958_v17, %v5635_v55  ;;  %v6583_v15 = vld [vmem:[#allocation49_spill] sm:$0xff]  ;;  %2353 = vmatpush.msrb.mxu0 %v2352_v31  ;;  %v6586_v50 = vld [vmem:[#allocation27_spill] sm:$0xff] }
 0x525   :  { %v1962_v62 = vadd.f32 %v1961_v12, %v6580_v14  ;;  %v2056_v16 = vmul.f32 %v5764_v25, %v2055_v20  ;;  %vm2040_vm11 = vmor %vm2038_vm10, %vm2039_vm9 }
 0x526   :  { %v2035_v29 = vsub.f32 1.0, %v2034_v10  ;;  %2354 = vmatpush.msrb.mxu0 %v2351_v52 }
 0x527   :  { %2683 = vtanh.f32 %v1962_v62  ;;  %v2057_v11 = vadd.f32 %v5764_v25, %v2056_v16  ;;  %v2347_v62 = vld [vmem:[%s5927_s8 + $0x50] sm:$0xff]  ;;  %v2341_v16 = vld [vmem:[%s5927_s8 + $0x20] sm:$0xff] }
 0x528   :  { %v2036_v54 = vmul.f32 %v2682_v40, %v2035_v29 }
 0x529   :  { %v2061_v23 = vsel %vm2060_vm15, %v5764_v25, %v2057_v11  ;;  %v2350_v25 = vld [vmem:[%s5927_s8 + $0x68] sm:$0xff] }
 0x52a   :  { %v2037_v27 = vadd.f32 %v2682_v40, %v2036_v54  ;;  %v2066_v59 = vsel %vm2063_vm0, %v2065_v24, %v2061_v23  ;;  %2355 = vmatpush.msrb.mxu0 %v2350_v25  ;;  %v6589_v54 = vld [vmem:[#allocation7_spill] sm:$0xff] }
 0x52b   :  { %v2072_v7 = vsub.f32 1.0, %v2066_v59  ;;  %v2074_v0 = vmul.f32 %v2066_v59, %v5647_v18  ;;  %v276_v49 = vadd.f32 %v6589_v54, %v6537_v3 }
 0x52c   :  { %v2041_v4 = vsel %vm2040_vm11, %v2682_v40, %v2037_v27  ;;  %v6588_v40 = vld [vmem:[#allocation36_spill] sm:$0xff] }
 0x52d   :  { %v2684_v45 = vpop.eup %2683  ;;  %v2046_v48 = vsel %vm2043_vm12, %v2045_v26, %v2041_v4  ;;  %v2340_v27 = vld [vmem:[%s5927_s8 + $0x18] sm:$0xff]  ;;  %v2338_v4 = vld [vmem:[%s5927_s8 + $0x8] sm:$0xff] }
 0x52e   :  { %v1965_v57 = vmul.f32 %v2684_v45, %v1964_v36  ;;  %v2069_v34 = vmul.f32 %v2068_v39, %v2046_v48  ;;  %v2342_v45 = vld [vmem:[%s5927_s8 + $0x28] sm:$0xff] }
 0x530   :  { %v5792_v61 = vadd.f32 %v1966_v6, %v1965_v57  ;;  %v2070_v41 = vadd.f32 %v2069_v34, %v320_v37  ;;  %v2339_v6 = vld [vmem:[%s5927_s8 + $0x10] sm:$0xff]  ;;  %v2337_v37 = vld [vmem:[%s5927_s8] sm:$0xff] }
 0x532   :  { %2102 = vmatmul.f32.vlgmr.msrb.gmra.mxu2 %v5792_v61  ;;  %2122 = vmatmul.f32.vlgmr.msrb.gmra.mxu3 %v5792_v61  ;;  %2685 = vtanh.f32 %v2070_v41 }
 0x533   :  { %2142 = vmatmul.f32.vlgmr.msra.gmra.mxu0 %v5792_v61 }
 0x538   :  { %v2686_v8 = vpop.eup %2685 }
 0x539   :  { %v2073_v56 = vmul.f32 %v2686_v8, %v2072_v7 }
 0x53b   :  { %v5806_v13 = vadd.f32 %v2074_v0, %v2073_v56 }
 0x53d   :  { %2210 = vmatmul.f32.vlgmr.msra.gmra.mxu1 %v5806_v13  ;;  %2230 = vmatmul.f32.vlgmr.msra.gmra.mxu2 %v5806_v13 }
 0x53e   :  { %2250 = vmatmul.f32.vlgmr.msra.gmra.mxu3 %v5806_v13 }
 0x545   :  { %2410 = vmatmul.f32.vlgmr.msrb.gmra.mxu1 %v6582_v58 }
 0x54d   :  { %2413 = vmatmul.f32.gmra.mxu1 %v6583_v15 }
 0x555   :  { %2416 = vmatmul.f32.gmra.mxu1 %v6584_v44 }
 0x55d   :  { %2419 = vmatmul.f32.gmra.mxu1 %v6585_v38 }
 0x565   :  { %2422 = vmatmul.f32.gmra.mxu1 %v5206_v51 }
 0x56d   :  { %2425 = vmatmul.f32.gmra.mxu1 %v5635_v55  ;;  %v2349_v55 = vld [vmem:[%s5927_s8 + $0x60] sm:$0xff] }
 0x56e   :  { %2356 = vmatpush.msrb.mxu0 %v2349_v55 }
 0x570   :  { %2357 = vmatpush.msrb.mxu0 %v2348_v28 }
 0x572   :  { %2358 = vmatpush.msrb.mxu0 %v2347_v62 }
 0x574   :  { %2359 = vmatpush.msrb.mxu0 %v2346_v30 }
 0x575   :  { %2428 = vmatmul.f32.gmra.mxu1 %v5792_v61 }
 0x576   :  { %2360 = vmatpush.msrb.mxu0 %v2345_v35 }
 0x578   :  { %2361 = vmatpush.msrb.mxu0 %v2344_v5 }
 0x57a   :  { %2362 = vmatpush.msrb.mxu0 %v2343_v22 }
 0x57c   :  { %2363 = vmatpush.msrb.mxu0 %v2342_v45 }
 0x57e   :  { %2364 = vmatpush.msrb.mxu0 %v2341_v16 }
 0x580   :  { %2365 = vmatpush.msrb.mxu0 %v2340_v27 }
 0x582   :  { %2366 = vmatpush.msrb.mxu0 %v2339_v6 }
 0x584   :  { %2367 = vmatpush.msrb.mxu0 %v2338_v4 }
 0x586   :  { %2368 = vmatpush.msrb.mxu0 %v2337_v37 }
 0x5b0   :  { %v2143_v7 = vpop.f32.mrf.mxu0 }
 0x5b1   :  { %v2186_v15 = vadd.f32 %v5761_v1, %v2143_v7 }
 0x5b5   :  { %v2103_v51 = vpop.f32.mrf.mxu2  ;;  %v2123_v46 = vpop.f32.mrf.mxu3 }
 0x5b6   :  { %v2146_v43 = vadd.f32 %v2103_v51, %v6586_v50  ;;  %v2166_v12 = vadd.f32 %v2123_v46, %v6587_v33  ;;  %v6590_v50 = vld [vmem:[#allocation74_spill] sm:$0xff] }
 0x5b8   :  { %v2535_v42 = vmul.f32 -1.442695, %v2146_v43  ;;  %v2536_v14 = vmul.f32 -1.442695, %v2166_v12 }
 0x5ba   :  { %2687 = vpow2.f32 %v2535_v42  ;;  %v2211_v63 = vpop.f32.mrf.mxu1 }
 0x5bb   :  { %2689 = vpow2.f32 %v2536_v14  ;;  %v2254_v9 = vadd.f32 %v2211_v63, %v6588_v40 }
 0x5bd   :  { %v2537_v29 = vmul.f32 -1.442695, %v2254_v9 }
 0x5c0   :  { %v2688_v10 = vpop.eup %2687  ;;  %v2231_v21 = vpop.f32.mrf.mxu2 }
 0x5c1   :  { %v2690_v17 = vpop.eup %2689  ;;  %v2150_v20 = vadd.f32 1.0, %v2688_v10  ;;  %v2274_v57 = vadd.f32 %v2231_v21, %v276_v49  ;;  %v2251_v62 = vpop.f32.mrf.mxu3 }
 0x5c2   :  { %v5851_v36 = vadd.f32 1.0, %v2690_v17  ;;  %v2294_v10 = vadd.f32 %v5789_v53, %v2251_v62 }
 0x5c3   :  { %2691 = vrcp.f32 %v2150_v20  ;;  %v2538_v3 = vmul.f32 -1.442695, %v2274_v57  ;;  %v2162_v60 = vand.u32 2147483648, %v2150_v20  ;;  %v2160_v24 = vand.u32 2147483647, %v2150_v20 }
 0x5c4   :  { %2693 = vrcp.f32 %v5851_v36  ;;  %vm2156_vm2 = vweird.f32 %v2150_v20  ;;  %v2180_v25 = vand.u32 2147483647, %v5851_v36  ;;  %v2182_v51 = vand.u32 2147483648, %v5851_v36 }
 0x5c5   :  { %2695 = vpow2.f32 %v2537_v29  ;;  %v2163_v58 = vor.u32 1.1754944e-38, %v2162_v60  ;;  %vm2161_vm4 = vcmp.eq.f32.partialorder %v2160_v24, 8.507059e+37  ;;  %vm2176_vm6 = vweird.f32 %v5851_v36  ;;  %v6595_v60 = vld [vmem:[#allocation19_spill] sm:$0xff]  ;;  %v2546_v24 = vld [vmem:[%s5928_s9] ss:$0 sm:$0xff] }
 0x5c6   :  { %2697 = vpow2.f32 %v2538_v3  ;;  %vm2181_vm8 = vcmp.eq.f32.partialorder %v2180_v25, 8.507059e+37  ;;  %v2183_v42 = vor.u32 1.1754944e-38, %v2182_v51 }
 0x5c9   :  { %v2692_v26 = vpop.eup %2691 }
 0x5ca   :  { %v2694_v39 = vpop.eup %2693  ;;  %v2152_v11 = vmul.f32 %v2692_v26, %v2150_v20  ;;  %vm2157_vm1 = vweird.f32 %v2692_v26 }
 0x5cb   :  { %v2696_v48 = vpop.eup %2695  ;;  %v2172_v19 = vmul.f32 %v2694_v39, %v5851_v36  ;;  %vm2158_vm3 = vmor %vm2156_vm2, %vm2157_vm1  ;;  %vm2177_vm5 = vweird.f32 %v2694_v39  ;;  %v6591_v36 = vld [vmem:[#allocation15_spill] sm:$0xff] }
 0x5cc   :  { %v2153_v32 = vsub.f32 1.0, %v2152_v11  ;;  %v2258_v34 = vadd.f32 1.0, %v2696_v48  ;;  %v2698_v59 = vpop.eup %2697  ;;  %vm2178_vm7 = vmor %vm2176_vm6, %vm2177_vm5  ;;  %v317_v54 = vadd.f32 %v6591_v36, %v6543_v47 }
 0x5cd   :  { %v2173_v41 = vsub.f32 1.0, %v2172_v19  ;;  %v2278_v0 = vadd.f32 1.0, %v2698_v59 }
 0x5ce   :  { %v2154_v23 = vmul.f32 %v2692_v26, %v2153_v32  ;;  %2699 = vrcp.f32 %v2258_v34  ;;  %v2270_v28 = vand.u32 2147483648, %v2258_v34  ;;  %v2268_v35 = vand.u32 2147483647, %v2258_v34  ;;  %v6593_v32 = vld [vmem:[#allocation31_spill] sm:$0xff] }
 0x5cf   :  { %v2174_v8 = vmul.f32 %v2694_v39, %v2173_v41  ;;  %2701 = vrcp.f32 %v2278_v0  ;;  %vm2264_vm10 = vweird.f32 %v2258_v34  ;;  %v2290_v45 = vand.u32 2147483648, %v2278_v0  ;;  %v2411_v41 = vpop.f32.mrf.mxu1 }
 0x5d0   :  { %v2155_v56 = vadd.f32 %v2692_v26, %v2154_v23  ;;  %v2271_v5 = vor.u32 1.1754944e-38, %v2270_v28  ;;  %vm2269_vm12 = vcmp.eq.f32.partialorder %v2268_v35, 8.507059e+37  ;;  %vm2284_vm14 = vweird.f32 %v2278_v0 }
 0x5d1   :  { %v2175_v31 = vadd.f32 %v2694_v39, %v2174_v8  ;;  %v2288_v3 = vand.u32 2147483647, %v2278_v0  ;;  %v2291_v4 = vor.u32 1.1754944e-38, %v2290_v45 }
 0x5d2   :  { %v2159_v44 = vsel %vm2158_vm3, %v2692_v26, %v2155_v56 }
 0x5d3   :  { %v2164_v38 = vsel %vm2161_vm4, %v2163_v58, %v2159_v44  ;;  %v2179_v1 = vsel %vm2178_vm7, %v2694_v39, %v2175_v31  ;;  %vm2289_vm0 = vcmp.eq.f32.partialorder %v2288_v3, 8.507059e+37 }
 0x5d4   :  { %v2700_v52 = vpop.eup %2699  ;;  %v2187_v46 = vmul.f32 %v2186_v15, %v2164_v38  ;;  %v2184_v63 = vsel %vm2181_vm8, %v2183_v42, %v2179_v1 }
 0x5d5   :  { %v2260_v55 = vmul.f32 %v2700_v52, %v2258_v34  ;;  %v2702_v12 = vpop.eup %2701  ;;  %vm2265_vm9 = vweird.f32 %v2700_v52  ;;  %v2190_v29 = vsub.f32 1.0, %v2184_v63  ;;  %v2192_v57 = vmul.f32 %v2184_v63, %v5792_v61  ;;  %v6592_v61 = vld [vmem:[#allocation70_spill] sm:$0xff]  ;;  %v6594_v34 = vld [vmem:[#allocation21_spill] sm:$0xff] }
 0x5d6   :  { %v2188_v43 = vadd.f32 %v2187_v46, %v6590_v50  ;;  %v2280_v14 = vmul.f32 %v2702_v12, %v2278_v0  ;;  %vm2266_vm11 = vmor %vm2264_vm10, %vm2265_vm9  ;;  %vm2285_vm13 = vweird.f32 %v2702_v12 }
 0x5d7   :  { %v2261_v33 = vsub.f32 1.0, %v2260_v55  ;;  %vm2286_vm15 = vmor %vm2284_vm14, %vm2285_vm13  ;;  %v2414_v23 = vpop.f32.mrf.mxu1 }
 0x5d8   :  { %2703 = vtanh.f32 %v2188_v43  ;;  %v2281_v40 = vsub.f32 1.0, %v2280_v14 }
 0x5d9   :  { %v2262_v30 = vmul.f32 %v2700_v52, %v2261_v33 }
 0x5da   :  { %v2282_v17 = vmul.f32 %v2702_v12, %v2281_v40 }
 0x5db   :  { %v2263_v9 = vadd.f32 %v2700_v52, %v2262_v30 }
 0x5dc   :  { %v2283_v27 = vadd.f32 %v2702_v12, %v2282_v17 }
 0x5dd   :  { %v2267_v20 = vsel %vm2266_vm11, %v2700_v52, %v2263_v9 }
 0x5de   :  { %v2704_v22 = vpop.eup %2703  ;;  %v2272_v49 = vsel %vm2269_vm12, %v2271_v5, %v2267_v20  ;;  %v2287_v26 = vsel %vm2286_vm15, %v2702_v12, %v2283_v27 }
 0x5df   :  { %v2295_v16 = vmul.f32 %v2294_v10, %v2272_v49  ;;  %v2191_v21 = vmul.f32 %v2704_v22, %v2190_v29  ;;  %v2292_v39 = vsel %vm2289_vm0, %v2291_v4, %v2287_v26 }
 0x5e0   :  { %v2298_v47 = vsub.f32 1.0, %v2292_v39  ;;  %v2300_v19 = vmul.f32 %v2292_v39, %v5806_v13 }
 0x5e1   :  { %v2296_v6 = vadd.f32 %v2295_v16, %v317_v54  ;;  %v2193_v53 = vadd.f32 %v2192_v57, %v2191_v21 }
 0x5e3   :  { %2705 = vtanh.f32 %v2296_v6  ;;  %2431 = vmatmul.f32.gmra.mxu1 %v2193_v53 }
 0x5e9   :  { %v2706_v11 = vpop.eup %2705 }
 0x5ea   :  { %v2299_v48 = vmul.f32 %v2706_v11, %v2298_v47 }
 0x5ec   :  { %v2301_v37 = vadd.f32 %v2300_v19, %v2299_v48 }
 0x5ee   :  { %2369 = vmatmul.f32.vlgmr.msrb.gmra.mxu0 %v2301_v37 }
 0x5f6   :  { %2372 = vmatmul.f32.gmra.mxu0 %v5806_v13 }
 0x5fe   :  { %2375 = vmatmul.f32.gmra.mxu0 %v5647_v18 }
 0x606   :  { %2378 = vmatmul.f32.gmra.mxu0 %v5287_v2  ;;  %v2417_v2 = vpop.f32.mrf.mxu1 }
 0x60e   :  { %2381 = vmatmul.f32.gmra.mxu0 %v6592_v61  ;;  %v2420_v15 = vpop.f32.mrf.mxu1 }
 0x616   :  { %2384 = vmatmul.f32.gmra.mxu0 %v6593_v32  ;;  %v2423_v25 = vpop.f32.mrf.mxu1 }
 0x61e   :  { %2387 = vmatmul.f32.gmra.mxu0 %v6594_v34  ;;  %v2426_v50 = vpop.f32.mrf.mxu1 }
 0x626   :  { %2390 = vmatmul.f32.gmra.mxu0 %v6595_v60  ;;  %v2429_v12 = vpop.f32.mrf.mxu1 }
 0x660   :  { %v2432_v62 = vpop.f32.mrf.mxu1 }
 0x66b   :  { %v2370_v59 = vpop.f32.mrf.mxu0 }
 0x66c   :  { %v2412_v13 = vadd.f32 %v2411_v41, %v2370_v59 }
 0x66e   :  { %v2439_v7 = vadd.f32 %v2546_v24, %v2412_v13 }
 0x670   :  { %2447 = vst [vmem:[%s5929_s10] sm:$0xff] %v2439_v7 }
 0x673   :  { %v2373_v18 = vpop.f32.mrf.mxu0 }
 0x674   :  { %v2415_v8 = vadd.f32 %v2414_v23, %v2373_v18 }
 0x676   :  { %v2440_v56 = vadd.f32 %v2546_v24, %v2415_v8 }
 0x678   :  { %2448 = vst [vmem:[%s5929_s10 + $0x8] sm:$0xff] %v2440_v56 }
 0x67b   :  { %v2376_v0 = vpop.f32.mrf.mxu0 }
 0x67c   :  { %v2418_v58 = vadd.f32 %v2417_v2, %v2376_v0 }
 0x67e   :  { %v2441_v44 = vadd.f32 %v2546_v24, %v2418_v58 }
 0x680   :  { %2449 = vst [vmem:[%s5929_s10 + $0x10] sm:$0xff] %v2441_v44 }
 0x683   :  { %v2379_v38 = vpop.f32.mrf.mxu0 }
 0x684   :  { %v2421_v31 = vadd.f32 %v2420_v15, %v2379_v38 }
 0x686   :  { %v2442_v52 = vadd.f32 %v2546_v24, %v2421_v31 }
 0x688   :  { %2450 = vst [vmem:[%s5929_s10 + $0x18] sm:$0xff] %v2442_v52 }
 0x68b   :  { %v2382_v51 = vpop.f32.mrf.mxu0 }
 0x68c   :  { %v2424_v46 = vadd.f32 %v2423_v25, %v2382_v51 }
 0x68e   :  { %v2443_v55 = vadd.f32 %v2546_v24, %v2424_v46 }
 0x690   :  { %2451 = vst [vmem:[%s5929_s10 + $0x20] sm:$0xff] %v2443_v55 }
 0x693   :  { %v2385_v43 = vpop.f32.mrf.mxu0 }
 0x694   :  { %v2427_v33 = vadd.f32 %v2426_v50, %v2385_v43 }
 0x696   :  { %v2444_v1 = vadd.f32 %v2546_v24, %v2427_v33 }
 0x698   :  { %2452 = vst [vmem:[%s5929_s10 + $0x28] sm:$0xff] %v2444_v1 }
 0x69b   :  { %v2388_v28 = vpop.f32.mrf.mxu0 }
 0x69c   :  { %v2430_v42 = vadd.f32 %v2429_v12, %v2388_v28 }
 0x69e   :  { %v2445_v14 = vadd.f32 %v2546_v24, %v2430_v42 }
 0x6a0   :  { %2453 = vst [vmem:[%s5929_s10 + $0x30] sm:$0xff] %v2445_v14 }
 0x6a3   :  { %v2391_v30 = vpop.f32.mrf.mxu0 }
 0x6a4   :  { %v2433_v35 = vadd.f32 %v2432_v62, %v2391_v30 }
 0x6a6   :  { %v2446_v63 = vadd.f32 %v2546_v24, %v2433_v35 }
 0x6a8   :  { %2454 = vst [vmem:[%s5929_s10 + $0x38] sm:$0xff] %v2446_v63 }

</bundles_post_ra>
